<compile_context>
chip_gen: v7x
topology: tpu7x:2x2x1
jax: 0.10.0
libtpu: 0.0.40
codegen_flags: <defaults>
</compile_context>

<pallas_src>
import functools

import jax
import jax.numpy as jnp
import numpy as np
from jax.experimental import pallas as pl
from jax.experimental.pallas import tpu as pltpu

_NEG_SLOPE = 0.1
_BN_EPS = 1e-5
_LANE = 128


def _round_up(x, m):
    return (x + m - 1) // m * m


def _vmem_capacity_bytes():
    try:
        return int(getattr(pltpu.get_tpu_info(), "vmem_capacity_bytes", 64 << 20))
    except Exception:
        return 64 << 20


_VMEM_CAP = _vmem_capacity_bytes()


# ---------------------------------------------------------------------------
# Pallas kernel: direct conv (static tap loop, bf16 MXU matmuls, f32 accum)
# + folded-BN shift + LeakyReLU [+ residual add + final LeakyReLU]
# ---------------------------------------------------------------------------
def _conv_bn_act_kernel(*refs, kh, kw, stride, hb, wo_p, cin_blk, n_cin,
                        multi_phase, apply_lrelu, fuse_residual,
                        ident_from_xph, n_t, ho, wo, mask_rows, mask_cols,
                        neg_slope):
    it = iter(refs)
    x_ref = next(it)
    w_ref = next(it)
    shift_ref = next(it)
    ident_ref = next(it) if fuse_residual else None
    o_ref = next(it)
    acc_ref = next(it) if n_cin > 1 else None

    def tap(dy, dx):
        # Phase-split makes every (dy, dx) tap a contiguous static slice.
        ph = (dy % stride) * stride + (dx % stride) if multi_phase else 0
        xs = x_ref[0, ph,
                   dy // stride: dy // stride + hb,
                   dx // stride: dx // stride + wo_p, :]
        return jnp.dot(xs.reshape(hb * wo_p, cin_blk), w_ref[dy, dx],
                       preferred_element_type=jnp.float32)

    taps = [(dy, dx) for dy in range(kh) for dx in range(kw)]

    def epilogue(acc):
        z = acc + shift_ref[...]                       # BN shift (scale in W)
        if apply_lrelu:
            z = jnp.where(z >= 0, z, neg_slope * z)
        if fuse_residual:
            if ident_from_xph:                         # residual = padded input x
                idn = ident_ref[0, 0, 1:1 + hb, 1:1 + wo_p, :]
            else:                                      # residual = 1x1/s2 branch
                idn = ident_ref[0]
            z = z + idn.reshape(hb * wo_p, idn.shape[-1]).astype(jnp.float32)
            z = jnp.where(z >= 0, z, neg_slope * z)
        if mask_rows or mask_cols:                     # zero padded rows/cols so
            z = z.reshape(hb, wo_p, z.shape[-1])       # they act as conv padding
            valid = None
            if mask_rows:
                t = pl.program_id(0) % n_t
                rows = jax.lax.broadcasted_iota(jnp.int32, (hb, wo_p, 1), 0)
                valid = rows + t * hb < ho
            if mask_cols:
                cols = jax.lax.broadcasted_iota(jnp.int32, (hb, wo_p, 1), 1)
                cvalid = cols < wo
                valid = cvalid if valid is None else valid & cvalid
            z = jnp.where(valid, z, 0.0)
        o_ref[...] = z.reshape(o_ref.shape).astype(o_ref.dtype)

    if n_cin == 1:
        # Single Cin block: no scratch, single pass over the output tile.
        acc = tap(*taps[0])
        for dydx in taps[1:]:
            acc = acc + tap(*dydx)
        epilogue(acc)
    else:
        cb = pl.program_id(1)
        first = tap(*taps[0])

        @pl.when(cb == 0)
        def _():
            acc_ref[...] = first                       # assign, not zero + add

        @pl.when(cb > 0)
        def _():
            acc_ref[...] += first

        for dydx in taps[1:]:
            acc_ref[...] += tap(*dydx)

        @pl.when(cb == n_cin - 1)
        def _():
            epilogue(acc_ref[...])


def _conv_bn_act(x_t, w, shift, *, kh, kw, stride, hb, n_t, ho, wo, wo_p,
                 phase_sel=None, apply_lrelu, identity=None,
                 ident_from_xph=False, out_dtype=jnp.float32):
    """x_t: (N*n_t, s*s, hb+halo, wq, Cin_p) bf16 phase-split, halo'd row tiles."""
    nbt, ss, hrows, wq, cin_p = x_t.shape
    cout_p = w.shape[-1]

    # Cin-block reduction axis ('arbitrary', last).  Keep K >= 256 on v6e/v7x.
    if cin_p <= 512:
        cin_blk = cin_p
    elif cin_p % 256 == 0:
        cin_blk = 256
    else:
        cin_blk = 128  # TODO(synk): only MXU-native on v5e; pad Cin to 256 upstream.
    assert cin_p % cin_blk == 0
    n_cin = cin_p // cin_blk

    ss_blk = ss if phase_sel is None else 1
    ph_idx = 0 if phase_sel is None else phase_sel

    in_specs = [
        pl.BlockSpec((1, ss_blk, hrows, wq, cin_blk),
                     lambda bt, c=0: (bt, ph_idx, 0, 0, c)),
        pl.BlockSpec((kh, kw, cin_blk, cout_p), lambda bt, c=0: (0, 0, c, 0)),
        pl.BlockSpec((1, cout_p), lambda bt, c=0: (0, 0)),
    ]
    args = [x_t, w, shift]
    ident_blk_bytes = 0
    if identity is not None:
        if ident_from_xph:
            ib = (1,) + tuple(identity.shape[1:])
            in_specs.append(pl.BlockSpec(ib, lambda bt, c=0: (bt, 0, 0, 0, 0)))
        else:
            ib = (1, hb, wo_p, cout_p)
            in_specs.append(pl.BlockSpec(ib, lambda bt, c=0: (bt, 0, 0, 0)))
        args.append(identity)
        ident_blk_bytes = int(np.prod(ib)) * identity.dtype.itemsize

    out_spec = pl.BlockSpec((1, hb, wo_p, cout_p), lambda bt, c=0: (bt, 0, 0, 0))

    kernel = functools.partial(
        _conv_bn_act_kernel, kh=kh, kw=kw, stride=stride, hb=hb, wo_p=wo_p,
        cin_blk=cin_blk, n_cin=n_cin,
        multi_phase=(phase_sel is None and stride > 1),
        apply_lrelu=apply_lrelu, fuse_residual=identity is not None,
        ident_from_xph=ident_from_xph, n_t=n_t, ho=ho, wo=wo,
        mask_rows=(n_t * hb > ho), mask_cols=(wo_p > wo),
        neg_slope=_NEG_SLOPE)

    # VMEM budget: double-buffered blocks + accumulator + temporaries, capped
    # safely under this generation's physical VMEM.
    x_blk = ss_blk * hrows * wq * cin_blk * x_t.dtype.itemsize
    w_blk = kh * kw * cin_blk * cout_p * w.dtype.itemsize
    o_blk = hb * wo_p * cout_p * np.dtype(out_dtype).itemsize
    acc_b = hb * wo_p * cout_p * 4 if n_cin > 1 else 0
    tmp_b = hb * wo_p * cout_p * 4 + hrows * wq * cin_blk * 4
    need = 2 * (x_blk + w_blk + o_blk + ident_blk_bytes + cout_p * 4) + acc_b + tmp_b
    vmem_limit = int(min(max(2 * need, 32 << 20), int(_VMEM_CAP * 0.9)))

    if n_cin == 1:
        grid = (nbt,)
        sem = ("parallel",)
        scratch = []
    else:
        grid = (nbt, n_cin)
        sem = ("parallel", "arbitrary")
        scratch = [pltpu.VMEM((hb * wo_p, cout_p), jnp.float32)]

    return pl.pallas_call(
        kernel,
        grid=grid,
        in_specs=in_specs,
        out_specs=out_spec,
        out_shape=jax.ShapeDtypeStruct((nbt, hb, wo_p, cout_p), out_dtype),
        scratch_shapes=scratch,
        compiler_params=pltpu.CompilerParams(
            dimension_semantics=sem, vmem_limit_bytes=vmem_limit),
    )(*args)


# ---------------------------------------------------------------------------
# Host-side glue: pad + phase split + halo'd row tiles, weight/BN folding
# ---------------------------------------------------------------------------
def _prep_conv_input(x, kh, kw, stride, pad, ho_p, wo_p, hb, n_t):
    """(N, H, W, Cp) -> (N*n_t, s*s, hb+halo, wq, Cp): spatial pad, stride-2
    space-to-depth phase split and overlapping row tiles, so every conv tap in
    the kernel is a contiguous static slice of one block."""
    n, h, w, c = x.shape
    halo = (kh - 1) // stride
    hq = ho_p + halo
    wq = wo_p + (kw - 1) // stride
    pb = stride * hq - h - pad
    pr = stride * wq - w - pad
    assert pb >= 0 and pr >= 0, (pb, pr)
    xp = jnp.pad(x, ((0, 0), (pad, pb), (pad, pr), (0, 0)))
    if stride == 1:
        xp = xp[:, None]                               # (N, 1, hq, wq, C)
    else:
        xp = xp.reshape(n, hq, stride, wq, stride, c)
        xp = jnp.transpose(xp, (0, 2, 4, 1, 3, 5))
        xp = xp.reshape(n, stride * stride, hq, wq, c)
    tiles = [xp[:, :, t * hb: t * hb + hb + halo] for t in range(n_t)]
    xt = jnp.stack(tiles, axis=1)                      # (N, n_t, ss, hb+halo, wq, C)
    return xt.reshape(n * n_t, stride * stride, hb + halo, wq, c)


def _fold_bn_into_w(w, bn, cin, cin_p, cout, cout_p):
    gamma, beta, mean, var = bn
    scale = gamma / jnp.sqrt(var + _BN_EPS)            # per output channel
    shift = beta - mean * scale
    # PyTorch (Cout, Cin, KH, KW) -> (KH, KW, Cin, Cout), fold BN scale into W.
    wm = jnp.transpose(w, (2, 3, 1, 0)) * scale[None, None, None, :]
    kh, kw = w.shape[2], w.shape[3]
    w_pad = jnp.zeros((kh, kw, cin_p, cout_p), jnp.float32)
    w_pad = w_pad.at[:, :, :cin, :cout].set(wm).astype(jnp.bfloat16)
    shift_pad = jnp.zeros((1, cout_p), jnp.float32).at[0, :cout].set(shift)
    return w_pad, shift_pad


def _pick_row_tile(ho, wo_p, cin_p, cout_p, stride):
    """Largest row tile (multiple of 8) whose per-step working set fits well
    under this generation's VMEM, aiming for ~1024 output rows per step."""
    c_big = max(cin_p, cout_p)

    def est(hb):
        m = hb * wo_p
        x_in = stride * stride * (hb + 2) * (wo_p + 2) * c_big * 2
        w_b = 9 * min(c_big, 512) * cout_p * 2
        o_b = m * cout_p * 4
        i_b = m * cout_p * 2
        acc = m * cout_p * 4
        tmp = m * (cout_p + c_big) * 4
        return 2 * (x_in + w_b + o_b + i_b) + acc + tmp

    hb = min(_round_up(ho, 8), max(8, _round_up(max(1, 1024 // wo_p), 8)))
    while hb > 8 and est(hb) > _VMEM_CAP * 0.35:
        hb = max(8, _round_up(hb // 2, 8))
    return hb


def res_unit_forward(x_nchw, params, row_tile=None):
    x = jnp.transpose(x_nchw, (0, 2, 3, 1))            # NCHW -> NHWC
    n, h, w, cin = x.shape
    cout = params["w1"].shape[0]
    downsample = "w_ds" in params
    stride = 2 if downsample else 1
    ho = (h - 1) // stride + 1
    wo = (w - 1) // stride + 1

    cin_p = _round_up(cin, _LANE)
    cout_p = _round_up(cout, _LANE)
    if cin_p > 512:                                    # keep MXU K >= 256 (v6e/v7x)
        cin_p = _round_up(cin_p, 256)
    if cout_p > 512:
        cout_p = _round_up(cout_p, 256)

    wo_p = _round_up(wo, 8)                            # lane/sublane-friendly width
    if row_tile is None:
        hb = _pick_row_tile(ho, wo_p, cin_p, cout_p, stride)
    else:
        hb = max(1, int(row_tile))
    hb = min(hb, _round_up(ho, 8))
    n_t = -(-ho // hb)
    ho_p = n_t * hb

    x_b = jnp.pad(x, ((0, 0), (0, 0), (0, 0), (0, cin_p - cin))
                  ).astype(jnp.bfloat16)

    # CBL1 (and identity-branch) input: stride-s phase split + halo'd row tiles.
    x_t1 = _prep_conv_input(x_b, 3, 3, stride, 1, ho_p, wo_p, hb, n_t)

    # ---- CBL1: conv3x3(stride) + BN + LeakyReLU ----
    w1, sh1 = _fold_bn_into_w(params["w1"], params["bn1"], cin, cin_p, cout, cout_p)
    y1 = _conv_bn_act(x_t1, w1, sh1, kh=3, kw=3, stride=stride, hb=hb, n_t=n_t,
                      ho=ho, wo=wo, wo_p=wo_p, apply_lrelu=True,
                      out_dtype=jnp.bfloat16)

    # ---- identity branch ----
    if downsample:
        # Phase 3 of the stride-2 phase split is exactly the stride-2 sub-grid
        # the 1x1/s2 conv needs -> reuse x_t1, BlockSpec selects the phase.
        w_ds, sh_ds = _fold_bn_into_w(params["w_ds"], params["bn_ds"],
                                      cin, cin_p, cout, cout_p)
        ident = _conv_bn_act(x_t1, w_ds, sh_ds, kh=1, kw=1, stride=1, hb=hb,
                             n_t=n_t, ho=ho, wo=wo, wo_p=wo_p, phase_sel=3,
                             apply_lrelu=False, out_dtype=jnp.bfloat16)
        ident_from_xph = False
    else:
        ident = x_t1                                   # cin_p == cout_p here
        ident_from_xph = True

    # ---- CBL2: conv3x3(1) + BN + LeakyReLU fused with residual + LeakyReLU ----
    w2, sh2 = _fold_bn_into_w(params["w2"], params["bn2"], cout, cout_p, cout, cout_p)
    y1_img = y1.reshape(n, ho_p, wo_p, cout_p)
    y1_t = _prep_conv_input(y1_img, 3, 3, 1, 1, ho_p, wo_p, hb, n_t)
    out = _conv_bn_act(y1_t, w2, sh2, kh=3, kw=3, stride=1, hb=hb, n_t=n_t,
                       ho=ho, wo=wo, wo_p=wo_p, apply_lrelu=True,
                       identity=ident, ident_from_xph=ident_from_xph,
                       out_dtype=jnp.float32)

    out = out.reshape(n, ho_p, wo_p, cout_p)[:, :ho, :wo, :cout]
    return jnp.transpose(out, (0, 3, 1, 2))            # NHWC -> NCHW


# ---------------------------------------------------------------------------
# Deterministic synthetic parameters + pure-JAX reference
# ---------------------------------------------------------------------------
def init_params(cin, cout, key):
    ks = jax.random.split(key, 6)

    def bn_params(k):
        k1, k2, k3, k4 = jax.random.split(k, 4)
        gamma = jax.random.uniform(k1, (cout,), jnp.float32, 0.5, 1.5)
        beta = jax.random.normal(k2, (cout,), jnp.float32) * 0.1
        mean = jax.random.normal(k3, (cout,), jnp.float32) * 0.1
        var = jax.random.uniform(k4, (cout,), jnp.float32, 0.5, 1.5)
        return gamma, beta, mean, var

    params = {
        "w1": jax.random.normal(ks[0], (cout, cin, 3, 3), jnp.float32) * 0.1,
        "bn1": bn_params(ks[1]),
        "w2": jax.random.normal(ks[2], (cout, cout, 3, 3), jnp.float32) * 0.1,
        "bn2": bn_params(ks[3]),
    }
    if cin != cout:
        params["w_ds"] = jax.random.normal(ks[4], (cout, cin, 1, 1),
                                           jnp.float32) * 0.1
        params["bn_ds"] = bn_params(ks[5])
    return params


def ref_resunit(x, params):
    def conv(x, w, stride, pad):
        return jax.lax.conv_general_dilated(
            x, w, (stride, stride), [(pad, pad), (pad, pad)],
            dimension_numbers=("NCHW", "OIHW", "NCHW"),
            precision=jax.lax.Precision.HIGHEST)

    def bn(x, p):
        g, b, m, v = p
        inv = g / jnp.sqrt(v + _BN_EPS)
        return ((x - m[None, :, None, None]) * inv[None, :, None, None]
                + b[None, :, None, None])

    def lrelu(x):
        return jnp.where(x >= 0, x, _NEG_SLOPE * x)

    downsample = "w_ds" in params
    stride = 2 if downsample else 1
    identity = x
    if downsample:
        identity = bn(conv(x, params["w_ds"], 2, 0), params["bn_ds"])
    y = lrelu(bn(conv(x, params["w1"], stride, 1), params["bn1"]))
    y = lrelu(bn(conv(y, params["w2"], 1, 1), params["bn2"]))
    return lrelu(y + identity)


if __name__ == "__main__":
    fwd = jax.jit(res_unit_forward, static_argnames=("row_tile",))
    key = jax.random.PRNGKey(0)

    def run_case(case_key, n, cin, cout, h, w, row_tile):
        kx, kp = jax.random.split(case_key)
        x = jax.random.normal(kx, (n, cin, h, w), jnp.float32)
        params = init_params(cin, cout, kp)
        out = jax.block_until_ready(fwd(x, params, row_tile=row_tile))
        ref = ref_resunit(x, params)
        assert out.shape == ref.shape, (out.shape, ref.shape)
        err = float(jnp.max(jnp.abs(out - ref)))
        # bf16 MXU inputs vs f32-HIGHEST reference -> loosened tolerance.
        assert jnp.allclose(out, ref, atol=5e-2, rtol=5e-2), err
        return err

    k1, k2, k3 = jax.random.split(key, 3)
    # 1) Cin != Cout: stride-2 CBL1 + 1x1/s2 identity (single row tile).
    run_case(k1, 2, 4, 8, 16, 16, None)
    # 2) Cin == Cout: plain residual path, forced 2 row tiles (multi-tile).
    run_case(k2, 2, 8, 8, 16, 16, 8)
    # 3) Odd spatial size at stride 2: exercises width/row padding + masking.
    run_case(k3, 2, 4, 8, 10, 10, 4)

    print("KERNEL_OK")
</pallas_src>

<mosaic_0001>
module attributes {stable_mosaic.version = 11 : i64} {
  func.func @_conv_bn_act_kernel(%arg0: i32, %arg1: memref<1x4x9x9x128xbf16, #tpu.memory_space<vmem>>, %arg2: memref<3x3x128x128xbf16, #tpu.memory_space<vmem>>, %arg3: memref<1x128xf32, #tpu.memory_space<vmem>>, %arg4: memref<1x8x8x128xbf16, #tpu.memory_space<vmem>>) attributes {dimension_semantics = [#tpu.dimension_semantics<parallel>], iteration_bounds = array<i64: 2>, scalar_prefetch = 0 : i64, scratch_operands = 0 : i64, tpu.core_type = #tpu.core_type<tc>, window_params = [{transform_indices = @transform_0, window_bounds = array<i64: 1, 4, 9, 9, 128>}, {pipeline_mode = #tpu.pipeline_mode<synchronous>, transform_indices = @transform_1, window_bounds = array<i64: 3, 3, 128, 128>}, {pipeline_mode = #tpu.pipeline_mode<synchronous>, transform_indices = @transform_2, window_bounds = array<i64: 1, 128>}, {transform_indices = @transform_3, window_bounds = array<i64: 1, 8, 8, 128>}]} {
    %c0 = arith.constant 0 : index
    %c0_0 = arith.constant 0 : index
    %c0_1 = arith.constant 0 : index
    %c0_2 = arith.constant 0 : index
    %c0_3 = arith.constant 0 : index
    %0 = vector.load %arg1[%c0, %c0_0, %c0_1, %c0_2, %c0_3] : memref<1x4x9x9x128xbf16, #tpu.memory_space<vmem>>, vector<1x1x8x8x128xbf16>
    %1 = vector.shape_cast %0 : vector<1x1x8x8x128xbf16> to vector<8x8x128xbf16>
    %2 = vector.shape_cast %1 : vector<8x8x128xbf16> to vector<64x128xbf16>
    %c0_4 = arith.constant 0 : index
    %c0_5 = arith.constant 0 : index
    %c0_6 = arith.constant 0 : index
    %c0_7 = arith.constant 0 : index
    %3 = vector.load %arg2[%c0_4, %c0_5, %c0_6, %c0_7] : memref<3x3x128x128xbf16, #tpu.memory_space<vmem>>, vector<1x1x128x128xbf16>
    %4 = vector.shape_cast %3 : vector<1x1x128x128xbf16> to vector<128x128xbf16>
    %cst = arith.constant dense<0.000000e+00> : vector<64x128xf32>
    %5 = tpu.matmul %2, %4, %cst {dimension_numbers = #tpu.dot_dimension_numbers<[1], [0], [0], [1], [0, 0, 1, 1], [], []>} : vector<64x128xbf16>, vector<128x128xbf16>, vector<64x128xf32> -> vector<64x128xf32>
    %c0_8 = arith.constant 0 : index
    %c1 = arith.constant 1 : index
    %c0_9 = arith.constant 0 : index
    %c0_10 = arith.constant 0 : index
    %c0_11 = arith.constant 0 : index
    %6 = vector.load %arg1[%c0_8, %c1, %c0_9, %c0_10, %c0_11] : memref<1x4x9x9x128xbf16, #tpu.memory_space<vmem>>, vector<1x1x8x8x128xbf16>
    %7 = vector.shape_cast %6 : vector<1x1x8x8x128xbf16> to vector<8x8x128xbf16>
    %8 = vector.shape_cast %7 : vector<8x8x128xbf16> to vector<64x128xbf16>
    %c0_12 = arith.constant 0 : index
    %c1_13 = arith.constant 1 : index
    %c0_14 = arith.constant 0 : index
    %c0_15 = arith.constant 0 : index
    %9 = vector.load %arg2[%c0_12, %c1_13, %c0_14, %c0_15] : memref<3x3x128x128xbf16, #tpu.memory_space<vmem>>, vector<1x1x128x128xbf16>
    %10 = vector.shape_cast %9 : vector<1x1x128x128xbf16> to vector<128x128xbf16>
    %cst_16 = arith.constant dense<0.000000e+00> : vector<64x128xf32>
    %11 = tpu.matmul %8, %10, %cst_16 {dimension_numbers = #tpu.dot_dimension_numbers<[1], [0], [0], [1], [0, 0, 1, 1], [], []>} : vector<64x128xbf16>, vector<128x128xbf16>, vector<64x128xf32> -> vector<64x128xf32>
    %12 = arith.addf %5, %11 : vector<64x128xf32>
    %c0_17 = arith.constant 0 : index
    %c0_18 = arith.constant 0 : index
    %c0_19 = arith.constant 0 : index
    %c1_20 = arith.constant 1 : index
    %c0_21 = arith.constant 0 : index
    %13 = vector.load %arg1[%c0_17, %c0_18, %c0_19, %c1_20, %c0_21] : memref<1x4x9x9x128xbf16, #tpu.memory_space<vmem>>, vector<1x1x8x8x128xbf16>
    %14 = vector.shape_cast %13 : vector<1x1x8x8x128xbf16> to vector<8x8x128xbf16>
    %15 = vector.shape_cast %14 : vector<8x8x128xbf16> to vector<64x128xbf16>
    %c0_22 = arith.constant 0 : index
    %c2 = arith.constant 2 : index
    %c0_23 = arith.constant 0 : index
    %c0_24 = arith.constant 0 : index
    %16 = vector.load %arg2[%c0_22, %c2, %c0_23, %c0_24] : memref<3x3x128x128xbf16, #tpu.memory_space<vmem>>, vector<1x1x128x128xbf16>
    %17 = vector.shape_cast %16 : vector<1x1x128x128xbf16> to vector<128x128xbf16>
    %cst_25 = arith.constant dense<0.000000e+00> : vector<64x128xf32>
    %18 = tpu.matmul %15, %17, %cst_25 {dimension_numbers = #tpu.dot_dimension_numbers<[1], [0], [0], [1], [0, 0, 1, 1], [], []>} : vector<64x128xbf16>, vector<128x128xbf16>, vector<64x128xf32> -> vector<64x128xf32>
    %19 = arith.addf %12, %18 : vector<64x128xf32>
    %c0_26 = arith.constant 0 : index
    %c2_27 = arith.constant 2 : index
    %c0_28 = arith.constant 0 : index
    %c0_29 = arith.constant 0 : index
    %c0_30 = arith.constant 0 : index
    %20 = vector.load %arg1[%c0_26, %c2_27, %c0_28, %c0_29, %c0_30] : memref<1x4x9x9x128xbf16, #tpu.memory_space<vmem>>, vector<1x1x8x8x128xbf16>
    %21 = vector.shape_cast %20 : vector<1x1x8x8x128xbf16> to vector<8x8x128xbf16>
    %22 = vector.shape_cast %21 : vector<8x8x128xbf16> to vector<64x128xbf16>
    %c1_31 = arith.constant 1 : index
    %c0_32 = arith.constant 0 : index
    %c0_33 = arith.constant 0 : index
    %c0_34 = arith.constant 0 : index
    %23 = vector.load %arg2[%c1_31, %c0_32, %c0_33, %c0_34] : memref<3x3x128x128xbf16, #tpu.memory_space<vmem>>, vector<1x1x128x128xbf16>
    %24 = vector.shape_cast %23 : vector<1x1x128x128xbf16> to vector<128x128xbf16>
    %cst_35 = arith.constant dense<0.000000e+00> : vector<64x128xf32>
    %25 = tpu.matmul %22, %24, %cst_35 {dimension_numbers = #tpu.dot_dimension_numbers<[1], [0], [0], [1], [0, 0, 1, 1], [], []>} : vector<64x128xbf16>, vector<128x128xbf16>, vector<64x128xf32> -> vector<64x128xf32>
    %26 = arith.addf %19, %25 : vector<64x128xf32>
    %c0_36 = arith.constant 0 : index
    %c3 = arith.constant 3 : index
    %c0_37 = arith.constant 0 : index
    %c0_38 = arith.constant 0 : index
    %c0_39 = arith.constant 0 : index
    %27 = vector.load %arg1[%c0_36, %c3, %c0_37, %c0_38, %c0_39] : memref<1x4x9x9x128xbf16, #tpu.memory_space<vmem>>, vector<1x1x8x8x128xbf16>
    %28 = vector.shape_cast %27 : vector<1x1x8x8x128xbf16> to vector<8x8x128xbf16>
    %29 = vector.shape_cast %28 : vector<8x8x128xbf16> to vector<64x128xbf16>
    %c1_40 = arith.constant 1 : index
    %c1_41 = arith.constant 1 : index
    %c0_42 = arith.constant 0 : index
    %c0_43 = arith.constant 0 : index
    %30 = vector.load %arg2[%c1_40, %c1_41, %c0_42, %c0_43] : memref<3x3x128x128xbf16, #tpu.memory_space<vmem>>, vector<1x1x128x128xbf16>
    %31 = vector.shape_cast %30 : vector<1x1x128x128xbf16> to vector<128x128xbf16>
    %cst_44 = arith.constant dense<0.000000e+00> : vector<64x128xf32>
    %32 = tpu.matmul %29, %31, %cst_44 {dimension_numbers = #tpu.dot_dimension_numbers<[1], [0], [0], [1], [0, 0, 1, 1], [], []>} : vector<64x128xbf16>, vector<128x128xbf16>, vector<64x128xf32> -> vector<64x128xf32>
    %33 = arith.addf %26, %32 : vector<64x128xf32>
    %c0_45 = arith.constant 0 : index
    %c2_46 = arith.constant 2 : index
    %c0_47 = arith.constant 0 : index
    %c1_48 = arith.constant 1 : index
    %c0_49 = arith.constant 0 : index
    %34 = vector.load %arg1[%c0_45, %c2_46, %c0_47, %c1_48, %c0_49] : memref<1x4x9x9x128xbf16, #tpu.memory_space<vmem>>, vector<1x1x8x8x128xbf16>
    %35 = vector.shape_cast %34 : vector<1x1x8x8x128xbf16> to vector<8x8x128xbf16>
    %36 = vector.shape_cast %35 : vector<8x8x128xbf16> to vector<64x128xbf16>
    %c1_50 = arith.constant 1 : index
    %c2_51 = arith.constant 2 : index
    %c0_52 = arith.constant 0 : index
    %c0_53 = arith.constant 0 : index
    %37 = vector.load %arg2[%c1_50, %c2_51, %c0_52, %c0_53] : memref<3x3x128x128xbf16, #tpu.memory_space<vmem>>, vector<1x1x128x128xbf16>
    %38 = vector.shape_cast %37 : vector<1x1x128x128xbf16> to vector<128x128xbf16>
    %cst_54 = arith.constant dense<0.000000e+00> : vector<64x128xf32>
    %39 = tpu.matmul %36, %38, %cst_54 {dimension_numbers = #tpu.dot_dimension_numbers<[1], [0], [0], [1], [0, 0, 1, 1], [], []>} : vector<64x128xbf16>, vector<128x128xbf16>, vector<64x128xf32> -> vector<64x128xf32>
    %40 = arith.addf %33, %39 : vector<64x128xf32>
    %c0_55 = arith.constant 0 : index
    %c0_56 = arith.constant 0 : index
    %c1_57 = arith.constant 1 : index
    %c0_58 = arith.constant 0 : index
    %c0_59 = arith.constant 0 : index
    %41 = vector.load %arg1[%c0_55, %c0_56, %c1_57, %c0_58, %c0_59] : memref<1x4x9x9x128xbf16, #tpu.memory_space<vmem>>, vector<1x1x8x8x128xbf16>
    %42 = vector.shape_cast %41 : vector<1x1x8x8x128xbf16> to vector<8x8x128xbf16>
    %43 = vector.shape_cast %42 : vector<8x8x128xbf16> to vector<64x128xbf16>
    %c2_60 = arith.constant 2 : index
    %c0_61 = arith.constant 0 : index
    %c0_62 = arith.constant 0 : index
    %c0_63 = arith.constant 0 : index
    %44 = vector.load %arg2[%c2_60, %c0_61, %c0_62, %c0_63] : memref<3x3x128x128xbf16, #tpu.memory_space<vmem>>, vector<1x1x128x128xbf16>
    %45 = vector.shape_cast %44 : vector<1x1x128x128xbf16> to vector<128x128xbf16>
    %cst_64 = arith.constant dense<0.000000e+00> : vector<64x128xf32>
    %46 = tpu.matmul %43, %45, %cst_64 {dimension_numbers = #tpu.dot_dimension_numbers<[1], [0], [0], [1], [0, 0, 1, 1], [], []>} : vector<64x128xbf16>, vector<128x128xbf16>, vector<64x128xf32> -> vector<64x128xf32>
    %47 = arith.addf %40, %46 : vector<64x128xf32>
    %c0_65 = arith.constant 0 : index
    %c1_66 = arith.constant 1 : index
    %c1_67 = arith.constant 1 : index
    %c0_68 = arith.constant 0 : index
    %c0_69 = arith.constant 0 : index
    %48 = vector.load %arg1[%c0_65, %c1_66, %c1_67, %c0_68, %c0_69] : memref<1x4x9x9x128xbf16, #tpu.memory_space<vmem>>, vector<1x1x8x8x128xbf16>
    %49 = vector.shape_cast %48 : vector<1x1x8x8x128xbf16> to vector<8x8x128xbf16>
    %50 = vector.shape_cast %49 : vector<8x8x128xbf16> to vector<64x128xbf16>
    %c2_70 = arith.constant 2 : index
    %c1_71 = arith.constant 1 : index
    %c0_72 = arith.constant 0 : index
    %c0_73 = arith.constant 0 : index
    %51 = vector.load %arg2[%c2_70, %c1_71, %c0_72, %c0_73] : memref<3x3x128x128xbf16, #tpu.memory_space<vmem>>, vector<1x1x128x128xbf16>
    %52 = vector.shape_cast %51 : vector<1x1x128x128xbf16> to vector<128x128xbf16>
    %cst_74 = arith.constant dense<0.000000e+00> : vector<64x128xf32>
    %53 = tpu.matmul %50, %52, %cst_74 {dimension_numbers = #tpu.dot_dimension_numbers<[1], [0], [0], [1], [0, 0, 1, 1], [], []>} : vector<64x128xbf16>, vector<128x128xbf16>, vector<64x128xf32> -> vector<64x128xf32>
    %54 = arith.addf %47, %53 : vector<64x128xf32>
    %c0_75 = arith.constant 0 : index
    %c0_76 = arith.constant 0 : index
    %c1_77 = arith.constant 1 : index
    %c1_78 = arith.constant 1 : index
    %c0_79 = arith.constant 0 : index
    %55 = vector.load %arg1[%c0_75, %c0_76, %c1_77, %c1_78, %c0_79] : memref<1x4x9x9x128xbf16, #tpu.memory_space<vmem>>, vector<1x1x8x8x128xbf16>
    %56 = vector.shape_cast %55 : vector<1x1x8x8x128xbf16> to vector<8x8x128xbf16>
    %57 = vector.shape_cast %56 : vector<8x8x128xbf16> to vector<64x128xbf16>
    %c2_80 = arith.constant 2 : index
    %c2_81 = arith.constant 2 : index
    %c0_82 = arith.constant 0 : index
    %c0_83 = arith.constant 0 : index
    %58 = vector.load %arg2[%c2_80, %c2_81, %c0_82, %c0_83] : memref<3x3x128x128xbf16, #tpu.memory_space<vmem>>, vector<1x1x128x128xbf16>
    %59 = vector.shape_cast %58 : vector<1x1x128x128xbf16> to vector<128x128xbf16>
    %cst_84 = arith.constant dense<0.000000e+00> : vector<64x128xf32>
    %60 = tpu.matmul %57, %59, %cst_84 {dimension_numbers = #tpu.dot_dimension_numbers<[1], [0], [0], [1], [0, 0, 1, 1], [], []>} : vector<64x128xbf16>, vector<128x128xbf16>, vector<64x128xf32> -> vector<64x128xf32>
    %61 = arith.addf %54, %60 : vector<64x128xf32>
    %c0_85 = arith.constant 0 : index
    %c0_86 = arith.constant 0 : index
    %62 = vector.load %arg3[%c0_85, %c0_86] : memref<1x128xf32, #tpu.memory_space<vmem>>, vector<1x128xf32>
    %63 = vector.broadcast %62 : vector<1x128xf32> to vector<64x128xf32>
    %64 = arith.addf %61, %63 : vector<64x128xf32>
    %cst_87 = arith.constant 0.000000e+00 : f32
    %65 = vector.broadcast %cst_87 : f32 to vector<64x128xf32>
    %66 = arith.cmpf oge, %64, %65 : vector<64x128xf32>
    %cst_88 = arith.constant 1.000000e-01 : f32
    %67 = vector.broadcast %cst_88 : f32 to vector<64x128xf32>
    %68 = arith.mulf %67, %64 : vector<64x128xf32>
    %69 = arith.select %66, %64, %68 : vector<64x128xi1>, vector<64x128xf32>
    %70 = vector.shape_cast %69 : vector<64x128xf32> to vector<1x8x8x128xf32>
    %71 = arith.truncf %70 : vector<1x8x8x128xf32> to vector<1x8x8x128xbf16>
    %c0_89 = arith.constant 0 : index
    %c0_90 = arith.constant 0 : index
    %c0_91 = arith.constant 0 : index
    %c0_92 = arith.constant 0 : index
    %72 = vector.load %arg4[%c0_89, %c0_90, %c0_91, %c0_92] : memref<1x8x8x128xbf16, #tpu.memory_space<vmem>>, vector<1x8x8x128xbf16>
    tpu.vector_store %arg4[%c0_89, %c0_90, %c0_91, %c0_92], %71 {strides = array<i32>} : memref<1x8x8x128xbf16, #tpu.memory_space<vmem>>, vector<1x8x8x128xbf16>,
    return
  }
  func.func @transform_0(%arg0: i32) -> (i32, i32, i32, i32, i32) {
    %c0_i32 = arith.constant 0 : i32
    %c0_i32_0 = arith.constant 0 : i32
    %c0_i32_1 = arith.constant 0 : i32
    %c0_i32_2 = arith.constant 0 : i32
    %c0_i32_3 = arith.constant 0 : i32
    return %arg0, %c0_i32, %c0_i32_0, %c0_i32_1, %c0_i32_2 : i32, i32, i32, i32, i32
  }
  func.func @transform_1(%arg0: i32) -> (i32, i32, i32, i32) {
    %c0_i32 = arith.constant 0 : i32
    %c0_i32_0 = arith.constant 0 : i32
    %c0_i32_1 = arith.constant 0 : i32
    %c0_i32_2 = arith.constant 0 : i32
    %c0_i32_3 = arith.constant 0 : i32
    return %c0_i32, %c0_i32_0, %c0_i32_1, %c0_i32_2 : i32, i32, i32, i32
  }
  func.func @transform_2(%arg0: i32) -> (i32, i32) {
    %c0_i32 = arith.constant 0 : i32
    %c0_i32_0 = arith.constant 0 : i32
    %c0_i32_1 = arith.constant 0 : i32
    return %c0_i32, %c0_i32_0 : i32, i32
  }
  func.func @transform_3(%arg0: i32) -> (i32, i32, i32, i32) {
    %c0_i32 = arith.constant 0 : i32
    %c0_i32_0 = arith.constant 0 : i32
    %c0_i32_1 = arith.constant 0 : i32
    %c0_i32_2 = arith.constant 0 : i32
    return %arg0, %c0_i32, %c0_i32_0, %c0_i32_1 : i32, i32, i32, i32
  }
}

module attributes {stable_mosaic.version = 11 : i64} {
  func.func @_conv_bn_act_kernel(%arg0: i32, %arg1: memref<1x1x9x9x128xbf16, #tpu.memory_space<vmem>>, %arg2: memref<1x1x128x128xbf16, #tpu.memory_space<vmem>>, %arg3: memref<1x128xf32, #tpu.memory_space<vmem>>, %arg4: memref<1x8x8x128xbf16, #tpu.memory_space<vmem>>) attributes {dimension_semantics = [#tpu.dimension_semantics<parallel>], iteration_bounds = array<i64: 2>, scalar_prefetch = 0 : i64, scratch_operands = 0 : i64, tpu.core_type = #tpu.core_type<tc>, window_params = [{transform_indices = @transform_0, window_bounds = array<i64: 1, 1, 9, 9, 128>}, {pipeline_mode = #tpu.pipeline_mode<synchronous>, transform_indices = @transform_1, window_bounds = array<i64: 1, 1, 128, 128>}, {pipeline_mode = #tpu.pipeline_mode<synchronous>, transform_indices = @transform_2, window_bounds = array<i64: 1, 128>}, {transform_indices = @transform_3, window_bounds = array<i64: 1, 8, 8, 128>}]} {
    %c0 = arith.constant 0 : index
    %c0_0 = arith.constant 0 : index
    %c0_1 = arith.constant 0 : index
    %c0_2 = arith.constant 0 : index
    %c0_3 = arith.constant 0 : index
    %0 = vector.load %arg1[%c0, %c0_0, %c0_1, %c0_2, %c0_3] : memref<1x1x9x9x128xbf16, #tpu.memory_space<vmem>>, vector<1x1x8x8x128xbf16>
    %1 = vector.shape_cast %0 : vector<1x1x8x8x128xbf16> to vector<8x8x128xbf16>
    %2 = vector.shape_cast %1 : vector<8x8x128xbf16> to vector<64x128xbf16>
    %c0_4 = arith.constant 0 : index
    %c0_5 = arith.constant 0 : index
    %c0_6 = arith.constant 0 : index
    %c0_7 = arith.constant 0 : index
    %3 = vector.load %arg2[%c0_4, %c0_5, %c0_6, %c0_7] : memref<1x1x128x128xbf16, #tpu.memory_space<vmem>>, vector<1x1x128x128xbf16>
    %4 = vector.shape_cast %3 : vector<1x1x128x128xbf16> to vector<128x128xbf16>
    %cst = arith.constant dense<0.000000e+00> : vector<64x128xf32>
    %5 = tpu.matmul %2, %4, %cst {dimension_numbers = #tpu.dot_dimension_numbers<[1], [0], [0], [1], [0, 0, 1, 1], [], []>} : vector<64x128xbf16>, vector<128x128xbf16>, vector<64x128xf32> -> vector<64x128xf32>
    %c0_8 = arith.constant 0 : index
    %c0_9 = arith.constant 0 : index
    %6 = vector.load %arg3[%c0_8, %c0_9] : memref<1x128xf32, #tpu.memory_space<vmem>>, vector<1x128xf32>
    %7 = vector.broadcast %6 : vector<1x128xf32> to vector<64x128xf32>
    %8 = arith.addf %5, %7 : vector<64x128xf32>
    %9 = vector.shape_cast %8 : vector<64x128xf32> to vector<1x8x8x128xf32>
    %10 = arith.truncf %9 : vector<1x8x8x128xf32> to vector<1x8x8x128xbf16>
    %c0_10 = arith.constant 0 : index
    %c0_11 = arith.constant 0 : index
    %c0_12 = arith.constant 0 : index
    %c0_13 = arith.constant 0 : index
    %11 = vector.load %arg4[%c0_10, %c0_11, %c0_12, %c0_13] : memref<1x8x8x128xbf16, #tpu.memory_space<vmem>>, vector<1x8x8x128xbf16>
    tpu.vector_store %arg4[%c0_10, %c0_11, %c0_12, %c0_13], %10 {strides = array<i32>} : memref<1x8x8x128xbf16, #tpu.memory_space<vmem>>, vector<1x8x8x128xbf16>,
    return
  }
  func.func @transform_0(%arg0: i32) -> (i32, i32, i32, i32, i32) {
    %c3_i32 = arith.constant 3 : i32
    %c0_i32 = arith.constant 0 : i32
    %c0_i32_0 = arith.constant 0 : i32
    %c0_i32_1 = arith.constant 0 : i32
    %c0_i32_2 = arith.constant 0 : i32
    return %arg0, %c3_i32, %c0_i32, %c0_i32_0, %c0_i32_1 : i32, i32, i32, i32, i32
  }
  func.func @transform_1(%arg0: i32) -> (i32, i32, i32, i32) {
    %c0_i32 = arith.constant 0 : i32
    %c0_i32_0 = arith.constant 0 : i32
    %c0_i32_1 = arith.constant 0 : i32
    %c0_i32_2 = arith.constant 0 : i32
    %c0_i32_3 = arith.constant 0 : i32
    return %c0_i32, %c0_i32_0, %c0_i32_1, %c0_i32_2 : i32, i32, i32, i32
  }
  func.func @transform_2(%arg0: i32) -> (i32, i32) {
    %c0_i32 = arith.constant 0 : i32
    %c0_i32_0 = arith.constant 0 : i32
    %c0_i32_1 = arith.constant 0 : i32
    return %c0_i32, %c0_i32_0 : i32, i32
  }
  func.func @transform_3(%arg0: i32) -> (i32, i32, i32, i32) {
    %c0_i32 = arith.constant 0 : i32
    %c0_i32_0 = arith.constant 0 : i32
    %c0_i32_1 = arith.constant 0 : i32
    %c0_i32_2 = arith.constant 0 : i32
    return %arg0, %c0_i32, %c0_i32_0, %c0_i32_1 : i32, i32, i32, i32
  }
}

module attributes {stable_mosaic.version = 11 : i64} {
  func.func @_conv_bn_act_kernel(%arg0: i32, %arg1: memref<1x1x10x10x128xbf16, #tpu.memory_space<vmem>>, %arg2: memref<3x3x128x128xbf16, #tpu.memory_space<vmem>>, %arg3: memref<1x128xf32, #tpu.memory_space<vmem>>, %arg4: memref<1x8x8x128xbf16, #tpu.memory_space<vmem>>, %arg5: memref<1x8x8x128xf32, #tpu.memory_space<vmem>>) attributes {dimension_semantics = [#tpu.dimension_semantics<parallel>], iteration_bounds = array<i64: 2>, scalar_prefetch = 0 : i64, scratch_operands = 0 : i64, tpu.core_type = #tpu.core_type<tc>, window_params = [{transform_indices = @transform_0, window_bounds = array<i64: 1, 1, 10, 10, 128>}, {pipeline_mode = #tpu.pipeline_mode<synchronous>, transform_indices = @transform_1, window_bounds = array<i64: 3, 3, 128, 128>}, {pipeline_mode = #tpu.pipeline_mode<synchronous>, transform_indices = @transform_2, window_bounds = array<i64: 1, 128>}, {transform_indices = @transform_3, window_bounds = array<i64: 1, 8, 8, 128>}, {transform_indices = @transform_4, window_bounds = array<i64: 1, 8, 8, 128>}]} {
    %c0 = arith.constant 0 : index
    %c0_0 = arith.constant 0 : index
    %c0_1 = arith.constant 0 : index
    %c0_2 = arith.constant 0 : index
    %c0_3 = arith.constant 0 : index
    %0 = vector.load %arg1[%c0, %c0_0, %c0_1, %c0_2, %c0_3] : memref<1x1x10x10x128xbf16, #tpu.memory_space<vmem>>, vector<1x1x8x8x128xbf16>
    %1 = vector.shape_cast %0 : vector<1x1x8x8x128xbf16> to vector<8x8x128xbf16>
    %2 = vector.shape_cast %1 : vector<8x8x128xbf16> to vector<64x128xbf16>
    %c0_4 = arith.constant 0 : index
    %c0_5 = arith.constant 0 : index
    %c0_6 = arith.constant 0 : index
    %c0_7 = arith.constant 0 : index
    %3 = vector.load %arg2[%c0_4, %c0_5, %c0_6, %c0_7] : memref<3x3x128x128xbf16, #tpu.memory_space<vmem>>, vector<1x1x128x128xbf16>
    %4 = vector.shape_cast %3 : vector<1x1x128x128xbf16> to vector<128x128xbf16>
    %cst = arith.constant dense<0.000000e+00> : vector<64x128xf32>
    %5 = tpu.matmul %2, %4, %cst {dimension_numbers = #tpu.dot_dimension_numbers<[1], [0], [0], [1], [0, 0, 1, 1], [], []>} : vector<64x128xbf16>, vector<128x128xbf16>, vector<64x128xf32> -> vector<64x128xf32>
    %c0_8 = arith.constant 0 : index
    %c0_9 = arith.constant 0 : index
    %c0_10 = arith.constant 0 : index
    %c1 = arith.constant 1 : index
    %c0_11 = arith.constant 0 : index
    %6 = vector.load %arg1[%c0_8, %c0_9, %c0_10, %c1, %c0_11] : memref<1x1x10x10x128xbf16, #tpu.memory_space<vmem>>, vector<1x1x8x8x128xbf16>
    %7 = vector.shape_cast %6 : vector<1x1x8x8x128xbf16> to vector<8x8x128xbf16>
    %8 = vector.shape_cast %7 : vector<8x8x128xbf16> to vector<64x128xbf16>
    %c0_12 = arith.constant 0 : index
    %c1_13 = arith.constant 1 : index
    %c0_14 = arith.constant 0 : index
    %c0_15 = arith.constant 0 : index
    %9 = vector.load %arg2[%c0_12, %c1_13, %c0_14, %c0_15] : memref<3x3x128x128xbf16, #tpu.memory_space<vmem>>, vector<1x1x128x128xbf16>
    %10 = vector.shape_cast %9 : vector<1x1x128x128xbf16> to vector<128x128xbf16>
    %cst_16 = arith.constant dense<0.000000e+00> : vector<64x128xf32>
    %11 = tpu.matmul %8, %10, %cst_16 {dimension_numbers = #tpu.dot_dimension_numbers<[1], [0], [0], [1], [0, 0, 1, 1], [], []>} : vector<64x128xbf16>, vector<128x128xbf16>, vector<64x128xf32> -> vector<64x128xf32>
    %12 = arith.addf %5, %11 : vector<64x128xf32>
    %c0_17 = arith.constant 0 : index
    %c0_18 = arith.constant 0 : index
    %c0_19 = arith.constant 0 : index
    %c2 = arith.constant 2 : index
    %c0_20 = arith.constant 0 : index
    %13 = vector.load %arg1[%c0_17, %c0_18, %c0_19, %c2, %c0_20] : memref<1x1x10x10x128xbf16, #tpu.memory_space<vmem>>, vector<1x1x8x8x128xbf16>
    %14 = vector.shape_cast %13 : vector<1x1x8x8x128xbf16> to vector<8x8x128xbf16>
    %15 = vector.shape_cast %14 : vector<8x8x128xbf16> to vector<64x128xbf16>
    %c0_21 = arith.constant 0 : index
    %c2_22 = arith.constant 2 : index
    %c0_23 = arith.constant 0 : index
    %c0_24 = arith.constant 0 : index
    %16 = vector.load %arg2[%c0_21, %c2_22, %c0_23, %c0_24] : memref<3x3x128x128xbf16, #tpu.memory_space<vmem>>, vector<1x1x128x128xbf16>
    %17 = vector.shape_cast %16 : vector<1x1x128x128xbf16> to vector<128x128xbf16>
    %cst_25 = arith.constant dense<0.000000e+00> : vector<64x128xf32>
    %18 = tpu.matmul %15, %17, %cst_25 {dimension_numbers = #tpu.dot_dimension_numbers<[1], [0], [0], [1], [0, 0, 1, 1], [], []>} : vector<64x128xbf16>, vector<128x128xbf16>, vector<64x128xf32> -> vector<64x128xf32>
    %19 = arith.addf %12, %18 : vector<64x128xf32>
    %c0_26 = arith.constant 0 : index
    %c0_27 = arith.constant 0 : index
    %c1_28 = arith.constant 1 : index
    %c0_29 = arith.constant 0 : index
    %c0_30 = arith.constant 0 : index
    %20 = vector.load %arg1[%c0_26, %c0_27, %c1_28, %c0_29, %c0_30] : memref<1x1x10x10x128xbf16, #tpu.memory_space<vmem>>, vector<1x1x8x8x128xbf16>
    %21 = vector.shape_cast %20 : vector<1x1x8x8x128xbf16> to vector<8x8x128xbf16>
    %22 = vector.shape_cast %21 : vector<8x8x128xbf16> to vector<64x128xbf16>
    %c1_31 = arith.constant 1 : index
    %c0_32 = arith.constant 0 : index
    %c0_33 = arith.constant 0 : index
    %c0_34 = arith.constant 0 : index
    %23 = vector.load %arg2[%c1_31, %c0_32, %c0_33, %c0_34] : memref<3x3x128x128xbf16, #tpu.memory_space<vmem>>, vector<1x1x128x128xbf16>
    %24 = vector.shape_cast %23 : vector<1x1x128x128xbf16> to vector<128x128xbf16>
    %cst_35 = arith.constant dense<0.000000e+00> : vector<64x128xf32>
    %25 = tpu.matmul %22, %24, %cst_35 {dimension_numbers = #tpu.dot_dimension_numbers<[1], [0], [0], [1], [0, 0, 1, 1], [], []>} : vector<64x128xbf16>, vector<128x128xbf16>, vector<64x128xf32> -> vector<64x128xf32>
    %26 = arith.addf %19, %25 : vector<64x128xf32>
    %c0_36 = arith.constant 0 : index
    %c0_37 = arith.constant 0 : index
    %c1_38 = arith.constant 1 : index
    %c1_39 = arith.constant 1 : index
    %c0_40 = arith.constant 0 : index
    %27 = vector.load %arg1[%c0_36, %c0_37, %c1_38, %c1_39, %c0_40] : memref<1x1x10x10x128xbf16, #tpu.memory_space<vmem>>, vector<1x1x8x8x128xbf16>
    %28 = vector.shape_cast %27 : vector<1x1x8x8x128xbf16> to vector<8x8x128xbf16>
    %29 = vector.shape_cast %28 : vector<8x8x128xbf16> to vector<64x128xbf16>
    %c1_41 = arith.constant 1 : index
    %c1_42 = arith.constant 1 : index
    %c0_43 = arith.constant 0 : index
    %c0_44 = arith.constant 0 : index
    %30 = vector.load %arg2[%c1_41, %c1_42, %c0_43, %c0_44] : memref<3x3x128x128xbf16, #tpu.memory_space<vmem>>, vector<1x1x128x128xbf16>
    %31 = vector.shape_cast %30 : vector<1x1x128x128xbf16> to vector<128x128xbf16>
    %cst_45 = arith.constant dense<0.000000e+00> : vector<64x128xf32>
    %32 = tpu.matmul %29, %31, %cst_45 {dimension_numbers = #tpu.dot_dimension_numbers<[1], [0], [0], [1], [0, 0, 1, 1], [], []>} : vector<64x128xbf16>, vector<128x128xbf16>, vector<64x128xf32> -> vector<64x128xf32>
    %33 = arith.addf %26, %32 : vector<64x128xf32>
    %c0_46 = arith.constant 0 : index
    %c0_47 = arith.constant 0 : index
    %c1_48 = arith.constant 1 : index
    %c2_49 = arith.constant 2 : index
    %c0_50 = arith.constant 0 : index
    %34 = vector.load %arg1[%c0_46, %c0_47, %c1_48, %c2_49, %c0_50] : memref<1x1x10x10x128xbf16, #tpu.memory_space<vmem>>, vector<1x1x8x8x128xbf16>
    %35 = vector.shape_cast %34 : vector<1x1x8x8x128xbf16> to vector<8x8x128xbf16>
    %36 = vector.shape_cast %35 : vector<8x8x128xbf16> to vector<64x128xbf16>
    %c1_51 = arith.constant 1 : index
    %c2_52 = arith.constant 2 : index
    %c0_53 = arith.constant 0 : index
    %c0_54 = arith.constant 0 : index
    %37 = vector.load %arg2[%c1_51, %c2_52, %c0_53, %c0_54] : memref<3x3x128x128xbf16, #tpu.memory_space<vmem>>, vector<1x1x128x128xbf16>
    %38 = vector.shape_cast %37 : vector<1x1x128x128xbf16> to vector<128x128xbf16>
    %cst_55 = arith.constant dense<0.000000e+00> : vector<64x128xf32>
    %39 = tpu.matmul %36, %38, %cst_55 {dimension_numbers = #tpu.dot_dimension_numbers<[1], [0], [0], [1], [0, 0, 1, 1], [], []>} : vector<64x128xbf16>, vector<128x128xbf16>, vector<64x128xf32> -> vector<64x128xf32>
    %40 = arith.addf %33, %39 : vector<64x128xf32>
    %c0_56 = arith.constant 0 : index
    %c0_57 = arith.constant 0 : index
    %c2_58 = arith.constant 2 : index
    %c0_59 = arith.constant 0 : index
    %c0_60 = arith.constant 0 : index
    %41 = vector.load %arg1[%c0_56, %c0_57, %c2_58, %c0_59, %c0_60] : memref<1x1x10x10x128xbf16, #tpu.memory_space<vmem>>, vector<1x1x8x8x128xbf16>
    %42 = vector.shape_cast %41 : vector<1x1x8x8x128xbf16> to vector<8x8x128xbf16>
    %43 = vector.shape_cast %42 : vector<8x8x128xbf16> to vector<64x128xbf16>
    %c2_61 = arith.constant 2 : index
    %c0_62 = arith.constant 0 : index
    %c0_63 = arith.constant 0 : index
    %c0_64 = arith.constant 0 : index
    %44 = vector.load %arg2[%c2_61, %c0_62, %c0_63, %c0_64] : memref<3x3x128x128xbf16, #tpu.memory_space<vmem>>, vector<1x1x128x128xbf16>
    %45 = vector.shape_cast %44 : vector<1x1x128x128xbf16> to vector<128x128xbf16>
    %cst_65 = arith.constant dense<0.000000e+00> : vector<64x128xf32>
    %46 = tpu.matmul %43, %45, %cst_65 {dimension_numbers = #tpu.dot_dimension_numbers<[1], [0], [0], [1], [0, 0, 1, 1], [], []>} : vector<64x128xbf16>, vector<128x128xbf16>, vector<64x128xf32> -> vector<64x128xf32>
    %47 = arith.addf %40, %46 : vector<64x128xf32>
    %c0_66 = arith.constant 0 : index
    %c0_67 = arith.constant 0 : index
    %c2_68 = arith.constant 2 : index
    %c1_69 = arith.constant 1 : index
    %c0_70 = arith.constant 0 : index
    %48 = vector.load %arg1[%c0_66, %c0_67, %c2_68, %c1_69, %c0_70] : memref<1x1x10x10x128xbf16, #tpu.memory_space<vmem>>, vector<1x1x8x8x128xbf16>
    %49 = vector.shape_cast %48 : vector<1x1x8x8x128xbf16> to vector<8x8x128xbf16>
    %50 = vector.shape_cast %49 : vector<8x8x128xbf16> to vector<64x128xbf16>
    %c2_71 = arith.constant 2 : index
    %c1_72 = arith.constant 1 : index
    %c0_73 = arith.constant 0 : index
    %c0_74 = arith.constant 0 : index
    %51 = vector.load %arg2[%c2_71, %c1_72, %c0_73, %c0_74] : memref<3x3x128x128xbf16, #tpu.memory_space<vmem>>, vector<1x1x128x128xbf16>
    %52 = vector.shape_cast %51 : vector<1x1x128x128xbf16> to vector<128x128xbf16>
    %cst_75 = arith.constant dense<0.000000e+00> : vector<64x128xf32>
    %53 = tpu.matmul %50, %52, %cst_75 {dimension_numbers = #tpu.dot_dimension_numbers<[1], [0], [0], [1], [0, 0, 1, 1], [], []>} : vector<64x128xbf16>, vector<128x128xbf16>, vector<64x128xf32> -> vector<64x128xf32>
    %54 = arith.addf %47, %53 : vector<64x128xf32>
    %c0_76 = arith.constant 0 : index
    %c0_77 = arith.constant 0 : index
    %c2_78 = arith.constant 2 : index
    %c2_79 = arith.constant 2 : index
    %c0_80 = arith.constant 0 : index
    %55 = vector.load %arg1[%c0_76, %c0_77, %c2_78, %c2_79, %c0_80] : memref<1x1x10x10x128xbf16, #tpu.memory_space<vmem>>, vector<1x1x8x8x128xbf16>
    %56 = vector.shape_cast %55 : vector<1x1x8x8x128xbf16> to vector<8x8x128xbf16>
    %57 = vector.shape_cast %56 : vector<8x8x128xbf16> to vector<64x128xbf16>
    %c2_81 = arith.constant 2 : index
    %c2_82 = arith.constant 2 : index
    %c0_83 = arith.constant 0 : index
    %c0_84 = arith.constant 0 : index
    %58 = vector.load %arg2[%c2_81, %c2_82, %c0_83, %c0_84] : memref<3x3x128x128xbf16, #tpu.memory_space<vmem>>, vector<1x1x128x128xbf16>
    %59 = vector.shape_cast %58 : vector<1x1x128x128xbf16> to vector<128x128xbf16>
    %cst_85 = arith.constant dense<0.000000e+00> : vector<64x128xf32>
    %60 = tpu.matmul %57, %59, %cst_85 {dimension_numbers = #tpu.dot_dimension_numbers<[1], [0], [0], [1], [0, 0, 1, 1], [], []>} : vector<64x128xbf16>, vector<128x128xbf16>, vector<64x128xf32> -> vector<64x128xf32>
    %61 = arith.addf %54, %60 : vector<64x128xf32>
    %c0_86 = arith.constant 0 : index
    %c0_87 = arith.constant 0 : index
    %62 = vector.load %arg3[%c0_86, %c0_87] : memref<1x128xf32, #tpu.memory_space<vmem>>, vector<1x128xf32>
    %63 = vector.broadcast %62 : vector<1x128xf32> to vector<64x128xf32>
    %64 = arith.addf %61, %63 : vector<64x128xf32>
    %cst_88 = arith.constant 0.000000e+00 : f32
    %65 = vector.broadcast %cst_88 : f32 to vector<64x128xf32>
    %66 = arith.cmpf oge, %64, %65 : vector<64x128xf32>
    %cst_89 = arith.constant 1.000000e-01 : f32
    %67 = vector.broadcast %cst_89 : f32 to vector<64x128xf32>
    %68 = arith.mulf %67, %64 : vector<64x128xf32>
    %69 = arith.select %66, %64, %68 : vector<64x128xi1>, vector<64x128xf32>
    %c0_90 = arith.constant 0 : index
    %c0_91 = arith.constant 0 : index
    %c0_92 = arith.constant 0 : index
    %c0_93 = arith.constant 0 : index
    %70 = vector.load %arg4[%c0_90, %c0_91, %c0_92, %c0_93] : memref<1x8x8x128xbf16, #tpu.memory_space<vmem>>, vector<1x8x8x128xbf16>
    %71 = vector.shape_cast %70 : vector<1x8x8x128xbf16> to vector<8x8x128xbf16>
    %72 = vector.shape_cast %71 : vector<8x8x128xbf16> to vector<64x128xbf16>
    %73 = arith.extf %72 : vector<64x128xbf16> to vector<64x128xf32>
    %74 = arith.addf %69, %73 : vector<64x128xf32>
    %cst_94 = arith.constant 0.000000e+00 : f32
    %75 = vector.broadcast %cst_94 : f32 to vector<64x128xf32>
    %76 = arith.cmpf oge, %74, %75 : vector<64x128xf32>
    %cst_95 = arith.constant 1.000000e-01 : f32
    %77 = vector.broadcast %cst_95 : f32 to vector<64x128xf32>
    %78 = arith.mulf %77, %74 : vector<64x128xf32>
    %79 = arith.select %76, %74, %78 : vector<64x128xi1>, vector<64x128xf32>
    %80 = vector.shape_cast %79 : vector<64x128xf32> to vector<1x8x8x128xf32>
    %c0_96 = arith.constant 0 : index
    %c0_97 = arith.constant 0 : index
    %c0_98 = arith.constant 0 : index
    %c0_99 = arith.constant 0 : index
    %81 = vector.load %arg5[%c0_96, %c0_97, %c0_98, %c0_99] : memref<1x8x8x128xf32, #tpu.memory_space<vmem>>, vector<1x8x8x128xf32>
    tpu.vector_store %arg5[%c0_96, %c0_97, %c0_98, %c0_99], %80 {strides = array<i32>} : memref<1x8x8x128xf32, #tpu.memory_space<vmem>>, vector<1x8x8x128xf32>,
    return
  }
  func.func @transform_0(%arg0: i32) -> (i32, i32, i32, i32, i32) {
    %c0_i32 = arith.constant 0 : i32
    %c0_i32_0 = arith.constant 0 : i32
    %c0_i32_1 = arith.constant 0 : i32
    %c0_i32_2 = arith.constant 0 : i32
    %c0_i32_3 = arith.constant 0 : i32
    return %arg0, %c0_i32, %c0_i32_0, %c0_i32_1, %c0_i32_2 : i32, i32, i32, i32, i32
  }
  func.func @transform_1(%arg0: i32) -> (i32, i32, i32, i32) {
    %c0_i32 = arith.constant 0 : i32
    %c0_i32_0 = arith.constant 0 : i32
    %c0_i32_1 = arith.constant 0 : i32
    %c0_i32_2 = arith.constant 0 : i32
    %c0_i32_3 = arith.constant 0 : i32
    return %c0_i32, %c0_i32_0, %c0_i32_1, %c0_i32_2 : i32, i32, i32, i32
  }
  func.func @transform_2(%arg0: i32) -> (i32, i32) {
    %c0_i32 = arith.constant 0 : i32
    %c0_i32_0 = arith.constant 0 : i32
    %c0_i32_1 = arith.constant 0 : i32
    return %c0_i32, %c0_i32_0 : i32, i32
  }
  func.func @transform_3(%arg0: i32) -> (i32, i32, i32, i32) {
    %c0_i32 = arith.constant 0 : i32
    %c0_i32_0 = arith.constant 0 : i32
    %c0_i32_1 = arith.constant 0 : i32
    %c0_i32_2 = arith.constant 0 : i32
    return %arg0, %c0_i32, %c0_i32_0, %c0_i32_1 : i32, i32, i32, i32
  }
  func.func @transform_4(%arg0: i32) -> (i32, i32, i32, i32) {
    %c0_i32 = arith.constant 0 : i32
    %c0_i32_0 = arith.constant 0 : i32
    %c0_i32_1 = arith.constant 0 : i32
    %c0_i32_2 = arith.constant 0 : i32
    return %arg0, %c0_i32, %c0_i32_0, %c0_i32_1 : i32, i32, i32, i32
  }
}

</mosaic_0001>

<bundles_post_ra>
// kernel: res_unit_forward.4
= control target key start
LH: loop header
LB: loop body
LE: loop exit
PB: predicated region body
PF: predicated region fallthrough
CT: control target
= control target key end

     0   :  { %s575_s12 = smov 0   ;;  %s629_s0 = inlined_call_operand.vmem [shape: bf16[2,4,9,9,128], index: 0, kind: input, shape index: {}]   ;;  %s630_s1 = inlined_call_operand.vmem [shape: bf16[1,1,128,128], index: 1, kind: input, shape index: {}]   ;;  %s631_s2 = inlined_call_operand.vmem [shape: f32[1,128], index: 2, kind: input, shape index: {}]   ;;  %s632_s3 = inlined_call_operand.vmem [shape: bf16[2,8,8,128], index: 3, kind: output, shape index: {}]  }
   0x1 LB: > { %s420_s13 = sadd.s32 4294967295, %s553_s12   ;;  %p424_p0 = scmp.ge.s32.totalorder %s553_s12, 1  ;;  %s553_s12 = sphi %s575_s12, %s13_s12  }
   0x2   : > { %p138_p1 = scmp.lt.s32.totalorder %s553_s12, 3 }
   0x4   : > { %p139_p2 = pnand %p424_p0, %p138_p1 }
   0x5   : > { %v535_v0 = vld [vmem:[%s630_s1] sm:$0xff] (!%p139_p2)   ;;  %p163_p3 = scmp.lt.s32.totalorder (!%p139_p2), %s420_s13, 1  ;;  %v536_v1 = vld [vmem:[%s630_s1 + $0x8] sm:$0xff] (!%p139_p2)   ;;  %v537_v2 = vld [vmem:[%s630_s1 + $0x10] sm:$0xff] (!%p139_p2)  }
   0x6   : > { %142 = sbr.rel (%p139_p2) target bundleno = 259 (0x103), region = 32  ;;  %487 = vmatprep.subr.bf16.mxu0 (!%p139_p2), %v535_v0  ;;  %511 = vmatprep.subr.bf16.mxu1 (!%p139_p2), %v535_v0  ;;  %v538_v3 = vld [vmem:[%s630_s1 + $0x18] sm:$0xff] (!%p139_p2)   ;;  %v539_v6 = vld [vmem:[%s630_s1 + $0x20] sm:$0xff] (!%p139_p2)   ;;  %v540_v7 = vld [vmem:[%s630_s1 + $0x28] sm:$0xff] (!%p139_p2)  }
   0x7   : > { %488 = vmatpush3.bf16.msra.mxu0 (!%p139_p2), %v535_v0  ;;  %519 = vmatpush3.bf16.msra.mxu1 (!%p139_p2), %v535_v0  ;;  %v541_v8 = vld [vmem:[%s630_s1 + $0x30] sm:$0xff] (!%p139_p2)   ;;  %v542_v9 = vld [vmem:[%s630_s1 + $0x38] sm:$0xff] (!%p139_p2)   ;;  %v436_v13 = vld [vmem:[%s631_s2] ss:$0 sm:$0xff] (!%p139_p2) }
   0x8   : > { %489 = vmatprep.subr.bf16.mxu0 (!%p139_p2), %v536_v1  ;;  %512 = vmatprep.subr.bf16.mxu1 (!%p139_p2), %v536_v1 }
   0xb   : > { %490 = vmatpush3.bf16.msra.mxu0 (!%p139_p2), %v536_v1  ;;  %520 = vmatpush3.bf16.msra.mxu1 (!%p139_p2), %v536_v1 }
   0xc   : > { %491 = vmatprep.subr.bf16.mxu0 (!%p139_p2), %v537_v2  ;;  %513 = vmatprep.subr.bf16.mxu1 (!%p139_p2), %v537_v2 }
   0xd   : > { %s634_s13 = smov (!%p163_p3, %s420_s13), 1 }
   0xe   : > { %s425_s20 = smul.u32 288, %s634_s13  ;;  %s451_s9 = sshll.u32 %s634_s13, 5 }
   0xf   : > { %492 = vmatpush3.bf16.msra.mxu0 %v537_v2  ;;  %521 = vmatpush3.bf16.msra.mxu1 %v537_v2  ;;  %s173_s14 = scalar_lea.vmem %s632_s3, %s451_s9 }
  0x10   : > { %s598_s23 = scalar_lea.vmem %s629_s0, %s425_s20  ;;  %493 = vmatprep.subr.bf16.mxu0 %v538_v3  ;;  %514 = vmatprep.subr.bf16.mxu1 %v538_v3 }
  0x11   : > { %v543_v4 = vld [vmem:[%s598_s23 + $0xd8] ss:$8 sps:$4 sm:$0xff]   ;;  %v545_v10 = vld [vmem:[%s598_s23 + $0xe8] ss:$8 sps:$4 sm:$0xff]  }
  0x12   : > { %v544_v5 = vld [vmem:[%s598_s23 + $0xf8] ss:$8 sps:$4 sm:$0xff]   ;;  %503 = vmatprep.mubr.bf16.mxu0 %v543_v4  ;;  %v546_v11 = vld [vmem:[%s598_s23 + $0x108] ss:$8 sps:$4 sm:$0xff]  }
  0x13   : > { %507 = vmatprep.mubr.bf16.mxu1 %v544_v5  ;;  %494 = vmatpush3.bf16.msra.mxu0 %v538_v3 }
  0x14   : > { %522 = vmatpush3.bf16.msra.mxu1 %v538_v3  ;;  %495 = vmatprep.subr.bf16.mxu0 %v539_v6 }
  0x15   : > { %515 = vmatprep.subr.bf16.mxu1 %v539_v6 }
  0x17   : > { %496 = vmatpush3.bf16.msra.mxu0 %v539_v6 }
  0x18   : > { %523 = vmatpush3.bf16.msra.mxu1 %v539_v6  ;;  %497 = vmatprep.subr.bf16.mxu0 %v540_v7 }
  0x19   : > { %516 = vmatprep.subr.bf16.mxu1 %v540_v7 }
  0x1b   : > { %498 = vmatpush3.bf16.msra.mxu0 %v540_v7 }
  0x1c   : > { %524 = vmatpush3.bf16.msra.mxu1 %v540_v7  ;;  %499 = vmatprep.subr.bf16.mxu0 %v541_v8 }
  0x1d   : > { %517 = vmatprep.subr.bf16.mxu1 %v541_v8 }
  0x1f   : > { %500 = vmatpush3.bf16.msra.mxu0 %v541_v8 }
  0x20   : > { %525 = vmatpush3.bf16.msra.mxu1 %v541_v8  ;;  %501 = vmatprep.subr.bf16.mxu0 %v542_v9 }
  0x21   : > { %518 = vmatprep.subr.bf16.mxu1 %v542_v9 }
  0x23   : > { %502 = vmatpush3.bf16.msra.mxu0 %v542_v9 }
  0x24   : > { %526 = vmatpush3.bf16.msra.mxu1 %v542_v9 }
  0x26   : > { %504 = vmatmul.mubr.bf16.vlgmr.msra.gmra.mrb[0].mxu0 %v545_v10 }
  0x27   : > { %508 = vmatmul.mubr.bf16.vlgmr.msra.gmra.mrb[0].mxu1 %v546_v11 }
  0xf9   : > { %v505_v12 = vpop.f32.mrb[0].mxu0 }
  0xfa   : > { %v509_v14 = vpop.f32.mrb[0].mxu1  ;;  %v312_v15 = vpop.f32.mrb[1].mxu0  ;;  %v321_v19 = vadd.f32 %v505_v12, %v436_v13 }
  0xfb   : > { %v328_v16 = vpop.f32.mrb[1].mxu1  ;;  %v506_v17 = vpop.f32.mrb[2].mxu0  ;;  %v337_v20 = vadd.f32 %v509_v14, %v436_v13  ;;  %v313_v25 = vadd.f32 %v436_v13, %v312_v15 }
  0xfc   : > { %v510_v18 = vpop.f32.mrb[2].mxu1  ;;  %v324_v21 = vadd.f32 %v506_v17, %v436_v13  ;;  %v315_v23 = vpop.f32.mrb[3].mxu0  ;;  %v329_v26 = vadd.f32 %v436_v13, %v328_v16 }
  0xfd   : > { %v340_v22 = vadd.f32 %v510_v18, %v436_v13  ;;  %v331_v24 = vpop.f32.mrb[3].mxu1  ;;  %v316_v27 = vadd.f32 %v436_v13, %v315_v23 }
  0xfe   : > { %v332_v28 = vadd.f32 %v436_v13, %v331_v24  ;;  %v460_v29 = vpack.c.bf16 %v324_v21, %v321_v19 }
  0xff   : > { %v470_v30 = vpack.c.bf16 %v340_v22, %v337_v20  ;;  %v455_v31 = vpack.c.bf16 %v316_v27, %v313_v25 }
 0x100   : > { %v465_v32 = vpack.c.bf16 %v332_v28, %v329_v26  ;;  %472 = vst [vmem:[%s173_s14 + $0x8] sm:$0xff] %v460_v29  }
 0x101   : > { %474 = vst [vmem:[%s173_s14 + $0x18] sm:$0xff] %v470_v30   ;;  %456 = vst [vmem:[%s173_s14] sm:$0xff] %v455_v31  }
 0x102   : > { %473 = vst [vmem:[%s173_s14 + $0x10] sm:$0xff] %v465_v32  }
 0x103 PF: > { %s13_s12 = sadd.s32 1, %s553_s12  }
 0x104   : > { %p10_p4 = scmp.ge.s32.totalorder %s13_s12, 4  }
 0x106   :  { %12 = sbr.rel (!%p10_p4) target bundleno = 1 (0x1), region = 62 }

// kernel: res_unit_forward.3
= control target key start
LH: loop header
LB: loop body
LE: loop exit
PB: predicated region body
PF: predicated region fallthrough
CT: control target
= control target key end

     0   :  { %s3019_s12 = smov 0   ;;  %s3388_s0 = inlined_call_operand.vmem [shape: bf16[2,4,9,9,128], index: 0, kind: input, shape index: {}]   ;;  %s3389_s1 = inlined_call_operand.vmem [shape: bf16[3,3,128,128], index: 1, kind: input, shape index: {}]   ;;  %s3390_s2 = inlined_call_operand.vmem [shape: f32[1,128], index: 2, kind: input, shape index: {}]   ;;  %s3391_s3 = inlined_call_operand.vmem [shape: bf16[2,8,8,128], index: 3, kind: output, shape index: {}]  }
   0x1 LB: > { %s2139_s13 = sadd.s32 4294967295, %s2997_s12   ;;  %p2143_p0 = scmp.ge.s32.totalorder %s2997_s12, 1  ;;  %s2997_s12 = sphi %s3019_s12, %s13_s12  }
   0x2   : > { %p137_p1 = scmp.lt.s32.totalorder %s2997_s12, 3 }
   0x4   : > { %p138_p2 = pnand %p2143_p0, %p137_p1 }
   0x5   : > { %v2895_v0 = vld [vmem:[%s3389_s1 + $0x40] sm:$0xff] (!%p138_p2)   ;;  %p161_p3 = scmp.lt.s32.totalorder (!%p138_p2), %s2139_s13, 1  ;;  %v2897_v2 = vld [vmem:[%s3389_s1 + $0x48] sm:$0xff] (!%p138_p2)   ;;  %v2899_v4 = vld [vmem:[%s3389_s1 + $0x50] sm:$0xff] (!%p138_p2)   ;;  %vm512_vm0 = vsmask.f32 (!%p138_p2), 3328 }
   0x6   : > { %141 = sbr.rel (%p138_p2) target bundleno = 395 (0x18b), region = 32  ;;  %v2896_v1 = vld [vmem:[%s3389_s1 + $0x100] sm:$0xff] (!%p138_p2)   ;;  %2590 = vmatprep.subr.bf16.mxu1 (!%p138_p2), %v2895_v0  ;;  %v2898_v3 = vld [vmem:[%s3389_s1 + $0x108] sm:$0xff] (!%p138_p2)   ;;  %v2900_v5 = vld [vmem:[%s3389_s1 + $0x110] sm:$0xff] (!%p138_p2)   ;;  %vm513_vm1 = vsmask.f32 (!%p138_p2), 7440 }
   0x7   : > { %2686 = vmatprep.subr.bf16.mxu0 (!%p138_p2), %v2896_v1  ;;  %2591 = vmatpush3.bf16.msra.mxu1 (!%p138_p2), %v2895_v0  ;;  %v2901_v6 = vld [vmem:[%s3389_s1 + $0x58] sm:$0xff] (!%p138_p2)   ;;  %v2903_v8 = vld [vmem:[%s3389_s1 + $0x60] sm:$0xff] (!%p138_p2)   ;;  %v2905_v10 = vld [vmem:[%s3389_s1 + $0x68] sm:$0xff] (!%p138_p2)  }
   0x8   : > { %2687 = vmatpush3.bf16.msra.mxu0 (!%p138_p2), %v2896_v1  ;;  %2592 = vmatprep.subr.bf16.mxu1 (!%p138_p2), %v2897_v2  ;;  %v2902_v7 = vld [vmem:[%s3389_s1 + $0x118] sm:$0xff] (!%p138_p2)   ;;  %v2904_v9 = vld [vmem:[%s3389_s1 + $0x120] sm:$0xff] (!%p138_p2)   ;;  %v2906_v12 = vld [vmem:[%s3389_s1 + $0x128] sm:$0xff] (!%p138_p2)  }
   0x9   : > { %2688 = vmatprep.subr.bf16.mxu0 (!%p138_p2), %v2898_v3  ;;  %v2907_v14 = vld [vmem:[%s3389_s1 + $0x70] sm:$0xff] (!%p138_p2)   ;;  %v2909_v16 = vld [vmem:[%s3389_s1 + $0x78] sm:$0xff] (!%p138_p2)   ;;  %v2912_v18 = vld [vmem:[%s3389_s1] sm:$0xff] (!%p138_p2)  }
   0xa   : > { %v2908_v15 = vld [vmem:[%s3389_s1 + $0x130] sm:$0xff] (!%p138_p2)   ;;  %v2910_v17 = vld [vmem:[%s3389_s1 + $0x138] sm:$0xff] (!%p138_p2)   ;;  %v2914_v19 = vld [vmem:[%s3389_s1 + $0x140] sm:$0xff] (!%p138_p2)  }
   0xb   : > { %2593 = vmatpush3.bf16.msra.mxu1 (!%p138_p2), %v2897_v2  ;;  %v2917_v22 = vld [vmem:[%s3389_s1 + $0x8] sm:$0xff] (!%p138_p2)   ;;  %v2919_v26 = vld [vmem:[%s3389_s1 + $0x10] sm:$0xff] (!%p138_p2)   ;;  %v2921_v28 = vld [vmem:[%s3389_s1 + $0x18] sm:$0xff] (!%p138_p2)  }
   0xc   : > { %2689 = vmatpush3.bf16.msra.mxu0 (!%p138_p2), %v2898_v3  ;;  %2594 = vmatprep.subr.bf16.mxu1 (!%p138_p2), %v2899_v4  ;;  %v2918_v23 = vld [vmem:[%s3389_s1 + $0x148] sm:$0xff] (!%p138_p2)   ;;  %v2920_v27 = vld [vmem:[%s3389_s1 + $0x150] sm:$0xff] (!%p138_p2)   ;;  %v2922_v31 = vld [vmem:[%s3389_s1 + $0x158] sm:$0xff] (!%p138_p2)  }
   0xd   : > { %s3395_s13 = smov (!%p161_p3, %s2139_s13), 1  ;;  %2690 = vmatprep.subr.bf16.mxu0 %v2900_v5  ;;  %v2923_v38 = vld [vmem:[%s3389_s1 + $0x20] sm:$0xff]   ;;  %v2925_v47 = vld [vmem:[%s3389_s1 + $0x28] sm:$0xff]   ;;  %vm3134_vm2 = vmor %vm512_vm0, %vm513_vm1 }
   0xe   : > { %s2886_s30 = smul.u32 288, %s3395_s13  ;;  %v2924_v43 = vld [vmem:[%s3389_s1 + $0x160] sm:$0xff]   ;;  %v2926_v50 = vld [vmem:[%s3389_s1 + $0x168] sm:$0xff]   ;;  %v2928_v2 = vld [vmem:[%s3389_s1 + $0x30] sm:$0xff]   ;;  %s2458_s18 = sshll.u32 %s3395_s13, 5 }
   0xf   : > { %2595 = vmatpush3.bf16.msra.mxu1 %v2899_v4  ;;  %s170_s21 = scalar_lea.vmem %s3391_s3, %s2458_s18 }
  0x10   : > { %2691 = vmatpush3.bf16.msra.mxu0 %v2900_v5  ;;  %2596 = vmatprep.subr.bf16.mxu1 %v2901_v6  ;;  %s3063_s10 = scalar_lea.vmem %s3388_s0, %s2886_s30 }
  0x11   : > { %2692 = vmatprep.subr.bf16.mxu0 %v2902_v7  ;;  %v2911_v11 = vld [vmem:[%s3063_s10 + $0x48] ss:$8 sps:$4 sm:$0xff]   ;;  %v2913_v13 = vld [vmem:[%s3063_s10 + $0xd8] ss:$8 sps:$4 sm:$0xff]   ;;  %v2296_v34 = vld [vmem:[%s3063_s10 + $0x94] sm:$0x1] }
  0x12   : > { %2606 = vmatprep.mubr.bf16.mxu1 %v2911_v11  ;;  %2702 = vmatprep.mubr.bf16.mxu0 %v2913_v13  ;;  %v2915_v20 = vld [vmem:[%s3063_s10 + $0x58] ss:$8 sps:$4 sm:$0xff]   ;;  %v2916_v21 = vld [vmem:[%s3063_s10 + $0xe8] ss:$8 sps:$4 sm:$0xff]   ;;  %v2298_v39 = vld [vmem:[%s3063_s10 + $0x9c] sm:$0x1] }
  0x13   : > { %2597 = vmatpush3.bf16.msra.mxu1 %v2901_v6  ;;  %v2927_v24 = vld [vmem:[%s3063_s10 + $0x68] ss:$8 sps:$4 sm:$0xff]   ;;  %v2929_v25 = vld [vmem:[%s3063_s10 + $0xf8] ss:$8 sps:$4 sm:$0xff]   ;;  %v1149_v40 = vshll.u32 %v2296_v34, 16  ;;  %v1163_v46 = vshll.u32 %v2298_v39, 16 }
  0x14   : > { %2693 = vmatpush3.bf16.msra.mxu0 %v2902_v7  ;;  %2598 = vmatprep.subr.bf16.mxu1 %v2903_v8  ;;  %v2931_v29 = vld [vmem:[%s3063_s10 + $0x78] ss:$8 sps:$4 sm:$0xff]   ;;  %v2932_v30 = vld [vmem:[%s3063_s10 + $0x108] ss:$8 sps:$4 sm:$0xff]   ;;  %v2300_v57 = vld [vmem:[%s3063_s10 + $0xa4] sm:$0x1] }
  0x15   : > { %2694 = vmatprep.subr.bf16.mxu0 %v2904_v9  ;;  %v2935_v32 = vld [vmem:[%s3063_s10] ss:$8 sps:$4 sm:$0xff]   ;;  %v2295_v33 = vld [vmem:[%s3063_s10 + $0x90] sm:$0xf]  ;;  %v2297_v35 = vld [vmem:[%s3063_s10 + $0x98] sm:$0xf] }
  0x16   : > { %v1140_v36 = vshrl.u32 %v2295_v33, 16  ;;  %v1143_v37 = vshll.u32 %v2295_v33, 16  ;;  %v1154_v41 = vshrl.u32 %v2297_v35, 16  ;;  %v1157_v42 = vshll.u32 %v2297_v35, 16  ;;  %v2299_v56 = vld [vmem:[%s3063_s10 + $0xa0] sm:$0xf] }
  0x17   : > { %2599 = vmatpush3.bf16.msra.mxu1 %v2903_v8  ;;  %v1151_v52 = vrot.slane %v1149_v40, 5  ;;  %v1165_v55 = vrot.slane %v1163_v46, 5  ;;  %v2301_v59 = vld [vmem:[%s3063_s10 + $0xa8] sm:$0xf]  ;;  %v2302_v60 = vld [vmem:[%s3063_s10 + $0xac] sm:$0x1] }
  0x18   : > { %2695 = vmatpush3.bf16.msra.mxu0 %v2904_v9  ;;  %2600 = vmatprep.subr.bf16.mxu1 %v2905_v10  ;;  %v1142_v44 = vrot.slane %v1140_v36, 4  ;;  %v1145_v45 = vrot.slane %v1143_v37, 5  ;;  %v1156_v48 = vrot.slane %v1154_v41, 4  ;;  %v1159_v49 = vrot.slane %v1157_v42, 5  ;;  %v2930_v6 = vld [vmem:[%s3389_s1 + $0x170] sm:$0xff]  }
  0x19   : > { %2696 = vmatprep.subr.bf16.mxu0 %v2906_v12  ;;  %v1168_v61 = vshrl.u32 %v2299_v56, 16  ;;  %v1171_v63 = vshll.u32 %v2299_v56, 16  ;;  %v1177_v0 = vshll.u32 %v2300_v57, 16  ;;  %v1182_v1 = vshrl.u32 %v2301_v59, 16  ;;  %v2949_v37 = vld [vmem:[%s3063_s10 + $0x20] ss:$8 sps:$4 sm:$0xff]  }
  0x1a   : > { %v1146_v51 = vor.u32 %v1145_v45, %v1142_v44  ;;  %v1160_v54 = vor.u32 %v1159_v49, %v1156_v48  ;;  %v1185_v5 = vshll.u32 %v2301_v59, 16  ;;  %v2952_v48 = vld [vmem:[%s3063_s10 + $0x30] ss:$8 sps:$4 sm:$0xff]   ;;  %v2307_v49 = vld [vmem:[%s3063_s10 + $0xc0] sm:$0xf] }
  0x1b   : > { %2601 = vmatpush3.bf16.msra.mxu1 %v2905_v10  ;;  %v1170_v4 = vrot.slane %v1168_v61, 4  ;;  %v1173_v8 = vrot.slane %v1171_v63, 5  ;;  %v1184_v9 = vrot.slane %v1182_v1, 4  ;;  %v1191_v10 = vshll.u32 %v2302_v60, 16  ;;  %v2943_v59 = vld [vmem:[%s3389_s1 + $0x98] sm:$0xff]  }
  0x1c   : > { %2697 = vmatpush3.bf16.msra.mxu0 %v2906_v12  ;;  %2602 = vmatprep.subr.bf16.mxu1 %v2907_v14  ;;  %v1147_v58 = vrot.slane %v1146_v51, 4  ;;  %v1161_v62 = vrot.slane %v1160_v54, 4  ;;  %v1179_v12 = vrot.slane %v1177_v0, 5  ;;  %v1187_v13 = vrot.slane %v1185_v5, 5  ;;  %v2309_v51 = vld [vmem:[%s3063_s10 + $0xc8] sm:$0xf] }
  0x1d   : > { %2698 = vmatprep.subr.bf16.mxu0 %v2908_v15  ;;  %v1224_v56 = vshrl.u32 %v2307_v49, 16  ;;  %v1227_v57 = vshll.u32 %v2307_v49, 16  ;;  %v1238_v61 = vshrl.u32 %v2309_v51, 16 }
  0x1e   : > { %v1152_v3 = vsel %vm3134_vm2, %v1147_v58, %v1151_v52  ;;  %v1166_v7 = vsel %vm3134_vm2, %v1161_v62, %v1165_v55  ;;  %v2942_v52 = vld [vmem:[%s3389_s1 + $0x190] sm:$0xff]   ;;  %v2310_v55 = vld [vmem:[%s3063_s10 + $0xcc] sm:$0x1]  ;;  %v1241_v62 = vshll.u32 %v2309_v51, 16 }
  0x1f   : > { %2603 = vmatpush3.bf16.msra.mxu1 %v2907_v14  ;;  %v2327_v11 = vcombine.low %v1152_v3, %v1166_v7  ;;  %v2933_v14 = vld [vmem:[%s3389_s1 + $0x38] sm:$0xff]   ;;  %v1247_v63 = vshll.u32 %v2310_v55, 16  ;;  %v1226_v1 = vrot.slane %v1224_v56, 4 }
  0x20   : > { %2699 = vmatpush3.bf16.msra.mxu0 %v2908_v15  ;;  %2604 = vmatprep.subr.bf16.mxu1 %v2909_v16  ;;  %v1174_v15 = vor.u32 %v1173_v8, %v1170_v4  ;;  %v2944_v4 = vld [vmem:[%s3389_s1 + $0x198] sm:$0xff]   ;;  %v1243_v7 = vrot.slane %v1241_v62, 5 }
  0x21   : > { %2700 = vmatprep.subr.bf16.mxu0 %v2910_v17  ;;  %v1249_v8 = vrot.slane %v1247_v63, 5 }
  0x23   : > { %2605 = vmatpush3.bf16.msra.mxu1 %v2909_v16  ;;  %v1188_v16 = vor.u32 %v1187_v13, %v1184_v9  ;;  %v2945_v13 = vld [vmem:[%s3389_s1 + $0xa0] sm:$0xff]  }
  0x24   : > { %2701 = vmatpush3.bf16.msra.mxu0 %v2910_v17  ;;  %2614 = vmatprep.subr.bf16.mxu1 %v2912_v18  ;;  %v1175_v17 = vrot.slane %v1174_v15, 4 }
  0x25   : > { %2710 = vmatprep.subr.bf16.mxu0 %v2914_v19 }
  0x26   : > { %2607 = vmatmul.mubr.bf16.vlgmr.msra.gmra.mrb[0].mxu1 %v2915_v20  ;;  %v1189_v20 = vrot.slane %v1188_v16, 4  ;;  %v498_v16 = vld [vmem:[%s3063_s10 + $0x8] sm:$0xf] }
  0x27   : > { %2615 = vmatpush3.bf16.msra.mxu1 %v2912_v18  ;;  %2703 = vmatmul.mubr.bf16.vlgmr.msra.gmra.mrb[0].mxu0 %v2916_v21  ;;  %v1193_v18 = vrot.slane %v1191_v10, 5  ;;  %v2936_v21 = vld [vmem:[%s3389_s1 + $0x80] sm:$0xff]  }
  0x28   : > { %2711 = vmatpush3.bf16.msra.mxu0 %v2914_v19  ;;  %2616 = vmatprep.subr.bf16.mxu1 %v2917_v22  ;;  %v2934_v19 = vld [vmem:[%s3389_s1 + $0x178] sm:$0xff]  }
  0x29   : > { %2712 = vmatprep.subr.bf16.mxu0 %v2918_v23  ;;  %2610 = vmatprep.mubr.bf16.mxu1 %v2927_v24  ;;  %v2937_v24 = vld [vmem:[%s3389_s1 + $0x180] sm:$0xff]  }
  0x2a   : > { %2706 = vmatprep.mubr.bf16.mxu0 %v2929_v25  ;;  %v2938_v25 = vld [vmem:[%s3063_s10 + $0x10] ss:$8 sps:$4 sm:$0xff]  }
  0x2b   : > { %2617 = vmatpush3.bf16.msra.mxu1 %v2917_v22  ;;  %v1180_v22 = vsel %vm3134_vm2, %v1175_v17, %v1179_v12  ;;  %v497_v12 = vld [vmem:[%s3063_s10 + $0x4] sm:$0x1]  ;;  %v499_v17 = vld [vmem:[%s3063_s10 + $0xc] sm:$0x1] }
  0x2c   : > { %2713 = vmatpush3.bf16.msra.mxu0 %v2918_v23  ;;  %2618 = vmatprep.subr.bf16.mxu1 %v2919_v26  ;;  %v1194_v23 = vsel %vm3134_vm2, %v1189_v20, %v1193_v18 }
  0x2d   : > { %2714 = vmatprep.subr.bf16.mxu0 %v2920_v27 }
  0x2e   : > { %2611 = vmatmul.mubr.bf16.gmra.mrb[4].mxu1 %v2931_v29  ;;  %v2940_v29 = vld [vmem:[%s3389_s1 + $0x188] sm:$0xff]  }
  0x2f   : > { %2619 = vmatpush3.bf16.msra.mxu1 %v2919_v26  ;;  %2707 = vmatmul.mubr.bf16.gmra.mrb[4].mxu0 %v2932_v30  ;;  %v2939_v26 = vld [vmem:[%s3389_s1 + $0x88] sm:$0xff]   ;;  %v2304_v30 = vld [vmem:[%s3063_s10 + $0xb4] sm:$0x1] }
  0x30   : > { %2715 = vmatpush3.bf16.msra.mxu0 %v2920_v27  ;;  %2620 = vmatprep.subr.bf16.mxu1 %v2921_v28  ;;  %v2303_v27 = vld [vmem:[%s3063_s10 + $0xb0] sm:$0xf]  ;;  %v1205_v35 = vshll.u32 %v2304_v30, 16 }
  0x31   : > { %2716 = vmatprep.subr.bf16.mxu0 %v2922_v31  ;;  %2630 = vmatprep.mubr.bf16.mxu1 %v2935_v32  ;;  %v2306_v32 = vld [vmem:[%s3063_s10 + $0xbc] sm:$0x1]  ;;  %v1196_v33 = vshrl.u32 %v2303_v27, 16  ;;  %v1199_v34 = vshll.u32 %v2303_v27, 16  ;;  %v539_v27 = vshll.u32 %v499_v17, 16 }
  0x32   : > { %2726 = vmatprep.mubr.bf16.mxu0 %v2327_v11  ;;  %v1219_v39 = vshll.u32 %v2306_v32, 16  ;;  %v1207_v44 = vrot.slane %v1205_v35, 5  ;;  %v496_v11 = vld [vmem:[%s3063_s10] sm:$0xf]  ;;  %v2947_v32 = vld [vmem:[%s3389_s1 + $0xa8] sm:$0xff]  }
  0x33   : > { %2621 = vmatpush3.bf16.msra.mxu1 %v2921_v28  ;;  %v2328_v28 = vcombine.low %v1180_v22, %v1194_v23  ;;  %v1198_v40 = vrot.slane %v1196_v33, 4  ;;  %v1201_v41 = vrot.slane %v1199_v34, 5  ;;  %v516_v18 = vshrl.u32 %v496_v11, 16  ;;  %v507_v17 = vld [vmem:[%s3063_s10 + $0x2c] sm:$0x1] }
  0x34   : > { %2717 = vmatpush3.bf16.msra.mxu0 %v2922_v31  ;;  %2622 = vmatprep.subr.bf16.mxu1 %v2923_v38  ;;  %v2305_v31 = vld [vmem:[%s3063_s10 + $0xb8] sm:$0xf]  ;;  %v1221_v46 = vrot.slane %v1219_v39, 5  ;;  %v530_v22 = vshrl.u32 %v498_v16, 16  ;;  %v533_v23 = vshll.u32 %v498_v16, 16 }
  0x35   : > { %2718 = vmatprep.subr.bf16.mxu0 %v2924_v43  ;;  %v1210_v36 = vshrl.u32 %v2305_v31, 16  ;;  %v506_v16 = vld [vmem:[%s3063_s10 + $0x28] sm:$0xf] }
  0x36   : > { %v532_v30 = vrot.slane %v530_v22, 4  ;;  %v586_v22 = vshrl.u32 %v506_v16, 16 }
  0x37   : > { %2623 = vmatpush3.bf16.msra.mxu1 %v2923_v38  ;;  %v1213_v38 = vshll.u32 %v2305_v31, 16  ;;  %v1212_v42 = vrot.slane %v1210_v36, 4  ;;  %v535_v31 = vrot.slane %v533_v23, 5  ;;  %v541_v36 = vrot.slane %v539_v27, 5 }
  0x38   : > { %2719 = vmatpush3.bf16.msra.mxu0 %v2924_v43  ;;  %2624 = vmatprep.subr.bf16.mxu1 %v2925_v47  ;;  %v2941_v43 = vld [vmem:[%s3389_s1 + $0x90] sm:$0xff]   ;;  %v589_v23 = vshll.u32 %v506_v16, 16  ;;  %v2412_v16 = vld [vmem:[%s3063_s10 + $0xc] sm:$0x1] }
  0x39   : > { %2720 = vmatprep.subr.bf16.mxu0 %v2926_v50  ;;  %v1215_v45 = vrot.slane %v1213_v38, 5  ;;  %v2948_v38 = vld [vmem:[%s3389_s1 + $0x1a8] sm:$0xff]  }
  0x3b   : > { %2625 = vmatpush3.bf16.msra.mxu1 %v2925_v47  ;;  %v1202_v47 = vor.u32 %v1201_v41, %v1198_v40  ;;  %v1216_v54 = vor.u32 %v1215_v45, %v1212_v42  ;;  %v536_v40 = vor.u32 %v535_v31, %v532_v30  ;;  %v500_v41 = vld [vmem:[%s3063_s10 + $0x10] sm:$0xf]  ;;  %v591_v31 = vrot.slane %v589_v23, 5 }
  0x3c   : > { %2721 = vmatpush3.bf16.msra.mxu0 %v2926_v50  ;;  %2626 = vmatprep.subr.bf16.mxu1 %v2928_v2  ;;  %v2308_v50 = vld [vmem:[%s3063_s10 + $0xc4] sm:$0x1]  ;;  %v544_v45 = vshrl.u32 %v500_v41, 16  ;;  %v508_v30 = vld [vmem:[%s3063_s10 + $0x30] sm:$0xf] }
  0x3d   : > { %2722 = vmatprep.subr.bf16.mxu0 %v2930_v6  ;;  %v1233_v58 = vshll.u32 %v2308_v50, 16  ;;  %v1203_v60 = vrot.slane %v1202_v47, 4  ;;  %v1217_v0 = vrot.slane %v1216_v54, 4  ;;  %v503_v47 = vld [vmem:[%s3063_s10 + $0x1c] sm:$0x1] }
  0x3f   : > { %2627 = vmatpush3.bf16.msra.mxu1 %v2928_v2  ;;  %v1229_v2 = vrot.slane %v1227_v57, 5  ;;  %v1235_v3 = vrot.slane %v1233_v58, 5  ;;  %v1208_v5 = vsel %vm3134_vm2, %v1203_v60, %v1207_v44  ;;  %v1222_v9 = vsel %vm3134_vm2, %v1217_v0, %v1221_v46  ;;  %v502_v44 = vld [vmem:[%s3063_s10 + $0x18] sm:$0xf]  ;;  %v2951_v60 = vld [vmem:[%s3389_s1 + $0x1b0] sm:$0xff]  }
  0x40   : > { %2723 = vmatpush3.bf16.msra.mxu0 %v2930_v6  ;;  %2628 = vmatprep.subr.bf16.mxu1 %v2933_v14  ;;  %v1240_v6 = vrot.slane %v1238_v61, 4  ;;  %v537_v46 = vrot.slane %v536_v40, 4  ;;  %v558_v50 = vshrl.u32 %v502_v44, 16  ;;  %v561_v54 = vshll.u32 %v502_v44, 16 }
  0x41   : > { %2724 = vmatprep.subr.bf16.mxu0 %v2934_v19  ;;  %v1230_v10 = vor.u32 %v1229_v2, %v1226_v1  ;;  %v567_v58 = vshll.u32 %v503_v47, 16 }
  0x42   : > { %v1244_v15 = vor.u32 %v1243_v7, %v1240_v6  ;;  %v542_v55 = vsel %vm3134_vm2, %v537_v46, %v541_v36  ;;  %v560_v57 = vrot.slane %v558_v50, 4  ;;  %v563_v63 = vrot.slane %v561_v54, 5  ;;  %v2954_v6 = vld [vmem:[%s3389_s1 + $0x1b8] sm:$0xff]   ;;  %v2955_v7 = vld [vmem:[%s3389_s1 + $0xc0] sm:$0xff]  }
  0x43   : > { %2629 = vmatpush3.bf16.msra.mxu1 %v2933_v14  ;;  %v2329_v14 = vcombine.low %v1208_v5, %v1222_v9  ;;  %v1231_v20 = vrot.slane %v1230_v10, 4  ;;  %v2957_v10 = vld [vmem:[%s3389_s1 + $0x1c0] sm:$0xff]   ;;  %v2963_v50 = vld [vmem:[%s3389_s1 + $0xd8] sm:$0xff]  }
  0x44   : > { %2725 = vmatpush3.bf16.msra.mxu0 %v2934_v19  ;;  %2638 = vmatprep.subr.bf16.mxu1 %v2936_v21  ;;  %v519_v19 = vshll.u32 %v496_v11, 16  ;;  %v564_v1 = vor.u32 %v563_v63, %v560_v57  ;;  %v2958_v11 = vld [vmem:[%s3063_s10 + $0x18] ss:$8 sps:$4 sm:$0xff]  }
  0x45   : > { %2734 = vmatprep.subr.bf16.mxu0 %v2937_v24 }
  0x46   : > { %2631 = vmatmul.mubr.bf16.vlgmr.msra.gmra.mrb[0].mxu1 %v2938_v25  ;;  %v518_v25 = vrot.slane %v516_v18, 4  ;;  %v565_v5 = vrot.slane %v564_v1, 4  ;;  %v2960_v18 = vld [vmem:[%s3389_s1 + $0x1c8] sm:$0xff]   ;;  %v2965_v1 = vld [vmem:[%s3389_s1 + $0xe0] sm:$0xff]  }
  0x47   : > { %2639 = vmatpush3.bf16.msra.mxu1 %v2936_v21  ;;  %2727 = vmatmul.mubr.bf16.vlgmr.msra.gmra.mrb[0].mxu0 %v2328_v28  ;;  %v525_v21 = vshll.u32 %v497_v12, 16  ;;  %v2946_v28 = vld [vmem:[%s3389_s1 + $0x1a0] sm:$0xff]  }
  0x48   : > { %2735 = vmatpush3.bf16.msra.mxu0 %v2937_v24  ;;  %2640 = vmatprep.subr.bf16.mxu1 %v2939_v26  ;;  %v1245_v24 = vrot.slane %v1244_v15, 4  ;;  %v504_v12 = vld [vmem:[%s3063_s10 + $0x20] sm:$0xf]  ;;  %v505_v15 = vld [vmem:[%s3063_s10 + $0x24] sm:$0x1] }
  0x49   : > { %2736 = vmatprep.subr.bf16.mxu0 %v2940_v29  ;;  %2634 = vmatprep.mubr.bf16.mxu1 %v2949_v37  ;;  %v527_v35 = vrot.slane %v525_v21, 5  ;;  %v2956_v37 = vld [vmem:[%s3063_s10 + $0x8] ss:$8 sps:$4 sm:$0xff]   ;;  %v581_v21 = vshll.u32 %v505_v15, 16 }
  0x4a   : > { %2730 = vmatprep.mubr.bf16.mxu0 %v2329_v14  ;;  %v1250_v33 = vsel %vm3134_vm2, %v1245_v24, %v1249_v8  ;;  %v2959_v14 = vld [vmem:[%s3389_s1 + $0xc8] sm:$0xff]   ;;  %v595_v24 = vshll.u32 %v507_v17, 16  ;;  %v2413_v17 = vld [vmem:[%s3063_s10 + $0x10] sm:$0xf] }
  0x4b   : > { %2641 = vmatpush3.bf16.msra.mxu1 %v2939_v26  ;;  %v521_v26 = vrot.slane %v519_v19, 5  ;;  %v572_v19 = vshrl.u32 %v504_v12, 16  ;;  %v2411_v15 = vld [vmem:[%s3063_s10 + $0x8] sm:$0xf]  ;;  %v1781_v23 = vshll.u32 %v2413_v17, 16 }
  0x4c   : > { %2737 = vmatpush3.bf16.msra.mxu0 %v2940_v29  ;;  %2642 = vmatprep.subr.bf16.mxu1 %v2941_v43  ;;  %v1236_v29 = vsel %vm3134_vm2, %v1231_v20, %v1235_v3  ;;  %v569_v3 = vrot.slane %v567_v58, 5  ;;  %v575_v20 = vshll.u32 %v504_v12, 16  ;;  %v2971_v58 = vld [vmem:[%s3063_s10 + $0x38] ss:$8 sps:$4 sm:$0xff]  }
  0x4d   : > { %2738 = vmatprep.subr.bf16.mxu0 %v2942_v52  ;;  %v522_v34 = vor.u32 %v521_v26, %v518_v25  ;;  %v2330_v39 = vcombine.low %v1236_v29, %v1250_v33  ;;  %v2969_v25 = vld [vmem:[%s3063_s10 + $0x28] ss:$8 sps:$4 sm:$0xff]   ;;  %v574_v26 = vrot.slane %v572_v19, 4  ;;  %v588_v29 = vrot.slane %v586_v22, 4  ;;  %v509_v33 = vld [vmem:[%s3063_s10 + $0x34] sm:$0x1] }
  0x4e   : > { %2635 = vmatmul.mubr.bf16.gmra.mrb[4].mxu1 %v2952_v48  ;;  %v547_v48 = vshll.u32 %v500_v41, 16  ;;  %v570_v9 = vsel %vm3134_vm2, %v565_v5, %v569_v3  ;;  %v577_v27 = vrot.slane %v575_v20, 5  ;;  %v609_v40 = vshll.u32 %v509_v33, 16  ;;  %v2962_v41 = vld [vmem:[%s3389_s1 + $0x1d0] sm:$0xff]   ;;  %v2966_v5 = vld [vmem:[%s3389_s1 + $0x1e0] sm:$0xff]   ;;  %v2973_v12 = vld [vmem:[%s3389_s1 + $0xf8] sm:$0xff]  }
  0x4f   : > { %2643 = vmatpush3.bf16.msra.mxu1 %v2941_v43  ;;  %v523_v42 = vrot.slane %v522_v34, 4  ;;  %v501_v43 = vld [vmem:[%s3063_s10 + $0x14] sm:$0x1]  ;;  %2731 = vmatmul.mubr.bf16.gmra.mrb[4].mxu0 %v2330_v39  ;;  %v510_v34 = vld [vmem:[%s3063_s10 + $0x38] sm:$0xf]  ;;  %v603_v39 = vshll.u32 %v508_v30, 16 }
  0x50   : > { %2739 = vmatpush3.bf16.msra.mxu0 %v2942_v52  ;;  %2644 = vmatprep.subr.bf16.mxu1 %v2943_v59  ;;  %v553_v49 = vshll.u32 %v501_v43, 16  ;;  %v546_v52 = vrot.slane %v544_v45, 4  ;;  %v549_v56 = vrot.slane %v547_v48, 5  ;;  %v578_v36 = vor.u32 %v577_v27, %v574_v26  ;;  %v2422_v33 = vld [vmem:[%s3063_s10 + $0x34] sm:$0x1] }
  0x51   : > { %2740 = vmatprep.subr.bf16.mxu0 %v2944_v4  ;;  %v528_v51 = vsel %vm3134_vm2, %v523_v42, %v527_v35  ;;  %2750 = vmatprep.mubr.bf16.mxu0 %v2956_v37  ;;  %v2961_v35 = vld [vmem:[%s3389_s1 + $0xd0] sm:$0xff]   ;;  %v511_v37 = vld [vmem:[%s3063_s10 + $0x3c] sm:$0x1]  ;;  %v592_v42 = vor.u32 %v591_v31, %v588_v29  ;;  %v614_v43 = vshrl.u32 %v510_v34, 16  ;;  %v617_v44 = vshll.u32 %v510_v34, 16 }
  0x52   : > { %v2211_v61 = vcombine.low %v528_v51, %v542_v55  ;;  %v555_v62 = vrot.slane %v553_v49, 5  ;;  %v550_v0 = vor.u32 %v549_v56, %v546_v52  ;;  %v623_v45 = vshll.u32 %v511_v37, 16  ;;  %v2421_v29 = vld [vmem:[%s3063_s10 + $0x30] sm:$0xf]  ;;  %v2978_v34 = vld [vmem:[%s3063_s10 + $0x60] ss:$8 sps:$4 sm:$0xff]  }
  0x53   : > { %2645 = vmatpush3.bf16.msra.mxu1 %v2943_v59  ;;  %v2950_v59 = vld [vmem:[%s3389_s1 + $0xb0] sm:$0xff]   ;;  %v579_v46 = vrot.slane %v578_v36, 4  ;;  %v605_v48 = vrot.slane %v603_v39, 5  ;;  %v611_v49 = vrot.slane %v609_v40, 5  ;;  %v593_v51 = vrot.slane %v592_v42, 4  ;;  %v2980_v39 = vld [vmem:[%s3389_s1 + $0x208] sm:$0xff]  }
  0x54   : > { %2741 = vmatpush3.bf16.msra.mxu0 %v2944_v4  ;;  %2646 = vmatprep.subr.bf16.mxu1 %v2945_v13  ;;  %v551_v2 = vrot.slane %v550_v0, 4  ;;  %v2953_v4 = vld [vmem:[%s3389_s1 + $0xb8] sm:$0xff]   ;;  %v616_v52 = vrot.slane %v614_v43, 4  ;;  %v619_v54 = vrot.slane %v617_v44, 5  ;;  %v625_v55 = vrot.slane %v623_v45, 5 }
  0x55   : > { %2742 = vmatprep.subr.bf16.mxu0 %v2946_v28  ;;  %2654 = vmatprep.mubr.bf16.mxu1 %v2211_v61  ;;  %v2964_v61 = vld [vmem:[%s3389_s1 + $0x1d8] sm:$0xff]   ;;  %v1764_v19 = vshrl.u32 %v2411_v15, 16  ;;  %v1767_v20 = vshll.u32 %v2411_v15, 16  ;;  %v1778_v22 = vshrl.u32 %v2413_v17, 16  ;;  %v1837_v42 = vshll.u32 %v2421_v29, 16  ;;  %v2987_v15 = vld [vmem:[%s3389_s1 + $0x220] sm:$0xff]  }
  0x56   : > { %v556_v8 = vsel %vm3134_vm2, %v551_v2, %v555_v62  ;;  %v1843_v43 = vshll.u32 %v2422_v33, 16  ;;  %v2981_v44 = vld [vmem:[%s3063_s10 + $0xb0] ss:$8 sps:$4 sm:$0xff]  }
  0x57   : > { %2647 = vmatpush3.bf16.msra.mxu1 %v2945_v13  ;;  %v2212_v13 = vcombine.low %v556_v8, %v570_v9  ;;  %v2967_v8 = vld [vmem:[%s3389_s1 + $0xe8] sm:$0xff]   ;;  %v1766_v26 = vrot.slane %v1764_v19, 4  ;;  %v1769_v27 = vrot.slane %v1767_v20, 5  ;;  %v1780_v31 = vrot.slane %v1778_v22, 4 }
  0x58   : > { %2743 = vmatpush3.bf16.msra.mxu0 %v2946_v28  ;;  %2648 = vmatprep.subr.bf16.mxu1 %v2947_v32  ;;  %v583_v28 = vrot.slane %v581_v21, 5  ;;  %v2968_v9 = vld [vmem:[%s3389_s1 + $0x1e8] sm:$0xff]   ;;  %v1773_v21 = vshll.u32 %v2412_v16, 16 }
  0x59   : > { %2744 = vmatprep.subr.bf16.mxu0 %v2948_v38  ;;  %v2988_v20 = vld [vmem:[%s3389_s1 + $0x228] sm:$0xff]  }
  0x5a   : > { %v584_v56 = vsel %vm3134_vm2, %v579_v46, %v583_v28  ;;  %v2420_v28 = vld [vmem:[%s3063_s10 + $0x2c] sm:$0x1]  ;;  %v1775_v45 = vrot.slane %v1773_v21, 5  ;;  %v2424_v21 = vld [vmem:[%s3063_s10 + $0x3c] sm:$0x1] }
  0x5b   : > { %2649 = vmatpush3.bf16.msra.mxu1 %v2947_v32  ;;  %v597_v32 = vrot.slane %v595_v24, 5 }
  0x5c   : > { %2745 = vmatpush3.bf16.msra.mxu0 %v2948_v38  ;;  %2650 = vmatprep.subr.bf16.mxu1 %v2950_v59  ;;  %v600_v38 = vshrl.u32 %v508_v30, 16  ;;  %v2977_v30 = vld [vmem:[%s3063_s10 + $0xa0] ss:$8 sps:$4 sm:$0xff]  }
  0x5d   : > { %2746 = vmatprep.subr.bf16.mxu0 %v2951_v60 }
  0x5e   : > { %v602_v47 = vrot.slane %v600_v38, 4  ;;  %v1829_v38 = vshll.u32 %v2420_v28, 16 }
  0x5f   : > { %2651 = vmatpush3.bf16.msra.mxu1 %v2950_v59  ;;  %v598_v59 = vsel %vm3134_vm2, %v593_v51, %v597_v32  ;;  %v1783_v32 = vrot.slane %v1781_v23, 5 }
  0x60   : > { %2747 = vmatpush3.bf16.msra.mxu0 %v2951_v60  ;;  %2652 = vmatprep.subr.bf16.mxu1 %v2953_v4  ;;  %v606_v57 = vor.u32 %v605_v48, %v602_v47  ;;  %v620_v60 = vor.u32 %v619_v54, %v616_v52  ;;  %v2213_v62 = vcombine.low %v584_v56, %v598_v59  ;;  %v1839_v54 = vrot.slane %v1837_v42, 5 }
  0x61   : > { %2748 = vmatprep.subr.bf16.mxu0 %v2954_v6  ;;  %v1784_v40 = vor.u32 %v1783_v32, %v1780_v31  ;;  %v1831_v56 = vrot.slane %v1829_v38, 5  ;;  %v1845_v59 = vrot.slane %v1843_v43, 5  ;;  %v2416_v31 = vld [vmem:[%s3063_s10 + $0x1c] sm:$0x1]  ;;  %v2418_v32 = vld [vmem:[%s3063_s10 + $0x24] sm:$0x1] }
  0x62   : > { %v607_v63 = vrot.slane %v606_v57, 4  ;;  %v621_v0 = vrot.slane %v620_v60, 4  ;;  %v2985_v57 = vld [vmem:[%s3389_s1 + $0x210] sm:$0xff]  }
  0x63   : > { %2653 = vmatpush3.bf16.msra.mxu1 %v2953_v4  ;;  %v2976_v4 = vld [vmem:[%s3063_s10 + $0x50] ss:$8 sps:$4 sm:$0xff]   ;;  %v1785_v51 = vrot.slane %v1784_v40, 4 }
  0x64   : > { %2749 = vmatpush3.bf16.msra.mxu0 %v2954_v6  ;;  %2662 = vmatprep.subr.bf16.mxu1 %v2955_v7  ;;  %v612_v2 = vsel %vm3134_vm2, %v607_v63, %v611_v49  ;;  %v626_v3 = vsel %vm3134_vm2, %v621_v0, %v625_v55  ;;  %v2982_v49 = vld [vmem:[%s3063_s10 + $0x70] ss:$8 sps:$4 sm:$0xff]  }
  0x65   : > { %2758 = vmatprep.subr.bf16.mxu0 %v2957_v10  ;;  %v2214_v6 = vcombine.low %v612_v2, %v626_v3  ;;  %v2986_v3 = vld [vmem:[%s3389_s1 + $0x218] sm:$0xff]  }
  0x66   : > { %2655 = vmatmul.mubr.bf16.vlgmr.msra.gmra.mrb[0].mxu1 %v2212_v13  ;;  %v2974_v13 = vld [vmem:[%s3389_s1 + $0x1f8] sm:$0xff]  }
  0x67   : > { %2663 = vmatpush3.bf16.msra.mxu1 %v2955_v7  ;;  %2751 = vmatmul.mubr.bf16.vlgmr.msra.gmra.mrb[0].mxu0 %v2958_v11  ;;  %v2975_v7 = vld [vmem:[%s3063_s10 + $0x90] ss:$8 sps:$4 sm:$0xff]  }
  0x68   : > { %2759 = vmatpush3.bf16.msra.mxu0 %v2957_v10  ;;  %2664 = vmatprep.subr.bf16.mxu1 %v2959_v14  ;;  %v2970_v10 = vld [vmem:[%s3389_s1 + $0xf0] sm:$0xff]  }
  0x69   : > { %2760 = vmatprep.subr.bf16.mxu0 %v2960_v18  ;;  %2754 = vmatprep.mubr.bf16.mxu0 %v2969_v25  ;;  %v2972_v11 = vld [vmem:[%s3389_s1 + $0x1f0] sm:$0xff]   ;;  %v2419_v25 = vld [vmem:[%s3063_s10 + $0x28] sm:$0xf] }
  0x6a   : > { %2658 = vmatprep.mubr.bf16.mxu1 %v2213_v62  ;;  %v1820_v36 = vshrl.u32 %v2419_v25, 16  ;;  %v1823_v37 = vshll.u32 %v2419_v25, 16 }
  0x6b   : > { %2665 = vmatpush3.bf16.msra.mxu1 %v2959_v14  ;;  %v2979_v14 = vld [vmem:[%s3389_s1 + $0x200] sm:$0xff]  }
  0x6c   : > { %2761 = vmatpush3.bf16.msra.mxu0 %v2960_v18  ;;  %2666 = vmatprep.subr.bf16.mxu1 %v2961_v35  ;;  %v2414_v18 = vld [vmem:[%s3063_s10 + $0x14] sm:$0x1]  ;;  %v1822_v47 = vrot.slane %v1820_v36, 4  ;;  %v1825_v48 = vrot.slane %v1823_v37, 5 }
  0x6d   : > { %2762 = vmatprep.subr.bf16.mxu0 %v2962_v41  ;;  %v1787_v24 = vshll.u32 %v2414_v18, 16  ;;  %v2989_v37 = vld [vmem:[%s3389_s1 + $0x230] sm:$0xff]  }
  0x6e   : > { %2659 = vmatmul.mubr.bf16.gmra.mrb[4].mxu1 %v2214_v6  ;;  %v1826_v55 = vor.u32 %v1825_v48, %v1822_v47  ;;  %v2425_v6 = vld [vmem:[%s3063_s10 + $0x40] sm:$0xf] }
  0x6f   : > { %2667 = vmatpush3.bf16.msra.mxu1 %v2961_v35  ;;  %2755 = vmatmul.mubr.bf16.gmra.mrb[4].mxu0 %v2971_v58  ;;  %v1770_v35 = vor.u32 %v1769_v27, %v1766_v26  ;;  %v1789_v46 = vrot.slane %v1787_v24, 5 }
  0x70   : > { %2763 = vmatpush3.bf16.msra.mxu0 %v2962_v41  ;;  %2668 = vmatprep.subr.bf16.mxu1 %v2963_v50  ;;  %v1834_v41 = vshrl.u32 %v2421_v29, 16  ;;  %v1827_v60 = vrot.slane %v1826_v55, 4 }
  0x71   : > { %2764 = vmatprep.subr.bf16.mxu0 %v2964_v61  ;;  %2774 = vmatprep.mubr.bf16.mxu0 %v2976_v4  ;;  %v1790_v63 = vsel %vm3134_vm2, %v1785_v51, %v1789_v46  ;;  %v2990_v46 = vld [vmem:[%s3389_s1 + $0x238] sm:$0xff]  }
  0x72   : > { %2678 = vmatprep.mubr.bf16.mxu1 %v2975_v7  ;;  %v1836_v52 = vrot.slane %v1834_v41, 4  ;;  %v1832_v2 = vsel %vm3134_vm2, %v1827_v60, %v1831_v56  ;;  %v1815_v41 = vshll.u32 %v2418_v32, 16 }
  0x73   : > { %2669 = vmatpush3.bf16.msra.mxu1 %v2963_v50  ;;  %v1771_v50 = vrot.slane %v1770_v35, 4 }
  0x74   : > { %2765 = vmatpush3.bf16.msra.mxu0 %v2964_v61  ;;  %2670 = vmatprep.subr.bf16.mxu1 %v2965_v1  ;;  %v1840_v58 = vor.u32 %v1839_v54, %v1836_v52  ;;  %v2983_v61 = vld [vmem:[%s3063_s10 + $0xc0] ss:$8 sps:$4 sm:$0xff]  }
  0x75   : > { %2766 = vmatprep.subr.bf16.mxu0 %v2966_v5  ;;  %v1776_v62 = vsel %vm3134_vm2, %v1771_v50, %v1775_v45  ;;  %v1817_v50 = vrot.slane %v1815_v41, 5 }
  0x76   : > { %v1841_v0 = vrot.slane %v1840_v58, 4  ;;  %v2443_v7 = vcombine.low %v1776_v62, %v1790_v63 }
  0x77   : > { %2671 = vmatpush3.bf16.msra.mxu1 %v2965_v1  ;;  %v2984_v1 = vld [vmem:[%s3063_s10 + $0x80] ss:$8 sps:$4 sm:$0xff]  }
  0x78   : > { %2767 = vmatpush3.bf16.msra.mxu0 %v2966_v5  ;;  %2672 = vmatprep.subr.bf16.mxu1 %v2967_v8  ;;  %v1846_v4 = vsel %vm3134_vm2, %v1841_v0, %v1845_v59  ;;  %v2423_v5 = vld [vmem:[%s3063_s10 + $0x38] sm:$0xf] }
  0x79   : > { %2768 = vmatprep.subr.bf16.mxu0 %v2968_v9 }
  0x7b   : > { %2673 = vmatpush3.bf16.msra.mxu1 %v2967_v8  ;;  %v2415_v8 = vld [vmem:[%s3063_s10 + $0x18] sm:$0xf] }
  0x7c   : > { %2769 = vmatpush3.bf16.msra.mxu0 %v2968_v9  ;;  %2674 = vmatprep.subr.bf16.mxu1 %v2970_v10  ;;  %v2417_v9 = vld [vmem:[%s3063_s10 + $0x20] sm:$0xf]  ;;  %v1792_v16 = vshrl.u32 %v2415_v8, 16  ;;  %v1795_v17 = vshll.u32 %v2415_v8, 16 }
  0x7d   : > { %2770 = vmatprep.subr.bf16.mxu0 %v2972_v11  ;;  %v1806_v18 = vshrl.u32 %v2417_v9, 16  ;;  %v1809_v19 = vshll.u32 %v2417_v9, 16  ;;  %v2455_v9 = vld [vmem:[%s3390_s2] ss:$0 sm:$0xff] }
  0x7e   : > { %v1794_v26 = vrot.slane %v1792_v16, 4  ;;  %v1797_v27 = vrot.slane %v1795_v17, 5 }
  0x7f   : > { %2675 = vmatpush3.bf16.msra.mxu1 %v2970_v10  ;;  %v2445_v10 = vcombine.low %v1832_v2, %v1846_v4  ;;  %v1808_v28 = vrot.slane %v1806_v18, 4  ;;  %v1811_v29 = vrot.slane %v1809_v19, 5 }
  0x80   : > { %2771 = vmatpush3.bf16.msra.mxu0 %v2972_v11  ;;  %2676 = vmatprep.subr.bf16.mxu1 %v2973_v12  ;;  %v1848_v11 = vshrl.u32 %v2423_v5, 16  ;;  %v1798_v38 = vor.u32 %v1797_v27, %v1794_v26 }
  0x81   : > { %2772 = vmatprep.subr.bf16.mxu0 %v2974_v13  ;;  %v1812_v40 = vor.u32 %v1811_v29, %v1808_v28 }
  0x82   : > { %v1850_v22 = vrot.slane %v1848_v11, 4  ;;  %v1799_v47 = vrot.slane %v1798_v38, 4 }
  0x83   : > { %2677 = vmatpush3.bf16.msra.mxu1 %v2973_v12  ;;  %v1851_v12 = vshll.u32 %v2423_v5, 16 }
  0x84   : > { %2773 = vmatpush3.bf16.msra.mxu0 %v2974_v13  ;;  %2806 = vmatprep.subr.bf16.mxu1 %v2979_v14  ;;  %v1862_v13 = vshrl.u32 %v2425_v6, 16 }
  0x85   : > { %2782 = vmatprep.subr.bf16.mxu0 %v2979_v14  ;;  %v1853_v23 = vrot.slane %v1851_v12, 5 }
  0x86   : > { %2679 = vmatmul.mubr.bf16.vlgmr.msra.gmra.mrb[0].mxu1 %v2977_v30  ;;  %v1864_v24 = vrot.slane %v1862_v13, 4  ;;  %v2426_v30 = vld [vmem:[%s3063_s10 + $0x44] sm:$0x1] }
  0x87   : > { %2775 = vmatmul.mubr.bf16.vlgmr.msra.gmra.mrb[0].mxu0 %v2978_v34  ;;  %2814 = vmatpush3.bf16.msra.mxu1 %v2979_v14  ;;  %v1854_v33 = vor.u32 %v1853_v23, %v1850_v22  ;;  %v1857_v34 = vshll.u32 %v2424_v21, 16  ;;  %v1871_v36 = vshll.u32 %v2426_v30, 16 }
  0x88   : > { %2783 = vmatpush3.bf16.msra.mxu0 %v2979_v14  ;;  %2807 = vmatprep.subr.bf16.mxu1 %v2980_v39  ;;  %v1865_v14 = vshll.u32 %v2425_v6, 16 }
  0x89   : > { %2784 = vmatprep.subr.bf16.mxu0 %v2980_v39  ;;  %2682 = vmatprep.mubr.bf16.mxu1 %v2981_v44  ;;  %v1855_v42 = vrot.slane %v1854_v33, 4  ;;  %v1859_v43 = vrot.slane %v1857_v34, 5  ;;  %v1873_v45 = vrot.slane %v1871_v36, 5 }
  0x8a   : > { %2778 = vmatprep.mubr.bf16.mxu0 %v2982_v49  ;;  %v1867_v25 = vrot.slane %v1865_v14, 5  ;;  %v1813_v49 = vrot.slane %v1812_v40, 4 }
  0x8b   : > { %2815 = vmatpush3.bf16.msra.mxu1 %v2980_v39  ;;  %v1860_v51 = vsel %vm3134_vm2, %v1855_v42, %v1859_v43 }
  0x8c   : > { %2785 = vmatpush3.bf16.msra.mxu0 %v2980_v39  ;;  %2808 = vmatprep.subr.bf16.mxu1 %v2985_v57  ;;  %v1868_v35 = vor.u32 %v1867_v25, %v1864_v24  ;;  %v1801_v39 = vshll.u32 %v2416_v31, 16  ;;  %v1818_v55 = vsel %vm3134_vm2, %v1813_v49, %v1817_v50 }
  0x8d   : > { %2786 = vmatprep.subr.bf16.mxu0 %v2985_v57 }
  0x8e   : > { %2683 = vmatmul.mubr.bf16.gmra.mrb[4].mxu1 %v2983_v61  ;;  %v1869_v44 = vrot.slane %v1868_v35, 4  ;;  %v1803_v48 = vrot.slane %v1801_v39, 5 }
  0x8f   : > { %2779 = vmatmul.mubr.bf16.gmra.mrb[4].mxu0 %v2984_v1  ;;  %2816 = vmatpush3.bf16.msra.mxu1 %v2985_v57 }
  0x90   : > { %2787 = vmatpush3.bf16.msra.mxu0 %v2985_v57  ;;  %2809 = vmatprep.subr.bf16.mxu1 %v2986_v3  ;;  %v1874_v52 = vsel %vm3134_vm2, %v1869_v44, %v1873_v45  ;;  %v1804_v54 = vsel %vm3134_vm2, %v1799_v47, %v1803_v48 }
  0x91   : > { %2788 = vmatprep.subr.bf16.mxu0 %v2986_v3  ;;  %2798 = vmatprep.mubr.bf16.mxu0 %v2443_v7  ;;  %v2446_v56 = vcombine.low %v1860_v51, %v1874_v52  ;;  %v2444_v57 = vcombine.low %v1804_v54, %v1818_v55 }
  0x92   : > { %2802 = vmatprep.mubr.bf16.mxu1 %v2445_v10 }
  0x93   : > { %2817 = vmatpush3.bf16.msra.mxu1 %v2986_v3 }
  0x94   : > { %2789 = vmatpush3.bf16.msra.mxu0 %v2986_v3  ;;  %2810 = vmatprep.subr.bf16.mxu1 %v2987_v15 }
  0x95   : > { %2790 = vmatprep.subr.bf16.mxu0 %v2987_v15 }
  0x97   : > { %2818 = vmatpush3.bf16.msra.mxu1 %v2987_v15 }
  0x98   : > { %2791 = vmatpush3.bf16.msra.mxu0 %v2987_v15  ;;  %2811 = vmatprep.subr.bf16.mxu1 %v2988_v20 }
  0x99   : > { %2792 = vmatprep.subr.bf16.mxu0 %v2988_v20 }
  0x9b   : > { %2819 = vmatpush3.bf16.msra.mxu1 %v2988_v20 }
  0x9c   : > { %2793 = vmatpush3.bf16.msra.mxu0 %v2988_v20  ;;  %2812 = vmatprep.subr.bf16.mxu1 %v2989_v37 }
  0x9d   : > { %2794 = vmatprep.subr.bf16.mxu0 %v2989_v37 }
  0x9f   : > { %2820 = vmatpush3.bf16.msra.mxu1 %v2989_v37 }
  0xa0   : > { %2795 = vmatpush3.bf16.msra.mxu0 %v2989_v37  ;;  %2813 = vmatprep.subr.bf16.mxu1 %v2990_v46 }
  0xa1   : > { %2796 = vmatprep.subr.bf16.mxu0 %v2990_v46 }
  0xa3   : > { %2821 = vmatpush3.bf16.msra.mxu1 %v2990_v46 }
  0xa4   : > { %2797 = vmatpush3.bf16.msra.mxu0 %v2990_v46 }
  0xa6   : > { %2803 = vmatmul.mubr.bf16.vlgmr.msra.gmra.mrb[8].mxu1 %v2446_v56 }
  0xa7   : > { %2799 = vmatmul.mubr.bf16.vlgmr.msra.gmra.mrb[0].mxu0 %v2444_v57 }
 0x159   : > { %v2680_v58 = vpop.f32.mrb[0].mxu1 }
 0x15a   : > { %v913_v59 = vpop.f32.mrb[1].mxu1 }
 0x15b   : > { %v2681_v60 = vpop.f32.mrb[2].mxu1 }
 0x15c   : > { %v916_v61 = vpop.f32.mrb[3].mxu1 }
 0x161   : > { %v2684_v62 = vpop.f32.mrb[4].mxu1 }
 0x162   : > { %v2780_v63 = vpop.f32.mrb[4].mxu0  ;;  %v929_v0 = vpop.f32.mrb[5].mxu1 }
 0x163   : > { %v2826_v1 = vadd.f32 %v2780_v63, %v2684_v62  ;;  %v1724_v2 = vpop.f32.mrb[5].mxu0  ;;  %v2685_v3 = vpop.f32.mrb[6].mxu1 }
 0x164   : > { %v2828_v4 = vadd.f32 %v1724_v2, %v929_v0  ;;  %v2781_v53 = vpop.f32.mrb[6].mxu0  ;;  %v932_v5 = vpop.f32.mrb[7].mxu1 }
 0x165   : > { %v2830_v6 = vadd.f32 %v2781_v53, %v2685_v3  ;;  %v1727_v7 = vpop.f32.mrb[7].mxu0 }
 0x166   : > { %v2832_v8 = vadd.f32 %v1727_v7, %v932_v5 }
 0x179   : > { %v2804_v10 = vpop.f32.mrb[8].mxu1 }
 0x17a   : > { %v2800_v11 = vpop.f32.mrb[0].mxu0  ;;  %v2827_v12 = vadd.f32 %v2826_v1, %v2804_v10  ;;  %v2006_v13 = vpop.f32.mrb[9].mxu1 }
 0x17b   : > { %v2822_v14 = vadd.f32 %v2800_v11, %v2680_v58  ;;  %v1990_v15 = vpop.f32.mrb[1].mxu0  ;;  %v2829_v16 = vadd.f32 %v2828_v4, %v2006_v13  ;;  %v2805_v17 = vpop.f32.mrb[10].mxu1 }
 0x17c   : > { %v2042_v18 = vadd.f32 %v2827_v12, %v2455_v9  ;;  %v2823_v19 = vadd.f32 %v1990_v15, %v913_v59  ;;  %v2801_v20 = vpop.f32.mrb[2].mxu0  ;;  %v2831_v21 = vadd.f32 %v2830_v6, %v2805_v17  ;;  %v2009_v22 = vpop.f32.mrb[11].mxu1 }
 0x17d   : > { %v2038_v23 = vadd.f32 %v2822_v14, %v2455_v9  ;;  %v2040_v24 = vadd.f32 %v2829_v16, %v2455_v9  ;;  %v2824_v25 = vadd.f32 %v2801_v20, %v2681_v60  ;;  %v1993_v26 = vpop.f32.mrb[3].mxu0  ;;  %v2833_v27 = vadd.f32 %v2832_v8, %v2009_v22 }
 0x17e   : > { %v2043_v28 = vadd.f32 %v2831_v21, %v2455_v9  ;;  %v2058_v29 = vmul.f32 0.1, %v2042_v18  ;;  %v2036_v30 = vadd.f32 %v2823_v19, %v2455_v9  ;;  %vm2050_vm3 = vcmp.ge.f32.partialorder %v2042_v18, 0.0 }
 0x17f   : > { %v2054_v31 = vmul.f32 0.1, %v2038_v23  ;;  %v2039_v32 = vadd.f32 %v2824_v25, %v2455_v9  ;;  %vm2046_vm4 = vcmp.ge.f32.partialorder %v2038_v23, 0.0  ;;  %vm2048_vm5 = vcmp.ge.f32.partialorder %v2040_v24, 0.0 }
 0x180   : > { %vm2051_vm6 = vcmp.ge.f32.partialorder %v2043_v28, 0.0  ;;  %v2059_v33 = vmul.f32 0.1, %v2043_v28  ;;  %v2056_v34 = vmul.f32 0.1, %v2040_v24  ;;  %v2825_v36 = vadd.f32 %v1993_v26, %v916_v61 }
 0x181   : > { %vm2047_vm7 = vcmp.ge.f32.partialorder %v2039_v32, 0.0  ;;  %v2055_v35 = vmul.f32 0.1, %v2039_v32  ;;  %v2066_v37 = vsel %vm2050_vm3, %v2042_v18, %v2058_v29  ;;  %v2052_v38 = vmul.f32 0.1, %v2036_v30 }
 0x182   : > { %v2067_v39 = vsel %vm2051_vm6, %v2043_v28, %v2059_v33  ;;  %v2041_v40 = vadd.f32 %v2833_v27, %v2455_v9  ;;  %v2062_v41 = vsel %vm2046_vm4, %v2038_v23, %v2054_v31  ;;  %v2037_v44 = vadd.f32 %v2825_v36, %v2455_v9 }
 0x183   : > { %v2063_v42 = vsel %vm2047_vm7, %v2039_v32, %v2055_v35  ;;  %v2477_v43 = vpack.c.bf16 %v2067_v39, %v2066_v37  ;;  %vm2044_vm8 = vcmp.ge.f32.partialorder %v2036_v30, 0.0  ;;  %v2064_v48 = vsel %vm2048_vm5, %v2040_v24, %v2056_v34 }
 0x184   : > { %v2467_v45 = vpack.c.bf16 %v2063_v42, %v2062_v41  ;;  %vm2049_vm9 = vcmp.ge.f32.partialorder %v2041_v40, 0.0  ;;  %v2057_v46 = vmul.f32 0.1, %v2041_v40  ;;  %vm2045_vm10 = vcmp.ge.f32.partialorder %v2037_v44, 0.0 }
 0x185   : > { %2481 = vst [vmem:[%s170_s21 + $0x18] sm:$0xff] %v2477_v43   ;;  %v2053_v47 = vmul.f32 0.1, %v2037_v44  ;;  %v2060_v50 = vsel %vm2044_vm8, %v2036_v30, %v2052_v38 }
 0x186   : > { %2479 = vst [vmem:[%s170_s21 + $0x8] sm:$0xff] %v2467_v45   ;;  %v2065_v49 = vsel %vm2049_vm9, %v2041_v40, %v2057_v46 }
 0x187   : > { %v2061_v51 = vsel %vm2045_vm10, %v2037_v44, %v2053_v47  ;;  %v2472_v52 = vpack.c.bf16 %v2065_v49, %v2064_v48 }
 0x188   : > { %v2462_v54 = vpack.c.bf16 %v2061_v51, %v2060_v50 }
 0x189   : > { %2480 = vst [vmem:[%s170_s21 + $0x10] sm:$0xff] %v2472_v52  }
 0x18a   : > { %2463 = vst [vmem:[%s170_s21] sm:$0xff] %v2462_v54  }
 0x18b PF: > { %s13_s12 = sadd.s32 1, %s2997_s12  }
 0x18c   : > { %p10_p4 = scmp.ge.s32.totalorder %s13_s12, 4  }
 0x18e   :  { %12 = sbr.rel (!%p10_p4) target bundleno = 1 (0x1), region = 75 }

// kernel: res_unit_forward.5
= control target key start
LH: loop header
LB: loop body
LE: loop exit
PB: predicated region body
PF: predicated region fallthrough
CT: control target
= control target key end

     0   :  { %s3238_s15 = smov 0   ;;  %s3842_s0 = inlined_call_operand.vmem [shape: bf16[2,1,10,10,128], index: 0, kind: input, shape index: {}]   ;;  %s3843_s1 = inlined_call_operand.vmem [shape: bf16[3,3,128,128], index: 1, kind: input, shape index: {}]   ;;  %s3844_s2 = inlined_call_operand.vmem [shape: f32[1,128], index: 2, kind: input, shape index: {}]   ;;  %s3845_s3 = inlined_call_operand.vmem [shape: bf16[2,8,8,128], index: 3, kind: input, shape index: {}]   ;;  %s3846_s4 = inlined_call_operand.vmem [shape: f32[2,8,8,128], index: 4, kind: output, shape index: {}]  }
   0x1 LB: > { %s2350_s16 = sadd.s32 4294967295, %s3211_s15   ;;  %p2354_p0 = scmp.ge.s32.totalorder %s3211_s15, 1  ;;  %s3211_s15 = sphi %s3238_s15, %s14_s15  }
   0x2   : > { %p172_p1 = scmp.lt.s32.totalorder %s3211_s15, 3 }
   0x4   : > { %p173_p2 = pnand %p2354_p0, %p172_p1 }
   0x5   : > { %v3121_v0 = vld [vmem:[%s3843_s1 + $0x40] sm:$0xff] (!%p173_p2)   ;;  %p203_p3 = scmp.lt.s32.totalorder (!%p173_p2), %s2350_s16, 1  ;;  %v3123_v2 = vld [vmem:[%s3843_s1 + $0x48] sm:$0xff] (!%p173_p2)   ;;  %v3125_v4 = vld [vmem:[%s3843_s1 + $0x50] sm:$0xff] (!%p173_p2)   ;;  %vm251_vm0 = vsmask.f32 (!%p173_p2), 3328 }
   0x6   : > { %176 = sbr.rel (%p173_p2) target bundleno = 406 (0x196), region = 36  ;;  %v3122_v1 = vld [vmem:[%s3843_s1 + $0x100] sm:$0xff] (!%p173_p2)   ;;  %2816 = vmatprep.subr.bf16.mxu1 (!%p173_p2), %v3121_v0  ;;  %v3124_v3 = vld [vmem:[%s3843_s1 + $0x108] sm:$0xff] (!%p173_p2)   ;;  %v3126_v5 = vld [vmem:[%s3843_s1 + $0x110] sm:$0xff] (!%p173_p2)   ;;  %vm252_vm1 = vsmask.f32 (!%p173_p2), 7440 }
   0x7   : > { %2912 = vmatprep.subr.bf16.mxu0 (!%p173_p2), %v3122_v1  ;;  %2817 = vmatpush3.bf16.msra.mxu1 (!%p173_p2), %v3121_v0  ;;  %v3127_v6 = vld [vmem:[%s3843_s1 + $0x58] sm:$0xff] (!%p173_p2)   ;;  %v3129_v8 = vld [vmem:[%s3843_s1 + $0x60] sm:$0xff] (!%p173_p2)   ;;  %v3131_v10 = vld [vmem:[%s3843_s1 + $0x68] sm:$0xff] (!%p173_p2)   ;;  %vm673_vm3 = vcmask (!%p173_p2), 1042432   ;;  %vm674_vm4 = vcmask (!%p173_p2), 1046532  }
   0x8   : > { %2913 = vmatpush3.bf16.msra.mxu0 (!%p173_p2), %v3122_v1  ;;  %2818 = vmatprep.subr.bf16.mxu1 (!%p173_p2), %v3123_v2  ;;  %v3128_v7 = vld [vmem:[%s3843_s1 + $0x118] sm:$0xff] (!%p173_p2)   ;;  %v3130_v9 = vld [vmem:[%s3843_s1 + $0x120] sm:$0xff] (!%p173_p2)   ;;  %v3132_v14 = vld [vmem:[%s3843_s1 + $0x128] sm:$0xff] (!%p173_p2)  }
   0x9   : > { %2914 = vmatprep.subr.bf16.mxu0 (!%p173_p2), %v3124_v3  ;;  %v3133_v22 = vld [vmem:[%s3843_s1 + $0x70] sm:$0xff] (!%p173_p2)   ;;  %v3135_v37 = vld [vmem:[%s3843_s1 + $0x78] sm:$0xff] (!%p173_p2)   ;;  %vm3327_vm2 = vmor (!%p173_p2), %vm251_vm0, %vm252_vm1 }
   0xa   : > { %v3134_v23 = vld [vmem:[%s3843_s1 + $0x130] sm:$0xff] (!%p173_p2)   ;;  %v3136_v47 = vld [vmem:[%s3843_s1 + $0x138] sm:$0xff] (!%p173_p2)   ;;  %v3137_v63 = vld [vmem:[%s3843_s1] sm:$0xff] (!%p173_p2)  }
   0xb   : > { %2819 = vmatpush3.bf16.msra.mxu1 (!%p173_p2), %v3123_v2  ;;  %v3359_v1 = vld [vmem:[%s3843_s1 + $0x140] sm:$0xff] (!%p173_p2)   ;;  %vm3501_vm5 = vmor (!%p173_p2), %vm673_vm3, %vm674_vm4 }
   0xc   : > { %2915 = vmatpush3.bf16.msra.mxu0 (!%p173_p2), %v3124_v3  ;;  %2820 = vmatprep.subr.bf16.mxu1 (!%p173_p2), %v3125_v4  ;;  %v3201_v38 = vld [vmem:[%s3843_s1 + $0x220] sm:$0xff] (!%p173_p2)  }
   0xd   : > { %s3852_s16 = smov (!%p203_p3, %s2350_s16), 1  ;;  %2916 = vmatprep.subr.bf16.mxu0 %v3126_v5 }
   0xe   : > { %s3112_s7 = smul.u32 80, %s3852_s16  ;;  %s2688_s5 = sshll.u32 %s3852_s16, 6 }
   0xf   : > { %2821 = vmatpush3.bf16.msra.mxu1 %v3125_v4  ;;  %s3823_s8 = scalar_lea.vmem %s3846_s4, %s2688_s5 }
  0x10   : > { %2917 = vmatpush3.bf16.msra.mxu0 %v3126_v5  ;;  %2822 = vmatprep.subr.bf16.mxu1 %v3127_v6  ;;  %s3282_s14 = scalar_lea.vmem %s3842_s0, %s3112_s7 }
  0x11   : > { %2918 = vmatprep.subr.bf16.mxu0 %v3128_v7  ;;  %v3288_v11 = vld [vmem:[%s3282_s14] sm:$0xf]  ;;  %v3291_v12 = vld [vmem:[%s3282_s14 + $0x8] sm:$0xf]  ;;  %v3294_v13 = vld [vmem:[%s3282_s14 + $0x4] sm:$0x1] }
  0x12   : > { %v3300_v15 = vld [vmem:[%s3282_s14 + $0xc] sm:$0x1]  ;;  %v255_v16 = vshrl.u32 %v3288_v11, 16  ;;  %v258_v17 = vshll.u32 %v3288_v11, 16  ;;  %v264_v18 = vshll.u32 %v3294_v13, 16  ;;  %v269_v19 = vshrl.u32 %v3291_v12, 16 }
  0x13   : > { %2823 = vmatpush3.bf16.msra.mxu1 %v3127_v6  ;;  %v272_v20 = vshll.u32 %v3291_v12, 16  ;;  %v278_v21 = vshll.u32 %v3300_v15, 16  ;;  %v2472_v30 = vld [vmem:[%s3282_s14 + $0x8] sm:$0xf]  ;;  %v3316_v31 = vld [vmem:[%s3282_s14 + $0xc] sm:$0x1] }
  0x14   : > { %2919 = vmatpush3.bf16.msra.mxu0 %v3128_v7  ;;  %2824 = vmatprep.subr.bf16.mxu1 %v3129_v8  ;;  %v257_v24 = vrot.slane %v255_v16, 4  ;;  %v260_v25 = vrot.slane %v258_v17, 5  ;;  %v266_v26 = vrot.slane %v264_v18, 5  ;;  %v271_v27 = vrot.slane %v269_v19, 4  ;;  %v2474_v33 = vld [vmem:[%s3282_s14 + $0x10] sm:$0xf] }
  0x15   : > { %2920 = vmatprep.subr.bf16.mxu0 %v3130_v9  ;;  %v274_v28 = vrot.slane %v272_v20, 5  ;;  %v280_v29 = vrot.slane %v278_v21, 5  ;;  %v3320_v34 = vld [vmem:[%s3282_s14 + $0x14] sm:$0x1]  ;;  %v1050_v35 = vshrl.u32 %v2472_v30, 16  ;;  %v1053_v36 = vshll.u32 %v2472_v30, 16 }
  0x16   : > { %v261_v32 = vor.u32 %v260_v25, %v257_v24  ;;  %v1059_v40 = vshll.u32 %v3316_v31, 16  ;;  %v1064_v41 = vshrl.u32 %v2474_v33, 16  ;;  %v1067_v42 = vshll.u32 %v2474_v33, 16  ;;  %v3337_v51 = vld [vmem:[%s3282_s14 + $0x10] sm:$0xf] }
  0x17   : > { %2825 = vmatpush3.bf16.msra.mxu1 %v3129_v8  ;;  %v275_v39 = vor.u32 %v274_v28, %v271_v27  ;;  %v1052_v44 = vrot.slane %v1050_v35, 4  ;;  %v1055_v45 = vrot.slane %v1053_v36, 5  ;;  %v1073_v46 = vshll.u32 %v3320_v34, 16  ;;  %v3342_v55 = vld [vmem:[%s3282_s14 + $0x18] sm:$0xf] }
  0x18   : > { %2921 = vmatpush3.bf16.msra.mxu0 %v3130_v9  ;;  %2826 = vmatprep.subr.bf16.mxu1 %v3131_v10  ;;  %v262_v43 = vrot.slane %v261_v32, 4  ;;  %v1066_v49 = vrot.slane %v1064_v41, 4  ;;  %v1069_v50 = vrot.slane %v1067_v42, 5  ;;  %v1061_v54 = vrot.slane %v1059_v40, 5  ;;  %v3345_v56 = vld [vmem:[%s3282_s14 + $0x14] sm:$0x1] }
  0x19   : > { %2922 = vmatprep.subr.bf16.mxu0 %v3132_v14  ;;  %v276_v48 = vrot.slane %v275_v39, 4  ;;  %v1056_v53 = vor.u32 %v1055_v45, %v1052_v44  ;;  %v1075_v59 = vrot.slane %v1073_v46, 5  ;;  %v3350_v60 = vld [vmem:[%s3282_s14 + $0x1c] sm:$0x1]  ;;  %v283_v61 = vshrl.u32 %v3337_v51, 16 }
  0x1a   : > { %v267_v52 = vsel %vm3327_vm2, %v262_v43, %v266_v26  ;;  %v1070_v58 = vor.u32 %v1069_v50, %v1066_v49  ;;  %v286_v2 = vshll.u32 %v3337_v51, 16  ;;  %v292_v3 = vshll.u32 %v3345_v56, 16  ;;  %v2476_v8 = vld [vmem:[%s3282_s14 + $0x18] sm:$0xf]  ;;  %v3370_v16 = vld [vmem:[%s3282_s14 + $0x1c] sm:$0x1] }
  0x1b   : > { %2827 = vmatpush3.bf16.msra.mxu1 %v3131_v10  ;;  %v281_v57 = vsel %vm3327_vm2, %v276_v48, %v280_v29  ;;  %v1057_v0 = vrot.slane %v1056_v53, 4  ;;  %v285_v5 = vrot.slane %v283_v61, 4  ;;  %v297_v6 = vshrl.u32 %v3342_v55, 16  ;;  %v2478_v17 = vld [vmem:[%s3282_s14 + $0x20] sm:$0xf]  ;;  %v3139_v43 = vld [vmem:[%s3843_s1 + $0x8] sm:$0xff]  }
  0x1c   : > { %2923 = vmatpush3.bf16.msra.mxu0 %v3132_v14  ;;  %2828 = vmatprep.subr.bf16.mxu1 %v3133_v22  ;;  %v2376_v62 = vcombine.low %v267_v52, %v281_v57  ;;  %v1071_v4 = vrot.slane %v1070_v58, 4  ;;  %v300_v7 = vshll.u32 %v3342_v55, 16  ;;  %v288_v10 = vrot.slane %v286_v2, 5  ;;  %v3376_v21 = vld [vmem:[%s3282_s14 + $0x24] sm:$0x1] }
  0x1d   : > { %2924 = vmatprep.subr.bf16.mxu0 %v3134_v23  ;;  %v1062_v9 = vsel %vm3327_vm2, %v1057_v0, %v1061_v54  ;;  %v306_v14 = vshll.u32 %v3350_v60, 16  ;;  %v299_v19 = vrot.slane %v297_v6, 4  ;;  %v294_v24 = vrot.slane %v292_v3, 5  ;;  %v3140_v54 = vld [vmem:[%s3843_s1 + $0x148] sm:$0xff]   ;;  %v3406_v0 = vld [vmem:[%s3282_s14 + $0x24] sm:$0x1] }
  0x1e   : > { %2832 = vmatprep.mubr.bf16.mxu1 %v2376_v62  ;;  %v1076_v18 = vsel %vm3327_vm2, %v1071_v4, %v1075_v59  ;;  %v302_v20 = vrot.slane %v300_v7, 5  ;;  %v1078_v27 = vshrl.u32 %v2476_v8, 16  ;;  %v1081_v28 = vshll.u32 %v2476_v8, 16  ;;  %v3141_v59 = vld [vmem:[%s3843_s1 + $0x10] sm:$0xff]   ;;  %v3400_v62 = vld [vmem:[%s3282_s14 + $0x20] sm:$0xf] }
  0x1f   : > { %2829 = vmatpush3.bf16.msra.mxu1 %v3133_v22  ;;  %v2504_v22 = vcombine.low %v1062_v9, %v1076_v18  ;;  %v308_v25 = vrot.slane %v306_v14, 5  ;;  %v1087_v29 = vshll.u32 %v3370_v16, 16  ;;  %v1092_v32 = vshrl.u32 %v2478_v17, 16  ;;  %v3409_v2 = vld [vmem:[%s3282_s14 + $0x2c] sm:$0x1]  ;;  %v3142_v9 = vld [vmem:[%s3843_s1 + $0x150] sm:$0xff]  }
  0x20   : > { %2925 = vmatpush3.bf16.msra.mxu0 %v3134_v23  ;;  %2830 = vmatprep.subr.bf16.mxu1 %v3135_v37  ;;  %v289_v23 = vor.u32 %v288_v10, %v285_v5  ;;  %v303_v26 = vor.u32 %v302_v20, %v299_v19  ;;  %v1095_v33 = vshll.u32 %v2478_v17, 16  ;;  %v1101_v35 = vshll.u32 %v3376_v21, 16  ;;  %v3143_v10 = vld [vmem:[%s3843_s1 + $0x18] sm:$0xff]  }
  0x21   : > { %2926 = vmatprep.subr.bf16.mxu0 %v3136_v47  ;;  %2928 = vmatprep.mubr.bf16.mxu0 %v2504_v22  ;;  %v1083_v39 = vrot.slane %v1081_v28, 5  ;;  %v1094_v41 = vrot.slane %v1092_v32, 4  ;;  %v1089_v46 = vrot.slane %v1087_v29, 5  ;;  %v1341_v57 = vrot.slane %v3316_v31, 5  ;;  %v3144_v29 = vld [vmem:[%s3843_s1 + $0x158] sm:$0xff]  }
  0x22   : > { %v290_v30 = vrot.slane %v289_v23, 4  ;;  %v304_v36 = vrot.slane %v303_v26, 4  ;;  %v1097_v42 = vrot.slane %v1095_v33, 5  ;;  %v311_v3 = vshrl.u32 %v3400_v62, 16  ;;  %v2480_v23 = vld [vmem:[%s3282_s14 + $0x28] sm:$0xf] }
  0x23   : > { %2831 = vmatpush3.bf16.msra.mxu1 %v3135_v37  ;;  %v1080_v37 = vrot.slane %v1078_v27, 4  ;;  %v314_v4 = vshll.u32 %v3400_v62, 16  ;;  %v320_v5 = vshll.u32 %v3406_v0, 16  ;;  %v334_v8 = vshll.u32 %v3409_v2, 16  ;;  %v3430_v26 = vld [vmem:[%s3282_s14 + $0x34] sm:$0x1] }
  0x24   : > { %2927 = vmatpush3.bf16.msra.mxu0 %v3136_v47  ;;  %2840 = vmatprep.subr.bf16.mxu1 %v3137_v63  ;;  %v295_v40 = vsel %vm3327_vm2, %v290_v30, %v294_v24  ;;  %v309_v44 = vsel %vm3327_vm2, %v304_v36, %v308_v25  ;;  %v1103_v47 = vrot.slane %v1101_v35, 5  ;;  %v1098_v49 = vor.u32 %v1097_v42, %v1094_v41  ;;  %v3426_v24 = vld [vmem:[%s3282_s14 + $0x2c] sm:$0x1]  ;;  %v2482_v25 = vld [vmem:[%s3282_s14 + $0x30] sm:$0xf]  ;;  %v3145_v30 = vld [vmem:[%s3843_s1 + $0x20] sm:$0xff]  }
  0x25   : > { %2936 = vmatprep.subr.bf16.mxu0 %v3359_v1  ;;  %v1084_v45 = vor.u32 %v1083_v39, %v1080_v37  ;;  %v2377_v48 = vcombine.low %v295_v40, %v309_v44  ;;  %v313_v14 = vrot.slane %v311_v3, 4  ;;  %v316_v17 = vrot.slane %v314_v4, 5 }
  0x26   : > { %v1099_v52 = vrot.slane %v1098_v49, 4  ;;  %v322_v18 = vrot.slane %v320_v5, 5  ;;  %v336_v22 = vrot.slane %v334_v8, 5  ;;  %v1106_v27 = vshrl.u32 %v2480_v23, 16  ;;  %v2484_v5 = vld [vmem:[%s3282_s14 + $0x38] sm:$0xf] }
  0x27   : > { %v1085_v50 = vrot.slane %v1084_v45, 4  ;;  %2833 = vmatmul.mubr.bf16.vlgmr.msra.gmra.mrb[0].mxu1 %v2377_v48  ;;  %v1109_v28 = vshll.u32 %v2480_v23, 16  ;;  %v1115_v33 = vshll.u32 %v3426_v24, 16  ;;  %v1120_v35 = vshrl.u32 %v2482_v25, 16 }
  0x28   : > { %2841 = vmatpush3.bf16.msra.mxu1 %v3137_v63  ;;  %v1104_v58 = vsel %vm3327_vm2, %v1099_v52, %v1103_v47  ;;  %v3403_v63 = vld [vmem:[%s3282_s14 + $0x28] sm:$0xf]  ;;  %v1123_v36 = vshll.u32 %v2482_v25, 16  ;;  %v1108_v39 = vrot.slane %v1106_v27, 4  ;;  %v1129_v41 = vshll.u32 %v3430_v26, 16 }
  0x29   : > { %v1090_v53 = vsel %vm3327_vm2, %v1085_v50, %v1089_v46  ;;  %2842 = vmatprep.subr.bf16.mxu1 %v3139_v43  ;;  %v325_v6 = vshrl.u32 %v3403_v63, 16  ;;  %v328_v7 = vshll.u32 %v3403_v63, 16  ;;  %v1111_v40 = vrot.slane %v1109_v28, 5  ;;  %v3441_v46 = vld [vmem:[%s3282_s14 + $0x30] sm:$0xf] }
  0x2a   : > { %v2505_v61 = vcombine.low %v1090_v53, %v1104_v58  ;;  %v1122_v44 = vrot.slane %v1120_v35, 4  ;;  %v1125_v45 = vrot.slane %v1123_v36, 5  ;;  %v1131_v49 = vrot.slane %v1129_v41, 5  ;;  %v3446_v50 = vld [vmem:[%s3282_s14 + $0x38] sm:$0xf] }
  0x2b   : > { %v327_v19 = vrot.slane %v325_v6, 4  ;;  %v330_v20 = vrot.slane %v328_v7, 5  ;;  %v1112_v48 = vor.u32 %v1111_v40, %v1108_v39  ;;  %v3449_v52 = vld [vmem:[%s3282_s14 + $0x34] sm:$0x1]  ;;  %v339_v53 = vshrl.u32 %v3441_v46, 16  ;;  %v3147_v6 = vld [vmem:[%s3843_s1 + $0x28] sm:$0xff]  }
  0x2c   : > { %2929 = vmatmul.mubr.bf16.vlgmr.msra.gmra.mrb[0].mxu0 %v2505_v61  ;;  %2843 = vmatpush3.bf16.msra.mxu1 %v3139_v43  ;;  %v1117_v43 = vrot.slane %v1115_v33, 5  ;;  %v3458_v61 = vld [vmem:[%s3282_s14 + $0x3c] sm:$0x1]  ;;  %v342_v3 = vshll.u32 %v3441_v46, 16  ;;  %v348_v4 = vshll.u32 %v3449_v52, 16  ;;  %v1134_v28 = vshrl.u32 %v2484_v5, 16 }
  0x2d   : > { %2937 = vmatpush3.bf16.msra.mxu0 %v3359_v1  ;;  %2844 = vmatprep.subr.bf16.mxu1 %v3141_v59  ;;  %v317_v1 = vor.u32 %v316_v17, %v313_v14  ;;  %v331_v32 = vor.u32 %v330_v20, %v327_v19  ;;  %v1113_v8 = vrot.slane %v1112_v48, 4  ;;  %v353_v14 = vshrl.u32 %v3446_v50, 16  ;;  %v3468_v17 = vld [vmem:[%s3282_s14 + $0x3c] sm:$0x1]  ;;  %v3476_v27 = vld [vmem:[%s3282_s14 + $0x44] sm:$0x1] }
  0x2e   : > { %2938 = vmatprep.subr.bf16.mxu0 %v3140_v54  ;;  %v344_v19 = vrot.slane %v342_v3, 5  ;;  %v350_v20 = vrot.slane %v348_v4, 5  ;;  %v362_v25 = vshll.u32 %v3458_v61, 16  ;;  %v1137_v36 = vshll.u32 %v2484_v5, 16 }
  0x2f   : > { %v318_v37 = vrot.slane %v317_v1, 4  ;;  %v332_v42 = vrot.slane %v331_v32, 4  ;;  %v1118_v23 = vsel %vm3327_vm2, %v1113_v8, %v1117_v43  ;;  %v355_v1 = vrot.slane %v353_v14, 4 }
  0x30   : > { %2845 = vmatpush3.bf16.msra.mxu1 %v3141_v59  ;;  %v1126_v59 = vor.u32 %v1125_v45, %v1122_v44  ;;  %v364_v40 = vrot.slane %v362_v25, 5  ;;  %v1136_v41 = vrot.slane %v1134_v28, 4  ;;  %v1139_v45 = vrot.slane %v1137_v36, 5  ;;  %v2518_v25 = vld [vmem:[%s3282_s14 + $0x18] sm:$0xe] }
  0x31   : > { %2939 = vmatpush3.bf16.msra.mxu0 %v3140_v54  ;;  %2846 = vmatprep.subr.bf16.mxu1 %v3143_v10  ;;  %v323_v47 = vsel %vm3327_vm2, %v318_v37, %v322_v18  ;;  %v3146_v54 = vld [vmem:[%s3843_s1 + $0x160] sm:$0xff]   ;;  %v337_v58 = vsel %vm3327_vm2, %v332_v42, %v336_v22  ;;  %v356_v22 = vshll.u32 %v3446_v50, 16  ;;  %v3149_v37 = vld [vmem:[%s3843_s1 + $0x30] sm:$0xff]   ;;  %v1143_v42 = vshll.u32 %v3468_v17, 16  ;;  %v3152_v28 = vld [vmem:[%s3843_s1 + $0x178] sm:$0xff]  }
  0x32   : > { %2940 = vmatprep.subr.bf16.mxu0 %v3142_v9  ;;  %v2378_v7 = vcombine.low %v323_v47, %v337_v58  ;;  %v1127_v18 = vrot.slane %v1126_v59, 4  ;;  %v1345_v47 = vrot.slane %v3320_v34, 5  ;;  %v1349_v48 = vrot.slane %v3370_v16, 5  ;;  %v3150_v58 = vld [vmem:[%s3843_s1 + $0x170] sm:$0xff]  }
  0x33   : > { %v358_v35 = vrot.slane %v356_v22, 5  ;;  %v1140_v4 = vor.u32 %v1139_v45, %v1136_v41  ;;  %v1145_v34 = vrot.slane %v1143_v42, 5  ;;  %v1353_v22 = vrot.slane %v3376_v21, 5  ;;  %v3155_v41 = vld [vmem:[%s3843_s1 + $0x180] sm:$0xff]  }
  0x34   : > { %2847 = vmatpush3.bf16.msra.mxu1 %v3143_v10  ;;  %v341_v10 = vrot.slane %v339_v53, 4  ;;  %2836 = vmatprep.mubr.bf16.mxu1 %v2378_v7  ;;  %v1132_v32 = vsel %vm3327_vm2, %v1127_v18, %v1131_v49  ;;  %v1157_v53 = vshll.u32 %v3476_v27, 16  ;;  %v2516_v7 = vld [vmem:[%s3282_s14 + $0x8] sm:$0xe]  ;;  %v2526_v36 = vrot.slane %v2518_v25, 9 }
  0x35   : > { %2941 = vmatpush3.bf16.msra.mxu0 %v3142_v9  ;;  %2848 = vmatprep.subr.bf16.mxu1 %v3145_v30  ;;  %v2486_v9 = vld [vmem:[%s3282_s14 + $0x40] sm:$0xf]  ;;  %v2506_v39 = vcombine.low %v1118_v23, %v1132_v32  ;;  %v359_v44 = vor.u32 %v358_v35, %v355_v1  ;;  %v2524_v14 = vrot.slane %v2516_v7, 9  ;;  %v1141_v18 = vrot.slane %v1140_v4, 4 }
  0x36   : > { %2942 = vmatprep.subr.bf16.mxu0 %v3144_v29  ;;  %v345_v33 = vor.u32 %v344_v19, %v341_v10  ;;  %v1151_v49 = vshll.u32 %v2486_v9, 16  ;;  %v2517_v10 = vld [vmem:[%s3282_s14 + $0x10] sm:$0xe]  ;;  %v2388_v19 = vcombine.low %v3288_v11, %v3291_v12  ;;  %v1159_v1 = vrot.slane %v1157_v53, 5  ;;  %v2519_v12 = vld [vmem:[%s3282_s14 + $0x20] sm:$0xe] }
  0x37   : > { %2932 = vmatprep.mubr.bf16.mxu0 %v2506_v39  ;;  %v360_v3 = vrot.slane %v359_v44, 4  ;;  %v1342_v32 = vsel %vm3501_vm5, %v2524_v14, %v1341_v57  ;;  %v1146_v21 = vsel %vm3327_vm2, %v1141_v18, %v1145_v34  ;;  %v3154_v35 = vld [vmem:[%s3843_s1 + $0x80] sm:$0xff]   ;;  %v1350_v42 = vsel %vm3501_vm5, %v2526_v36, %v1349_v48  ;;  %v3159_v44 = vld [vmem:[%s3843_s1 + $0x90] sm:$0xff]  }
  0x38   : > { %2849 = vmatpush3.bf16.msra.mxu1 %v3145_v30  ;;  %v3148_v30 = vld [vmem:[%s3843_s1 + $0x168] sm:$0xff]   ;;  %v346_v43 = vrot.slane %v345_v33, 4  ;;  %v1153_v16 = vrot.slane %v1151_v49, 5  ;;  %v1357_v45 = vrot.slane %v3426_v24, 5  ;;  %v1365_v53 = vrot.slane %v3468_v17, 5  ;;  %v3163_v18 = vld [vmem:[%s3843_s1 + $0xa0] sm:$0xff]  }
  0x39   : > { %2943 = vmatpush3.bf16.msra.mxu0 %v3144_v29  ;;  %2850 = vmatprep.subr.bf16.mxu1 %v3147_v6  ;;  %v1148_v29 = vshrl.u32 %v2486_v9, 16  ;;  %v1369_v24 = vrot.slane %v3476_v27, 5  ;;  %v682_v34 = vrot.slane %v3300_v15, 5  ;;  %v686_v17 = vrot.slane %v3345_v56, 5  ;;  %v650_v15 = vld [vmem:[%s3282_s14 + $0x8] sm:$0xe] }
  0x3a   : > { %2944 = vmatprep.subr.bf16.mxu0 %v3146_v54  ;;  %v351_v59 = vsel %vm3327_vm2, %v346_v43, %v350_v20  ;;  %v2525_v20 = vrot.slane %v2517_v10, 9  ;;  %v3157_v43 = vld [vmem:[%s3843_s1 + $0x88] sm:$0xff]   ;;  %v3160_v10 = vld [vmem:[%s3843_s1 + $0x190] sm:$0xff]   ;;  %v2401_v14 = vrot.slane %v650_v15, 9  ;;  %v694_v36 = vrot.slane %v3406_v0, 5  ;;  %v3173_v0 = vld [vmem:[%s3843_s1 + $0xc0] sm:$0xff]  }
  0x3b   : > { %v1150_v5 = vrot.slane %v1148_v29, 4  ;;  %v1361_v29 = vrot.slane %v3430_v26, 5  ;;  %v2391_v26 = vcombine.low %v3441_v46, %v3446_v50  ;;  %v3161_v46 = vld [vmem:[%s3843_s1 + $0x98] sm:$0xff]   ;;  %v3178_v15 = vld [vmem:[%s3843_s1 + $0x1c8] sm:$0xff]  }
  0x3c   : > { %2851 = vmatpush3.bf16.msra.mxu1 %v3147_v6  ;;  %v3151_v6 = vld [vmem:[%s3843_s1 + $0x38] sm:$0xff]   ;;  %v1346_v11 = vsel %vm3501_vm5, %v2525_v20, %v1345_v47 }
  0x3d   : > { %2945 = vmatpush3.bf16.msra.mxu0 %v3146_v54  ;;  %2852 = vmatprep.subr.bf16.mxu1 %v3149_v37  ;;  %v365_v54 = vsel %vm3327_vm2, %v360_v3, %v364_v40  ;;  %v1154_v23 = vor.u32 %v1153_v16, %v1150_v5  ;;  %v2548_v57 = vcombine.low %v1342_v32, %v1346_v11  ;;  %v649_v16 = vld [vmem:[%s3282_s14] sm:$0xe]  ;;  %v3162_v20 = vld [vmem:[%s3843_s1 + $0x198] sm:$0xff]  }
  0x3e   : > { %2946 = vmatprep.subr.bf16.mxu0 %v3148_v30  ;;  %v2379_v9 = vcombine.low %v351_v59, %v365_v54  ;;  %v2389_v40 = vcombine.low %v3337_v51, %v3342_v55  ;;  %v2390_v51 = vcombine.low %v3400_v62, %v3403_v63  ;;  %v678_v55 = vrot.slane %v3294_v13, 5  ;;  %v3158_v62 = vld [vmem:[%s3843_s1 + $0x188] sm:$0xff]   ;;  %v2521_v63 = vld [vmem:[%s3282_s14 + $0x30] sm:$0xe]  ;;  %v2523_v59 = vld [vmem:[%s3282_s14 + $0x40] sm:$0xe] }
  0x3f   : > { %v1155_v33 = vrot.slane %v1154_v23, 4  ;;  %v2520_v13 = vld [vmem:[%s3282_s14 + $0x28] sm:$0xe]  ;;  %v2529_v49 = vrot.slane %v2521_v63, 9  ;;  %v2531_v7 = vrot.slane %v2523_v59, 9  ;;  %v2400_v56 = vrot.slane %v649_v16, 9 }
  0x40   : > { %2853 = vmatpush3.bf16.msra.mxu1 %v3149_v37  ;;  %v2527_v37 = vrot.slane %v2519_v12, 9  ;;  %v2528_v48 = vrot.slane %v2520_v13, 9  ;;  %v690_v54 = vrot.slane %v3350_v60, 5  ;;  %v651_v23 = vld [vmem:[%s3282_s14 + $0x10] sm:$0xe] }
  0x41   : > { %2947 = vmatpush3.bf16.msra.mxu0 %v3148_v30  ;;  %2837 = vmatmul.mubr.bf16.gmra.mrb[4].mxu1 %v2379_v9  ;;  %v1160_v31 = vsel %vm3327_vm2, %v1155_v33, %v1159_v1  ;;  %v1362_v4 = vsel %vm3501_vm5, %v2529_v49, %v1361_v29  ;;  %v683_v9 = vsel %vm3501_vm5, %v2401_v14, %v682_v34  ;;  %v652_v60 = vld [vmem:[%s3282_s14 + $0x18] sm:$0xe]  ;;  %v2402_v25 = vrot.slane %v651_v23, 9  ;;  %v3165_v33 = vld [vmem:[%s3843_s1 + $0xa8] sm:$0xff]  }
  0x42   : > { %2948 = vmatprep.subr.bf16.mxu0 %v3150_v58  ;;  %2854 = vmatprep.subr.bf16.mxu1 %v3151_v6  ;;  %v2507_v39 = vcombine.low %v1146_v21, %v1160_v31  ;;  %v1354_v30 = vsel %vm3501_vm5, %v2527_v37, %v1353_v22  ;;  %v1358_v3 = vsel %vm3501_vm5, %v2528_v48, %v1357_v45  ;;  %v3174_v32 = vld [vmem:[%s3282_s14 + $0x10] ss:$8 sps:$4 sm:$0xff]   ;;  %v702_v29 = vrot.slane %v3449_v52, 5  ;;  %v3177_v49 = vld [vmem:[%s3843_s1 + $0xc8] sm:$0xff]  }
  0x43   : > { %2856 = vmatprep.mubr.bf16.mxu1 %v2388_v19  ;;  %v2549_v47 = vcombine.low %v1350_v42, %v1354_v30  ;;  %v2550_v27 = vcombine.low %v1358_v3, %v1362_v4  ;;  %v679_v19 = vsel %vm3501_vm5, %v2400_v56, %v678_v55  ;;  %v687_v11 = vsel %vm3501_vm5, %v2402_v25, %v686_v17  ;;  %v3168_v31 = vld [vmem:[%s3843_s1 + $0xb0] sm:$0xff]   ;;  %v3171_v37 = vld [vmem:[%s3843_s1 + $0xb8] sm:$0xff]   ;;  %v2602_v25 = vld [vmem:[%s3282_s14 + $0x28] sm:$0xf] }
  0x44   : > { %2855 = vmatpush3.bf16.msra.mxu1 %v3151_v6  ;;  %2933 = vmatmul.mubr.bf16.gmra.mrb[4].mxu0 %v2507_v39  ;;  %v1370_v6 = vsel %vm3501_vm5, %v2531_v7, %v1369_v24  ;;  %v2424_v1 = vcombine.low %v679_v19, %v683_v9  ;;  %v653_v39 = vld [vmem:[%s3282_s14 + $0x20] sm:$0xe]  ;;  %v3172_v45 = vld [vmem:[%s3843_s1 + $0x1b8] sm:$0xff]   ;;  %v3640_v24 = vld [vmem:[%s3282_s14 + $0x14] sm:$0x1] }
  0x45   : > { %2949 = vmatpush3.bf16.msra.mxu0 %v3150_v58  ;;  %2864 = vmatprep.subr.bf16.mxu1 %v3154_v35  ;;  %v2522_v58 = vld [vmem:[%s3282_s14 + $0x38] sm:$0xe]  ;;  %v2404_v42 = vrot.slane %v653_v39, 9  ;;  %v1722_v59 = vshll.u32 %v3640_v24, 16  ;;  %v3176_v7 = vld [vmem:[%s3282_s14 + $0x20] ss:$8 sps:$4 sm:$0xff]  }
  0x46   : > { %2950 = vmatprep.subr.bf16.mxu0 %v3152_v28  ;;  %2952 = vmatprep.mubr.bf16.mxu0 %v2548_v57  ;;  %v2530_v5 = vrot.slane %v2522_v58, 9  ;;  %v3166_v57 = vld [vmem:[%s3843_s1 + $0x1a8] sm:$0xff]   ;;  %v2598_v52 = vld [vmem:[%s3282_s14 + $0x18] sm:$0xf]  ;;  %v3180_v9 = vld [vmem:[%s3843_s1 + $0x1d0] sm:$0xff]  }
  0x47   : > { %v1727_v3 = vshrl.u32 %v2598_v52, 16  ;;  %v1730_v4 = vshll.u32 %v2598_v52, 16  ;;  %v3187_v56 = vld [vmem:[%s3282_s14 + $0x30] ss:$8 sps:$4 sm:$0xff]   ;;  %v3186_v52 = vld [vmem:[%s3843_s1 + $0x1e8] sm:$0xff]  }
  0x48   : > { %v1366_v50 = vsel %vm3501_vm5, %v2530_v5, %v1365_v53  ;;  %v2596_v53 = vld [vmem:[%s3282_s14 + $0x10] sm:$0xf]  ;;  %v3181_v23 = vld [vmem:[%s3843_s1 + $0xd8] sm:$0xff]  }
  0x49   : > { %2951 = vmatpush3.bf16.msra.mxu0 %v3152_v28  ;;  %2857 = vmatmul.mubr.bf16.vlgmr.msra.gmra.mrb[0].mxu1 %v2389_v40  ;;  %v2551_v22 = vcombine.low %v1366_v50, %v1370_v6  ;;  %v2403_v28 = vrot.slane %v652_v60, 9  ;;  %v654_v40 = vld [vmem:[%s3282_s14 + $0x28] sm:$0xe]  ;;  %v1716_v58 = vshll.u32 %v2596_v53, 16  ;;  %v1729_v50 = vrot.slane %v1727_v3, 4 }
  0x4a   : > { %2960 = vmatprep.subr.bf16.mxu0 %v3155_v41  ;;  %2865 = vmatpush3.bf16.msra.mxu1 %v3154_v35  ;;  %v3164_v35 = vld [vmem:[%s3843_s1 + $0x1a0] sm:$0xff]   ;;  %v2405_v30 = vrot.slane %v654_v40, 9  ;;  %v1732_v6 = vrot.slane %v1730_v4, 5 }
  0x4b   : > { %2866 = vmatprep.subr.bf16.mxu1 %v3157_v43  ;;  %2860 = vmatprep.mubr.bf16.mxu1 %v2390_v51  ;;  %v691_v12 = vsel %vm3501_vm5, %v2403_v28, %v690_v54  ;;  %v655_v51 = vld [vmem:[%s3282_s14 + $0x30] sm:$0xe]  ;;  %v1718_v16 = vrot.slane %v1716_v58, 5  ;;  %v1724_v54 = vrot.slane %v1722_v59, 5 }
  0x4c   : > { %2953 = vmatmul.mubr.bf16.vlgmr.msra.gmra.mrb[0].mxu0 %v2549_v47  ;;  %v2425_v21 = vcombine.low %v687_v11, %v691_v12  ;;  %v706_v47 = vrot.slane %v3458_v61, 5  ;;  %v2406_v63 = vrot.slane %v655_v51, 9  ;;  %v3644_v61 = vld [vmem:[%s3282_s14 + $0x1c] sm:$0x1]  ;;  %v3189_v11 = vld [vmem:[%s3282_s14 + $0x40] ss:$8 sps:$4 sm:$0xff]  }
  0x4d   : > { %2961 = vmatpush3.bf16.msra.mxu0 %v3155_v41  ;;  %2956 = vmatprep.mubr.bf16.mxu0 %v2550_v27  ;;  %v698_v41 = vrot.slane %v3409_v2, 5  ;;  %v695_v2 = vsel %vm3501_vm5, %v2404_v42, %v694_v36  ;;  %v1736_v5 = vshll.u32 %v3644_v61, 16  ;;  %v2604_v12 = vld [vmem:[%s3282_s14 + $0x30] sm:$0xf]  ;;  %v1758_v36 = vshll.u32 %v2602_v25, 16 }
  0x4e   : > { %2867 = vmatpush3.bf16.msra.mxu1 %v3157_v43  ;;  %2962 = vmatprep.subr.bf16.mxu0 %v3158_v62  ;;  %v3169_v43 = vld [vmem:[%s3843_s1 + $0x1b0] sm:$0xff]   ;;  %v703_v34 = vsel %vm3501_vm5, %v2406_v63, %v702_v29  ;;  %v1769_v40 = vshrl.u32 %v2604_v12, 16  ;;  %v3689_v51 = vld [vmem:[%s3282_s14 + $0x24] sm:$0x1] }
  0x4f   : > { %2868 = vmatprep.subr.bf16.mxu1 %v3159_v44  ;;  %v699_v55 = vsel %vm3501_vm5, %v2405_v30, %v698_v41  ;;  %v1738_v19 = vrot.slane %v1736_v5, 5  ;;  %v1772_v41 = vshll.u32 %v2604_v12, 16  ;;  %v1760_v29 = vrot.slane %v1758_v36, 5  ;;  %v2610_v5 = vld [vmem:[%s3282_s14 + $0x48] sm:$0xf]  ;;  %v3192_v12 = vld [vmem:[%s3843_s1 + $0x1f8] sm:$0xff]  }
  0x50   : > { %v2426_v13 = vcombine.low %v695_v2, %v699_v55  ;;  %v3692_v2 = vld [vmem:[%s3282_s14 + $0x2c] sm:$0x1]  ;;  %v1750_v58 = vshll.u32 %v3689_v51, 16 }
  0x51   : > { %2861 = vmatmul.mubr.bf16.gmra.mrb[4].mxu1 %v2391_v26  ;;  %2963 = vmatpush3.bf16.msra.mxu0 %v3158_v62  ;;  %v3175_v62 = vld [vmem:[%s3843_s1 + $0x1c0] sm:$0xff]   ;;  %v1713_v26 = vshrl.u32 %v2596_v53, 16  ;;  %v1774_v63 = vrot.slane %v1772_v41, 5  ;;  %v1764_v59 = vshll.u32 %v3692_v2, 16 }
  0x52   : > { %2869 = vmatpush3.bf16.msra.mxu1 %v3159_v44  ;;  %2964 = vmatprep.subr.bf16.mxu0 %v3160_v10  ;;  %v656_v44 = vld [vmem:[%s3282_s14 + $0x38] sm:$0xe]  ;;  %v2608_v53 = vld [vmem:[%s3282_s14 + $0x40] sm:$0xf] }
  0x53   : > { %2870 = vmatprep.subr.bf16.mxu1 %v3161_v46  ;;  %2880 = vmatprep.mubr.bf16.mxu1 %v2424_v1  ;;  %v2407_v48 = vrot.slane %v656_v44, 9  ;;  %v1715_v27 = vrot.slane %v1713_v26, 4  ;;  %v2600_v1 = vld [vmem:[%s3282_s14 + $0x20] sm:$0xf]  ;;  %v3188_v26 = vld [vmem:[%s3843_s1 + $0xf0] sm:$0xff]  }
  0x54   : > { %2957 = vmatmul.mubr.bf16.gmra.mrb[4].mxu0 %v2551_v22 }
  0x55   : > { %2965 = vmatpush3.bf16.msra.mxu0 %v3160_v10  ;;  %2976 = vmatprep.mubr.bf16.mxu0 %v3174_v32  ;;  %v707_v17 = vsel %vm3501_vm5, %v2407_v48, %v706_v47  ;;  %v1719_v10 = vor.u32 %v1718_v16, %v1715_v27  ;;  %v3695_v47 = vld [vmem:[%s3282_s14 + $0x34] sm:$0x1]  ;;  %v1800_v27 = vshll.u32 %v2608_v53, 16 }
  0x56   : > { %2871 = vmatpush3.bf16.msra.mxu1 %v3161_v46  ;;  %2966 = vmatprep.subr.bf16.mxu0 %v3162_v20  ;;  %v3179_v46 = vld [vmem:[%s3843_s1 + $0xd0] sm:$0xff]   ;;  %v2427_v14 = vcombine.low %v703_v34, %v707_v17  ;;  %v1778_v3 = vshll.u32 %v3695_v47, 16  ;;  %v1797_v17 = vshrl.u32 %v2608_v53, 16  ;;  %v2641_v53 = vld [vmem:[%s3282_s14 + $0x18] sm:$0xe] }
  0x57   : > { %2872 = vmatprep.subr.bf16.mxu1 %v3163_v18  ;;  %v1720_v22 = vrot.slane %v1719_v10, 4 }
  0x59   : > { %2967 = vmatpush3.bf16.msra.mxu0 %v3162_v20  ;;  %v3193_v20 = vld [vmem:[%s3282_s14 + $0x8] ss:$8 sps:$4 sm:$0xff]   ;;  %v1725_v28 = vsel %vm3327_vm2, %v1720_v22, %v1724_v54 }
  0x5a   : > { %2873 = vmatpush3.bf16.msra.mxu1 %v3163_v18  ;;  %2968 = vmatprep.subr.bf16.mxu0 %v3164_v35  ;;  %v1733_v18 = vor.u32 %v1732_v6, %v1729_v50  ;;  %v1811_v50 = vshrl.u32 %v2610_v5, 16  ;;  %v1814_v6 = vshll.u32 %v2610_v5, 16  ;;  %v2649_v5 = vrot.slane %v2641_v53, 9 }
  0x5b   : > { %2874 = vmatprep.subr.bf16.mxu1 %v3165_v33 }
  0x5c   : > { %v1734_v60 = vrot.slane %v1733_v18, 4  ;;  %v1766_v18 = vrot.slane %v1764_v59, 5  ;;  %v3198_v59 = vld [vmem:[%s3282_s14 + $0x38] ss:$8 sps:$4 sm:$0xff]  }
  0x5d   : > { %2969 = vmatpush3.bf16.msra.mxu0 %v3164_v35  ;;  %v1741_v35 = vshrl.u32 %v2600_v1, 16 }
  0x5e   : > { %2875 = vmatpush3.bf16.msra.mxu1 %v3165_v33  ;;  %2970 = vmatprep.subr.bf16.mxu0 %v3166_v57  ;;  %v1739_v32 = vsel %vm3327_vm2, %v1734_v60, %v1738_v19  ;;  %v3183_v33 = vld [vmem:[%s3843_s1 + $0xe0] sm:$0xff]   ;;  %v3722_v60 = vld [vmem:[%s3282_s14 + $0x4c] sm:$0x1] }
  0x5f   : > { %2876 = vmatprep.subr.bf16.mxu1 %v3168_v31  ;;  %v2628_v39 = vcombine.low %v1725_v28, %v1739_v32  ;;  %v1743_v55 = vrot.slane %v1741_v35, 4  ;;  %v1813_v28 = vrot.slane %v1811_v50, 4  ;;  %v1816_v32 = vrot.slane %v1814_v6, 5  ;;  %v3194_v35 = vld [vmem:[%s3282_s14 + $0x18] ss:$8 sps:$4 sm:$0xff]   ;;  %v3202_v6 = vld [vmem:[%s3843_s1 + $0x228] sm:$0xff]  }
  0x61   : > { %2971 = vmatpush3.bf16.msra.mxu0 %v3166_v57  ;;  %v1755_v57 = vshrl.u32 %v2602_v25, 16  ;;  %v1802_v25 = vrot.slane %v1800_v27, 5 }
  0x62   : > { %2877 = vmatpush3.bf16.msra.mxu1 %v3168_v31  ;;  %2972 = vmatprep.subr.bf16.mxu0 %v3169_v43  ;;  %v1744_v31 = vshll.u32 %v2600_v1, 16  ;;  %v1799_v1 = vrot.slane %v1797_v17, 4 }
  0x63   : > { %2878 = vmatprep.subr.bf16.mxu1 %v3171_v37 }
  0x64   : > { %v1746_v44 = vrot.slane %v1744_v31, 5 }
  0x65   : > { %2973 = vmatpush3.bf16.msra.mxu0 %v3169_v43  ;;  %v3184_v43 = vld [vmem:[%s3843_s1 + $0x1e0] sm:$0xff]  }
  0x66   : > { %2879 = vmatpush3.bf16.msra.mxu1 %v3171_v37  ;;  %2974 = vmatprep.subr.bf16.mxu0 %v3172_v45  ;;  %v3182_v37 = vld [vmem:[%s3843_s1 + $0x1d8] sm:$0xff]  }
  0x67   : > { %2888 = vmatprep.subr.bf16.mxu1 %v3173_v0 }
  0x69   : > { %2881 = vmatmul.mubr.bf16.vlgmr.msra.gmra.mrb[0].mxu1 %v2425_v21  ;;  %2975 = vmatpush3.bf16.msra.mxu0 %v3172_v45  ;;  %v2606_v21 = vld [vmem:[%s3282_s14 + $0x38] sm:$0xf]  ;;  %v1757_v45 = vrot.slane %v1755_v57, 4 }
  0x6a   : > { %2889 = vmatpush3.bf16.msra.mxu1 %v3173_v0  ;;  %2884 = vmatprep.mubr.bf16.mxu1 %v2426_v13  ;;  %v1783_v42 = vshrl.u32 %v2606_v21, 16  ;;  %v1786_v30 = vshll.u32 %v2606_v21, 16  ;;  %v3185_v0 = vld [vmem:[%s3843_s1 + $0xe8] sm:$0xff]   ;;  %v1771_v13 = vrot.slane %v1769_v40, 4  ;;  %v2644_v21 = vld [vmem:[%s3282_s14 + $0x30] sm:$0xe] }
  0x6b   : > { %2890 = vmatprep.subr.bf16.mxu1 %v3177_v49  ;;  %2984 = vmatprep.subr.bf16.mxu0 %v3175_v62  ;;  %v1761_v34 = vor.u32 %v1760_v29, %v1757_v45 }
  0x6c   : > { %2977 = vmatmul.mubr.bf16.vlgmr.msra.gmra.mrb[0].mxu0 %v3176_v7  ;;  %v1785_v48 = vrot.slane %v1783_v42, 4  ;;  %v1747_v7 = vor.u32 %v1746_v44, %v1743_v55  ;;  %v1775_v16 = vor.u32 %v1774_v63, %v1771_v13  ;;  %v1803_v42 = vor.u32 %v1802_v25, %v1799_v1 }
  0x6d   : > { %2985 = vmatpush3.bf16.msra.mxu0 %v3175_v62  ;;  %2980 = vmatprep.mubr.bf16.mxu0 %v3187_v56  ;;  %v3698_v62 = vld [vmem:[%s3282_s14 + $0x3c] sm:$0x1]  ;;  %v3190_v56 = vld [vmem:[%s3843_s1 + $0x1f0] sm:$0xff]   ;;  %v1762_v54 = vrot.slane %v1761_v34, 4  ;;  %v2020_v55 = vrot.slane %v3695_v47, 5  ;;  %v2012_v25 = vrot.slane %v3689_v51, 5 }
  0x6e   : > { %2891 = vmatpush3.bf16.msra.mxu1 %v3177_v49  ;;  %2986 = vmatprep.subr.bf16.mxu0 %v3178_v15  ;;  %v1788_v49 = vrot.slane %v1786_v30, 5  ;;  %v1792_v4 = vshll.u32 %v3698_v62, 16  ;;  %v1748_v10 = vrot.slane %v1747_v7, 4  ;;  %v1776_v19 = vrot.slane %v1775_v16, 4  ;;  %v3200_v16 = vld [vmem:[%s3843_s1 + $0x218] sm:$0xff]  }
  0x6f   : > { %2892 = vmatprep.subr.bf16.mxu1 %v3179_v46  ;;  %v1767_v57 = vsel %vm3327_vm2, %v1762_v54, %v1766_v18  ;;  %v1817_v30 = vor.u32 %v1816_v32, %v1813_v28  ;;  %v2024_v45 = vrot.slane %v3698_v62, 5  ;;  %v2008_v7 = vrot.slane %v3644_v61, 5 }
  0x70   : > { %v2032_v54 = vrot.slane %v3722_v60, 5  ;;  %v2016_v32 = vrot.slane %v3692_v2, 5 }
  0x71   : > { %2885 = vmatmul.mubr.bf16.gmra.mrb[4].mxu1 %v2427_v14  ;;  %2987 = vmatpush3.bf16.msra.mxu0 %v3178_v15  ;;  %v3191_v15 = vld [vmem:[%s3843_s1 + $0xf8] sm:$0xff]   ;;  %v1752_v14 = vrot.slane %v1750_v58, 5  ;;  %v3199_v58 = vld [vmem:[%s3843_s1 + $0x210] sm:$0xff]   ;;  %v2009_v61 = vsel %vm3501_vm5, %v2649_v5, %v2008_v7 }
  0x72   : > { %2893 = vmatpush3.bf16.msra.mxu1 %v3179_v46  ;;  %2904 = vmatprep.mubr.bf16.mxu1 %v3193_v20  ;;  %v1789_v46 = vor.u32 %v1788_v49, %v1785_v48  ;;  %v1780_v20 = vrot.slane %v1778_v3, 5  ;;  %v2640_v49 = vld [vmem:[%s3282_s14 + $0x10] sm:$0xe] }
  0x73   : > { %2894 = vmatprep.subr.bf16.mxu1 %v3181_v23  ;;  %2988 = vmatprep.subr.bf16.mxu0 %v3180_v9  ;;  %v1753_v31 = vsel %vm3327_vm2, %v1748_v10, %v1752_v14  ;;  %v2648_v3 = vrot.slane %v2640_v49, 9  ;;  %v2647_v10 = vld [vmem:[%s3282_s14 + $0x48] sm:$0xe] }
  0x74   : > { %2981 = vmatmul.mubr.bf16.gmra.mrb[4].mxu0 %v3189_v11  ;;  %v1790_v22 = vrot.slane %v1789_v46, 4  ;;  %v3195_v11 = vld [vmem:[%s3843_s1 + $0x200] sm:$0xff]   ;;  %v1781_v40 = vsel %vm3327_vm2, %v1776_v19, %v1780_v20  ;;  %v2629_v29 = vcombine.low %v1753_v31, %v1767_v57  ;;  %v2655_v19 = vrot.slane %v2647_v10, 9  ;;  %v3204_v20 = vld [vmem:[%s3843_s1 + $0x238] sm:$0xff]  }
  0x75   : > { %2989 = vmatpush3.bf16.msra.mxu0 %v3180_v9  ;;  %3000 = vmatprep.mubr.bf16.mxu0 %v2628_v39  ;;  %v1794_v9 = vrot.slane %v1792_v4, 5  ;;  %v3197_v39 = vld [vmem:[%s3282_s14 + $0x28] ss:$8 sps:$4 sm:$0xff]   ;;  %v2004_v4 = vrot.slane %v3640_v24, 5 }
  0x76   : > { %2895 = vmatpush3.bf16.msra.mxu1 %v3181_v23  ;;  %2990 = vmatprep.subr.bf16.mxu0 %v3182_v37  ;;  %v3719_v23 = vld [vmem:[%s3282_s14 + $0x44] sm:$0x1] }
  0x77   : > { %2896 = vmatprep.subr.bf16.mxu1 %v3183_v33  ;;  %v1806_v36 = vshll.u32 %v3719_v23, 16  ;;  %v1795_v41 = vsel %vm3327_vm2, %v1790_v22, %v1794_v9  ;;  %v2005_v24 = vsel %vm3501_vm5, %v2648_v3, %v2004_v4  ;;  %v2028_v14 = vrot.slane %v3719_v23, 5  ;;  %v2642_v22 = vld [vmem:[%s3282_s14 + $0x20] sm:$0xe]  ;;  %v2643_v9 = vld [vmem:[%s3282_s14 + $0x28] sm:$0xe] }
  0x78   : > { %v2630_v13 = vcombine.low %v1781_v40, %v1795_v41  ;;  %v2672_v50 = vcombine.low %v2005_v24, %v2009_v61  ;;  %v2033_v23 = vsel %vm3501_vm5, %v2655_v19, %v2032_v54  ;;  %v2651_v28 = vrot.slane %v2643_v9, 9 }
  0x79   : > { %2991 = vmatpush3.bf16.msra.mxu0 %v3182_v37  ;;  %v1820_v37 = vshll.u32 %v3722_v60, 16  ;;  %v1808_v63 = vrot.slane %v1806_v36, 5  ;;  %v2650_v60 = vrot.slane %v2642_v22, 9 }
  0x7a   : > { %2897 = vmatpush3.bf16.msra.mxu1 %v3183_v33  ;;  %2992 = vmatprep.subr.bf16.mxu0 %v3184_v43  ;;  %v2645_v33 = vld [vmem:[%s3282_s14 + $0x38] sm:$0xe] }
  0x7b   : > { %2898 = vmatprep.subr.bf16.mxu1 %v3185_v0  ;;  %v2653_v44 = vrot.slane %v2645_v33, 9  ;;  %v1822_v48 = vrot.slane %v1820_v37, 5 }
  0x7d   : > { %2993 = vmatpush3.bf16.msra.mxu0 %v3184_v43  ;;  %v3196_v43 = vld [vmem:[%s3843_s1 + $0x208] sm:$0xff]   ;;  %v2025_v62 = vsel %vm3501_vm5, %v2653_v44, %v2024_v45 }
  0x7e   : > { %2899 = vmatpush3.bf16.msra.mxu1 %v3185_v0  ;;  %2994 = vmatprep.subr.bf16.mxu0 %v3186_v52  ;;  %v2652_v0 = vrot.slane %v2644_v21, 9  ;;  %v2017_v21 = vsel %vm3501_vm5, %v2651_v28, %v2016_v32 }
  0x7f   : > { %2900 = vmatprep.subr.bf16.mxu1 %v3188_v26 }
  0x80   : > { %v2021_v47 = vsel %vm3501_vm5, %v2652_v0, %v2020_v55 }
  0x81   : > { %2995 = vmatpush3.bf16.msra.mxu0 %v3186_v52  ;;  %v1804_v52 = vrot.slane %v1803_v42, 4  ;;  %v2674_v34 = vcombine.low %v2021_v47, %v2025_v62 }
  0x82   : > { %2901 = vmatpush3.bf16.msra.mxu1 %v3188_v26  ;;  %2996 = vmatprep.subr.bf16.mxu0 %v3190_v56  ;;  %v1818_v26 = vrot.slane %v1817_v30, 4 }
  0x83   : > { %2902 = vmatprep.subr.bf16.mxu1 %v3191_v15  ;;  %v1809_v17 = vsel %vm3327_vm2, %v1804_v52, %v1808_v63 }
  0x84   : > { %v1823_v27 = vsel %vm3327_vm2, %v1818_v26, %v1822_v48 }
  0x85   : > { %2997 = vmatpush3.bf16.msra.mxu0 %v3190_v56  ;;  %v2631_v46 = vcombine.low %v1809_v17, %v1823_v27  ;;  %v2646_v56 = vld [vmem:[%s3282_s14 + $0x40] sm:$0xe]  ;;  %s2687_s14 = sshll.u32 %s3852_s16, 5 }
  0x86   : > { %2903 = vmatpush3.bf16.msra.mxu1 %v3191_v15  ;;  %2998 = vmatprep.subr.bf16.mxu0 %v3192_v12  ;;  %v3203_v15 = vld [vmem:[%s3843_s1 + $0x230] sm:$0xff]   ;;  %v2654_v18 = vrot.slane %v2646_v56, 9  ;;  %s212_s28 = scalar_lea.vmem %s3845_s3, %s2687_s14 }
  0x87   : > { %3032 = vmatprep.subr.bf16.mxu1 %v3195_v11  ;;  %v3804_v44 = vld [vmem:[%s212_s28 + $0x8] sm:$0xff]   ;;  %v2707_v45 = vld [vmem:[%s212_s28 + $0x18] sm:$0xff]   ;;  %v3811_v48 = vld [vmem:[%s212_s28 + $0x10] sm:$0xff]  }
  0x88   : > { %v2029_v1 = vsel %vm3501_vm5, %v2654_v18, %v2028_v14  ;;  %v2695_v52 = vunpack.c.l.bf16 %v3804_v44  ;;  %v2703_v26 = vunpack.c.l.bf16 %v2707_v45  ;;  %v2699_v3 = vunpack.c.l.bf16 %v3811_v48 }
  0x89   : > { %2905 = vmatmul.mubr.bf16.vlgmr.msra.gmra.mrb[0].mxu1 %v3194_v35  ;;  %2999 = vmatpush3.bf16.msra.mxu0 %v3192_v12  ;;  %v2013_v12 = vsel %vm3501_vm5, %v2650_v60, %v2012_v25  ;;  %v2696_v4 = vunpack.c.h.bf16 %v3804_v44  ;;  %v2704_v17 = vunpack.c.h.bf16 %v2707_v45 }
  0x8a   : > { %3040 = vmatpush3.bf16.msra.mxu1 %v3195_v11  ;;  %2908 = vmatprep.mubr.bf16.mxu1 %v3197_v39  ;;  %v2673_v33 = vcombine.low %v2013_v12, %v2017_v21 }
  0x8b   : > { %3033 = vmatprep.subr.bf16.mxu1 %v3196_v43  ;;  %3008 = vmatprep.subr.bf16.mxu0 %v3195_v11 }
  0x8c   : > { %3001 = vmatmul.mubr.bf16.vlgmr.msra.gmra.mrb[0].mxu0 %v2629_v29  ;;  %v3806_v29 = vld [vmem:[%s212_s28] sm:$0xff]  }
  0x8d   : > { %3009 = vmatpush3.bf16.msra.mxu0 %v3195_v11  ;;  %3004 = vmatprep.mubr.bf16.mxu0 %v2630_v13  ;;  %v2675_v11 = vcombine.low %v2029_v1, %v2033_v23  ;;  %v2684_v13 = vld [vmem:[%s3844_s2] ss:$0 sm:$0xff]  ;;  %v2691_v47 = vunpack.c.l.bf16 %v3806_v29  ;;  %v2692_v27 = vunpack.c.h.bf16 %v3806_v29 }
  0x8e   : > { %3041 = vmatpush3.bf16.msra.mxu1 %v3196_v43  ;;  %3010 = vmatprep.subr.bf16.mxu0 %v3196_v43 }
  0x8f   : > { %3034 = vmatprep.subr.bf16.mxu1 %v3199_v58 }
  0x91   : > { %2909 = vmatmul.mubr.bf16.gmra.mrb[4].mxu1 %v3198_v59  ;;  %3011 = vmatpush3.bf16.msra.mxu0 %v3196_v43 }
  0x92   : > { %3042 = vmatpush3.bf16.msra.mxu1 %v3199_v58  ;;  %3028 = vmatprep.mubr.bf16.mxu1 %v2674_v34 }
  0x93   : > { %3035 = vmatprep.subr.bf16.mxu1 %v3200_v16  ;;  %3012 = vmatprep.subr.bf16.mxu0 %v3199_v58 }
  0x94   : > { %3005 = vmatmul.mubr.bf16.gmra.mrb[4].mxu0 %v2631_v46 }
  0x95   : > { %3013 = vmatpush3.bf16.msra.mxu0 %v3199_v58  ;;  %3024 = vmatprep.mubr.bf16.mxu0 %v2672_v50 }
  0x96   : > { %3043 = vmatpush3.bf16.msra.mxu1 %v3200_v16  ;;  %3014 = vmatprep.subr.bf16.mxu0 %v3200_v16 }
  0x97   : > { %3036 = vmatprep.subr.bf16.mxu1 %v3201_v38 }
  0x99   : > { %3015 = vmatpush3.bf16.msra.mxu0 %v3200_v16 }
  0x9a   : > { %3044 = vmatpush3.bf16.msra.mxu1 %v3201_v38  ;;  %3016 = vmatprep.subr.bf16.mxu0 %v3201_v38 }
  0x9b   : > { %3037 = vmatprep.subr.bf16.mxu1 %v3202_v6 }
  0x9d   : > { %3017 = vmatpush3.bf16.msra.mxu0 %v3201_v38  ;;  %v2700_v38 = vunpack.c.h.bf16 %v3811_v48 }
  0x9e   : > { %3045 = vmatpush3.bf16.msra.mxu1 %v3202_v6  ;;  %3018 = vmatprep.subr.bf16.mxu0 %v3202_v6 }
  0x9f   : > { %3038 = vmatprep.subr.bf16.mxu1 %v3203_v15 }
  0xa1   : > { %3019 = vmatpush3.bf16.msra.mxu0 %v3202_v6 }
  0xa2   : > { %3046 = vmatpush3.bf16.msra.mxu1 %v3203_v15  ;;  %3020 = vmatprep.subr.bf16.mxu0 %v3203_v15 }
  0xa3   : > { %3039 = vmatprep.subr.bf16.mxu1 %v3204_v20 }
  0xa5   : > { %3021 = vmatpush3.bf16.msra.mxu0 %v3203_v15 }
  0xa6   : > { %3047 = vmatpush3.bf16.msra.mxu1 %v3204_v20  ;;  %3022 = vmatprep.subr.bf16.mxu0 %v3204_v20 }
  0xa9   : > { %3029 = vmatmul.mubr.bf16.vlgmr.msra.gmra.mrb[8].mxu1 %v2675_v11  ;;  %3023 = vmatpush3.bf16.msra.mxu0 %v3204_v20 }
  0xac   : > { %3025 = vmatmul.mubr.bf16.vlgmr.msra.gmra.mrb[0].mxu0 %v2673_v33 }
 0x15c   : > { %v2906_v35 = vpop.f32.mrb[0].mxu1 }
 0x15d   : > { %v994_v51 = vpop.f32.mrb[1].mxu1 }
 0x15e   : > { %v2907_v31 = vpop.f32.mrb[2].mxu1 }
 0x15f   : > { %v997_v2 = vpop.f32.mrb[3].mxu1 }
 0x164   : > { %v2910_v57 = vpop.f32.mrb[4].mxu1 }
 0x165   : > { %v1010_v36 = vpop.f32.mrb[5].mxu1 }
 0x166   : > { %v2911_v37 = vpop.f32.mrb[6].mxu1 }
 0x167   : > { %v1013_v39 = vpop.f32.mrb[7].mxu1  ;;  %v3006_v40 = vpop.f32.mrb[4].mxu0 }
 0x168   : > { %v3052_v41 = vadd.f32 %v3006_v40, %v2910_v57  ;;  %v1955_v42 = vpop.f32.mrb[5].mxu0 }
 0x169   : > { %v3054_v30 = vadd.f32 %v1955_v42, %v1010_v36  ;;  %v3007_v8 = vpop.f32.mrb[6].mxu0 }
 0x16a   : > { %v3056_v43 = vadd.f32 %v3007_v8, %v2911_v37  ;;  %v1958_v0 = vpop.f32.mrb[7].mxu0 }
 0x16b   : > { %v3058_v55 = vadd.f32 %v1958_v0, %v1013_v39 }
 0x17c   : > { %v3030_v63 = vpop.f32.mrb[8].mxu1 }
 0x17d   : > { %v3053_v49 = vadd.f32 %v3052_v41, %v3030_v63  ;;  %v2165_v53 = vpop.f32.mrb[9].mxu1 }
 0x17e   : > { %v3055_v62 = vadd.f32 %v3054_v30, %v2165_v53  ;;  %v3031_v58 = vpop.f32.mrb[10].mxu1 }
 0x17f   : > { %v2201_v59 = vadd.f32 %v3053_v49, %v2684_v13  ;;  %v3057_v5 = vadd.f32 %v3056_v43, %v3031_v58  ;;  %v2168_v7 = vpop.f32.mrb[11].mxu1  ;;  %v3026_v24 = vpop.f32.mrb[0].mxu0 }
 0x180   : > { %v2199_v34 = vadd.f32 %v3055_v62, %v2684_v13  ;;  %v3059_v16 = vadd.f32 %v3058_v55, %v2168_v7  ;;  %v3048_v50 = vadd.f32 %v3026_v24, %v2906_v35  ;;  %v2149_v6 = vpop.f32.mrb[1].mxu0 }
 0x181   : > { %vm2209_vm6 = vcmp.ge.f32.partialorder %v2201_v59, 0.0  ;;  %v2217_v61 = vmul.f32 0.1, %v2201_v59  ;;  %v2202_v46 = vadd.f32 %v3057_v5, %v2684_v13  ;;  %v3049_v14 = vadd.f32 %v2149_v6, %v994_v51  ;;  %v3027_v54 = vpop.f32.mrb[2].mxu0 }
 0x182   : > { %vm2207_vm7 = vcmp.ge.f32.partialorder %v2199_v34, 0.0  ;;  %v2215_v15 = vmul.f32 0.1, %v2199_v34  ;;  %v2200_v56 = vadd.f32 %v3059_v16, %v2684_v13  ;;  %v2197_v19 = vadd.f32 %v3048_v50, %v2684_v13  ;;  %v2152_v1 = vpop.f32.mrb[3].mxu0 }
 0x183   : > { %v2225_v10 = vsel %vm2209_vm6, %v2201_v59, %v2217_v61  ;;  %vm2210_vm8 = vcmp.ge.f32.partialorder %v2202_v46, 0.0  ;;  %v2218_v18 = vmul.f32 0.1, %v2202_v46  ;;  %v3050_v9 = vadd.f32 %v3027_v54, %v2907_v31 }
 0x184   : > { %v2249_v20 = vadd.f32 %v2703_v26, %v2225_v10  ;;  %v2223_v22 = vsel %vm2207_vm7, %v2199_v34, %v2215_v15  ;;  %v2195_v23 = vadd.f32 %v3049_v14, %v2684_v13  ;;  %v3051_v28 = vadd.f32 %v2152_v1, %v997_v2 }
 0x185   : > { %v2247_v60 = vadd.f32 %v2699_v3, %v2223_v22  ;;  %v2226_v25 = vsel %vm2210_vm8, %v2202_v46, %v2218_v18  ;;  %vm2205_vm9 = vcmp.ge.f32.partialorder %v2197_v19, 0.0  ;;  %v2213_v32 = vmul.f32 0.1, %v2197_v19 }
 0x186   : > { %vm2257_vm10 = vcmp.ge.f32.partialorder %v2249_v20, 0.0  ;;  %v2265_v11 = vmul.f32 0.1, %v2249_v20  ;;  %vm2203_vm11 = vcmp.ge.f32.partialorder %v2195_v23, 0.0  ;;  %v2211_v12 = vmul.f32 0.1, %v2195_v23 }
 0x187   : > { %vm2255_vm12 = vcmp.ge.f32.partialorder %v2247_v60, 0.0  ;;  %v2263_v21 = vmul.f32 0.1, %v2247_v60  ;;  %v2221_v33 = vsel %vm2205_vm9, %v2197_v19, %v2213_v32  ;;  %v2198_v51 = vadd.f32 %v3050_v9, %v2684_v13 }
 0x188   : > { %v2273_v35 = vsel %vm2257_vm10, %v2249_v20, %v2265_v11  ;;  %v2250_v31 = vadd.f32 %v2704_v17, %v2226_v25  ;;  %v2245_v2 = vadd.f32 %v2695_v52, %v2221_v33  ;;  %v2219_v57 = vsel %vm2203_vm11, %v2195_v23, %v2211_v12 }
 0x189   : > { %2281 = vst [vmem:[%s3823_s8 + $0x30] sm:$0xff] %v2273_v35  ;;  %v2271_v36 = vsel %vm2255_vm12, %v2247_v60, %v2263_v21  ;;  %v2196_v37 = vadd.f32 %v3051_v28, %v2684_v13  ;;  %v2243_v39 = vadd.f32 %v2691_v47, %v2219_v57  ;;  %vm2206_vm13 = vcmp.ge.f32.partialorder %v2198_v51, 0.0 }
 0x18a   : > { %2279 = vst [vmem:[%s3823_s8 + $0x20] sm:$0xff] %v2271_v36  ;;  %v2214_v40 = vmul.f32 0.1, %v2198_v51  ;;  %vm2258_vm14 = vcmp.ge.f32.partialorder %v2250_v31, 0.0  ;;  %vm2253_vm15 = vcmp.ge.f32.partialorder %v2245_v2, 0.0  ;;  %vm2208_vm2 = vcmp.ge.f32.partialorder %v2200_v56, 0.0 }
 0x18b   : > { %v2261_v41 = vmul.f32 0.1, %v2245_v2  ;;  %v2266_v42 = vmul.f32 0.1, %v2250_v31  ;;  %vm2204_vm0 = vcmp.ge.f32.partialorder %v2196_v37, 0.0  ;;  %vm2251_vm1 = vcmp.ge.f32.partialorder %v2243_v39, 0.0 }
 0x18c   : > { %v2259_v30 = vmul.f32 0.1, %v2243_v39  ;;  %v2222_v8 = vsel %vm2206_vm13, %v2198_v51, %v2214_v40  ;;  %v2212_v43 = vmul.f32 0.1, %v2196_v37  ;;  %v2216_v49 = vmul.f32 0.1, %v2200_v56 }
 0x18d   : > { %v2269_v0 = vsel %vm2253_vm15, %v2245_v2, %v2261_v41  ;;  %v2246_v55 = vadd.f32 %v2696_v4, %v2222_v8  ;;  %v2274_v45 = vsel %vm2258_vm14, %v2250_v31, %v2266_v42 }
 0x18e   : > { %2277 = vst [vmem:[%s3823_s8 + $0x10] sm:$0xff] %v2269_v0  ;;  %v2267_v13 = vsel %vm2251_vm1, %v2243_v39, %v2259_v30  ;;  %2282 = vst [vmem:[%s3823_s8 + $0x38] sm:$0xff] %v2274_v45  ;;  %v2220_v63 = vsel %vm2204_vm0, %v2196_v37, %v2212_v43  ;;  %v2224_v26 = vsel %vm2208_vm2, %v2200_v56, %v2216_v49 }
 0x18f   : > { %2275 = vst [vmem:[%s3823_s8] sm:$0xff] %v2267_v13  ;;  %vm2254_vm3 = vcmp.ge.f32.partialorder %v2246_v55, 0.0  ;;  %v2262_v53 = vmul.f32 0.1, %v2246_v55  ;;  %v2244_v52 = vadd.f32 %v2692_v27, %v2220_v63  ;;  %v2248_v62 = vadd.f32 %v2700_v38, %v2224_v26 }
 0x191   : > { %v2270_v47 = vsel %vm2254_vm3, %v2246_v55, %v2262_v53  ;;  %vm2252_vm4 = vcmp.ge.f32.partialorder %v2244_v52, 0.0  ;;  %v2260_v44 = vmul.f32 0.1, %v2244_v52  ;;  %vm2256_vm5 = vcmp.ge.f32.partialorder %v2248_v62, 0.0 }
 0x192   : > { %2278 = vst [vmem:[%s3823_s8 + $0x18] sm:$0xff] %v2270_v47  ;;  %v2264_v59 = vmul.f32 0.1, %v2248_v62 }
 0x193   : > { %v2268_v58 = vsel %vm2252_vm4, %v2244_v52, %v2260_v44 }
 0x194   : > { %2276 = vst [vmem:[%s3823_s8 + $0x8] sm:$0xff] %v2268_v58  ;;  %v2272_v3 = vsel %vm2256_vm5, %v2248_v62, %v2264_v59 }
 0x195   : > { %2280 = vst [vmem:[%s3823_s8 + $0x28] sm:$0xff] %v2272_v3 }
 0x196 PF: > { %s14_s15 = sadd.s32 1, %s3211_s15  }
 0x197   : > { %p11_p4 = scmp.ge.s32.totalorder %s14_s15, 4  }
 0x199   :  { %13 = sbr.rel (!%p11_p4) target bundleno = 1 (0x1), region = 79 }

</bundles_post_ra>
